<compile_context>
chip_gen: v7x
topology: tpu7x:2x2x1
jax: 0.10.0
libtpu: 0.0.40
codegen_flags: <defaults>
</compile_context>

<pallas_src>
import functools

import jax
import jax.numpy as jnp
from jax.experimental import pallas as pl
from jax.experimental.pallas import tpu as pltpu


# Row indices inside the packed (N_VEC_ROWS, 6H) bias / LayerNorm-affine slab.
_ROW_ENC_B, _ROW_GRUF_BIH, _ROW_GRUF_BHH = 0, 1, 2
_ROW_LNF_G, _ROW_LNF_B, _ROW_NEW_B = 3, 4, 5
_ROW_GRU_BIH, _ROW_GRU_BHH = 6, 7
_ROW_LN_G, _ROW_LN_B, _ROW_OUT_B = 8, 9, 10
_N_VEC_ROWS = 11


def _full_spec(a):
    """BlockSpec that keeps the whole array resident as a single VMEM block."""
    zeros = (0,) * a.ndim
    return pl.BlockSpec(a.shape, lambda i: zeros)


def _gru_gates(xg, hg, h_prev, H):
    """One GRU update, PyTorch gate order (r, z, n); xg/hg are (B, 3H) slabs."""
    r = jax.nn.sigmoid(xg[:, 0:H] + hg[:, 0:H])
    z = jax.nn.sigmoid(xg[:, H:2 * H] + hg[:, H:2 * H])
    n = jnp.tanh(xg[:, 2 * H:3 * H] + r * hg[:, 2 * H:3 * H])
    return (1.0 - z) * n + z * h_prev


# ------------------------------ fused kernel ---------------------------------
def _fused_kernel(ids_ref, tab_ref, gruF_wihT_ref, gruF_whhT_ref, new_wT_ref,
                  gru_wihT_ref, gru_whhT_ref, out_wT_ref, vec_ref,
                  logits_ref, hidden_ref,
                  x_scr, xgF_scr, hF_scr, xg2_scr, fwd_scr, bwd_scr,
                  *, T, B, H):
    TB = T * B
    Vp = tab_ref.shape[0]
    f32 = jnp.float32

    def vrow(row, width):                       # static slice of the vector slab
        return vec_ref[row:row + 1, 0:width]    # (1, width), lane offset 0

    # --- embedding lookup (one-hot matmul vs. table pre-fused with enc.linear) +
    # --- tanh: x_all = tanh(linear(embedding(ids)))
    ids = ids_ref[...]                                           # (TB, 1) int32
    iota_v = jax.lax.broadcasted_iota(jnp.int32, (TB, Vp), 1)
    onehot = (ids == iota_v).astype(f32)                         # (TB, Vp)
    x_all = jnp.tanh(jnp.dot(onehot, tab_ref[...], preferred_element_type=f32)
                     + vrow(_ROW_ENC_B, H))                      # (TB, H)
    x_scr[...] = x_all

    # --- stage 1: GRU_F.  Time-parallel input projection hoisted out of the loop.
    xgF_scr[...] = (jnp.dot(x_all, gruF_wihT_ref[...], preferred_element_type=f32)
                    + vrow(_ROW_GRUF_BIH, 3 * H))                # (TB, 3H)
    whhF = gruF_whhT_ref[...]                                    # (H, 3H)
    bhhF = jnp.broadcast_to(vrow(_ROW_GRUF_BHH, 3 * H), (B, 3 * H))
    h = jnp.zeros((B, H), f32)
    for t in range(T):                          # unrolled serial recurrence
        hg = jnp.dot(h, whhF, preferred_element_type=f32) + bhhF
        h = _gru_gates(xgF_scr[t * B:(t + 1) * B, :], hg, h, H)
        hF_scr[t * B:(t + 1) * B, :] = h

    # --- batched epilogue 1: LayerNorm_F -> dropout(id) -> concat -> linear_new
    # TODO(synk): nn.Dropout(0.2) is stochastic; modeled as identity (eval mode).
    hF = hF_scr[...]
    mu = jnp.mean(hF, axis=-1, keepdims=True)
    var = jnp.mean(jnp.square(hF - mu), axis=-1, keepdims=True)
    hn = ((hF - mu) * jax.lax.rsqrt(var + 1e-5) * vrow(_ROW_LNF_G, H)
          + vrow(_ROW_LNF_B, H))
    cat1 = jnp.concatenate([hn, x_scr[...]], axis=-1)            # (TB, 2H)
    gru_in = (jnp.dot(cat1, new_wT_ref[...], preferred_element_type=f32)
              + vrow(_ROW_NEW_B, H))                             # (TB, H)

    # --- stage 2: bi-GRU.  Both directions' input projections in one matmul,
    # --- both directions' recurrent matmuls in one block-diagonal MXU push.
    xg2_scr[...] = (jnp.dot(gru_in, gru_wihT_ref[...], preferred_element_type=f32)
                    + vrow(_ROW_GRU_BIH, 6 * H))                 # (TB, 6H)
    whh2 = gru_whhT_ref[...]                                     # (2H, 6H) blockdiag
    bhh2 = jnp.broadcast_to(vrow(_ROW_GRU_BHH, 6 * H), (B, 6 * H))
    h_cat = jnp.zeros((B, 2 * H), f32)                           # [h_fwd | h_bwd]
    for s in range(T):                          # fwd + rev in one unrolled loop
        tb = T - 1 - s
        hg = jnp.dot(h_cat, whh2, preferred_element_type=f32) + bhh2   # (B, 6H)
        hf = _gru_gates(xg2_scr[s * B:(s + 1) * B, 0:3 * H],
                        hg[:, 0:3 * H], h_cat[:, 0:H], H)
        hb = _gru_gates(xg2_scr[tb * B:(tb + 1) * B, 3 * H:6 * H],
                        hg[:, 3 * H:6 * H], h_cat[:, H:2 * H], H)
        fwd_scr[s * B:(s + 1) * B, :] = hf
        bwd_scr[tb * B:(tb + 1) * B, :] = hb
        h_cat = jnp.concatenate([hf, hb], axis=-1)
    hidden_ref[0] = h_cat[:, 0:H]               # nn.GRU(bidirectional) h_n layout
    hidden_ref[1] = h_cat[:, H:2 * H]

    # --- batched epilogue 2: LayerNorm(2H) -> dropout(id) -> final linear
    cat2 = jnp.concatenate([fwd_scr[...], bwd_scr[...]], axis=-1)  # (TB, 2H)
    mu2 = jnp.mean(cat2, axis=-1, keepdims=True)
    var2 = jnp.mean(jnp.square(cat2 - mu2), axis=-1, keepdims=True)
    y = ((cat2 - mu2) * jax.lax.rsqrt(var2 + 1e-5) * vrow(_ROW_LN_G, 2 * H)
         + vrow(_ROW_LN_B, 2 * H))
    O = logits_ref.shape[1]
    logits_ref[...] = (jnp.dot(y, out_wT_ref[...], preferred_element_type=f32)
                       + vrow(_ROW_OUT_B, O))


# ------------------------------ parameter init -------------------------------
def _u(key, shape, scale):
    return jax.random.uniform(key, shape, jnp.float32, -scale, scale)


def init_params(key, num_embeddings, embedding_dim, hidden_size, output_size):
    """PyTorch-convention parameter shapes (no Python ints in the pytree)."""
    H, E = hidden_size, embedding_dim
    ks = jax.random.split(key, 19)
    s_e, s_h, s_2h = 1.0 / jnp.sqrt(E), 1.0 / jnp.sqrt(H), 1.0 / jnp.sqrt(2 * H)
    p = {}
    p["embedding"] = jax.random.normal(ks[0], (num_embeddings, E), jnp.float32)
    p["enc_linear_w"] = _u(ks[1], (H, E), s_e)          # Encoder.linear: E -> H
    p["enc_linear_b"] = _u(ks[2], (H,), s_e)
    p["linear_new_w"] = _u(ks[3], (H, 2 * H), s_2h)     # Encoder.linear_new: 2H -> H
    p["linear_new_b"] = _u(ks[4], (H,), s_2h)
    p["gruF_w_ih"] = _u(ks[5], (3 * H, H), s_h)         # Encoder.gru_F
    p["gruF_w_hh"] = _u(ks[6], (3 * H, H), s_h)
    p["gruF_b_ih"] = _u(ks[7], (3 * H,), s_h)
    p["gruF_b_hh"] = _u(ks[8], (3 * H,), s_h)
    p["gru_w_ih"] = _u(ks[9], (3 * H, H), s_h)          # Encoder.gru (fwd dir)
    p["gru_w_hh"] = _u(ks[10], (3 * H, H), s_h)
    p["gru_b_ih"] = _u(ks[11], (3 * H,), s_h)
    p["gru_b_hh"] = _u(ks[12], (3 * H,), s_h)
    p["gru_w_ih_r"] = _u(ks[13], (3 * H, H), s_h)       # Encoder.gru (reverse dir)
    p["gru_w_hh_r"] = _u(ks[14], (3 * H, H), s_h)
    p["gru_b_ih_r"] = _u(ks[15], (3 * H,), s_h)
    p["gru_b_hh_r"] = _u(ks[16], (3 * H,), s_h)
    p["lnF_g"] = jnp.ones((H,), jnp.float32)            # Encoder.LN_F
    p["lnF_b"] = jnp.zeros((H,), jnp.float32)
    p["ln_g"] = jnp.ones((2 * H,), jnp.float32)         # Encoder.LN
    p["ln_b"] = jnp.zeros((2 * H,), jnp.float32)
    p["out_linear_w"] = _u(ks[17], (output_size, 2 * H), s_2h)  # SequenceTaggle1.linear
    p["out_linear_b"] = _u(ks[18], (output_size,), s_2h)
    return p


def pack_params(p):
    """All transposes, gate stacking, weight concat/block-diag packing, the
    embedding@enc_linear fusion (exact) and the bias/LN slab are hoisted here,
    outside the jitted hot path.  Output is arrays only."""
    H = p["enc_linear_w"].shape[0]
    V = p["embedding"].shape[0]
    Vp = ((V + 127) // 128) * 128            # pad vocab -> lane-aligned one-hot K
    tT = lambda w: jnp.asarray(w, jnp.float32).T

    # Embedding lookup fused through Encoder.linear: table @ W_enc^T (exact).
    fused_tab = jnp.dot(p["embedding"], tT(p["enc_linear_w"]))        # (V, H)
    fused_tab = jnp.zeros((Vp, H), jnp.float32).at[:V].set(fused_tab)

    # bi-GRU: input-proj weights concatenated, recurrent weights block-diagonal.
    wih2 = jnp.concatenate([tT(p["gru_w_ih"]), tT(p["gru_w_ih_r"])], axis=1)  # (H,6H)
    zer = jnp.zeros((H, 3 * H), jnp.float32)
    whh2 = jnp.concatenate(
        [jnp.concatenate([tT(p["gru_w_hh"]), zer], axis=1),
         jnp.concatenate([zer, tT(p["gru_w_hh_r"])], axis=1)], axis=0)        # (2H,6H)

    # All 1-row vectors (biases / LayerNorm affine) in a single slab: one DMA.
    vec = jnp.zeros((_N_VEC_ROWS, 6 * H), jnp.float32)
    put = lambda v, row, a: v.at[row, :a.shape[0]].set(jnp.asarray(a, jnp.float32))
    vec = put(vec, _ROW_ENC_B, p["enc_linear_b"])
    vec = put(vec, _ROW_GRUF_BIH, p["gruF_b_ih"])
    vec = put(vec, _ROW_GRUF_BHH, p["gruF_b_hh"])
    vec = put(vec, _ROW_LNF_G, p["lnF_g"])
    vec = put(vec, _ROW_LNF_B, p["lnF_b"])
    vec = put(vec, _ROW_NEW_B, p["linear_new_b"])
    vec = put(vec, _ROW_GRU_BIH, jnp.concatenate([p["gru_b_ih"], p["gru_b_ih_r"]]))
    vec = put(vec, _ROW_GRU_BHH, jnp.concatenate([p["gru_b_hh"], p["gru_b_hh_r"]]))
    vec = put(vec, _ROW_LN_G, p["ln_g"])
    vec = put(vec, _ROW_LN_B, p["ln_b"])
    vec = put(vec, _ROW_OUT_B, p["out_linear_b"])

    return {
        "emb_tab": fused_tab,                  # (Vp, H)  embedding @ enc_linear^T
        "gruF_wihT": tT(p["gruF_w_ih"]),       # (H, 3H)  gates r|z|n
        "gruF_whhT": tT(p["gruF_w_hh"]),       # (H, 3H)
        "new_wT": tT(p["linear_new_w"]),       # (2H, H)  rows: [LN_F(gruF) | tanh(lin)]
        "gru_wihT": wih2,                      # (H, 6H)  [fwd | rev]
        "gru_whhT": whh2,                      # (2H, 6H) blockdiag(fwd, rev)
        "out_wT": tT(p["out_linear_w"]),       # (2H, O)  rows: [fwd | bwd]
        "vec": vec,                            # (11, 6H) bias / LN slab
    }


# -------------------------------- forward pass --------------------------------
def sequence_taggle1_forward(packed, token_ids):
    """token_ids: (T, B) int32 -> (logits (T, B, O), hidden (2, B, H))."""
    T, B = token_ids.shape
    TB = T * B
    H = packed["gruF_whhT"].shape[0]
    O = packed["out_wT"].shape[1]
    ids_flat = token_ids.reshape(TB, 1).astype(jnp.int32)
    args = (ids_flat, packed["emb_tab"], packed["gruF_wihT"], packed["gruF_whhT"],
            packed["new_wT"], packed["gru_wihT"], packed["gru_whhT"],
            packed["out_wT"], packed["vec"])
    logits_flat, hidden = pl.pallas_call(
        functools.partial(_fused_kernel, T=T, B=B, H=H),
        out_shape=(jax.ShapeDtypeStruct((TB, O), jnp.float32),
                   jax.ShapeDtypeStruct((2, B, H), jnp.float32)),
        grid=(1,),
        in_specs=[_full_spec(a) for a in args],
        out_specs=(pl.BlockSpec((TB, O), lambda i: (0, 0)),
                   pl.BlockSpec((2, B, H), lambda i: (0, 0, 0))),
        scratch_shapes=[
            pltpu.VMEM((TB, H), jnp.float32),        # x_scr  : tanh(linear(emb))
            pltpu.VMEM((TB, 3 * H), jnp.float32),    # xgF_scr: GRU_F input gates
            pltpu.VMEM((TB, H), jnp.float32),        # hF_scr : GRU_F hidden states
            pltpu.VMEM((TB, 6 * H), jnp.float32),    # xg2_scr: bi-GRU input gates
            pltpu.VMEM((TB, H), jnp.float32),        # fwd_scr: bi-GRU fwd states
            pltpu.VMEM((TB, H), jnp.float32),        # bwd_scr: bi-GRU bwd states
        ],
        compiler_params=pltpu.CompilerParams(dimension_semantics=("arbitrary",)),
    )(*args)
    return logits_flat.reshape(T, B, O), hidden


# ------------------------------------ main -------------------------------------
if __name__ == "__main__":
    num_embeddings, embedding_dim, hidden_size, output_size = 50, 16, 32, 8
    T, B = 8, 8  # (seq_len, batch); B=8 keeps per-timestep slices sublane-aligned

    key = jax.random.PRNGKey(0)
    params = init_params(key, num_embeddings, embedding_dim, hidden_size, output_size)
    packed = pack_params(params)
    tokens = jax.random.randint(jax.random.fold_in(key, 999), (T, B),
                                0, num_embeddings, dtype=jnp.int32)

    logits, hidden = jax.jit(sequence_taggle1_forward)(packed, tokens)
    jax.block_until_ready((logits, hidden))

    assert logits.shape == (T, B, output_size)
    assert hidden.shape == (2, B, hidden_size)
    assert logits.dtype == jnp.float32 and hidden.dtype == jnp.float32
    assert bool(jnp.all(jnp.isfinite(logits))) and bool(jnp.all(jnp.isfinite(hidden)))
    print("KERNEL_OK")
</pallas_src>

<mosaic_0001>
module attributes {stable_mosaic.version = 11 : i64} {
  func.func @_fused_kernel(%arg0: i32, %arg1: memref<64x1xi32, #tpu.memory_space<vmem>>, %arg2: memref<128x32xf32, #tpu.memory_space<vmem>>, %arg3: memref<32x96xf32, #tpu.memory_space<vmem>>, %arg4: memref<32x96xf32, #tpu.memory_space<vmem>>, %arg5: memref<64x32xf32, #tpu.memory_space<vmem>>, %arg6: memref<32x192xf32, #tpu.memory_space<vmem>>, %arg7: memref<64x192xf32, #tpu.memory_space<vmem>>, %arg8: memref<64x8xf32, #tpu.memory_space<vmem>>, %arg9: memref<11x192xf32, #tpu.memory_space<vmem>>, %arg10: memref<64x8xf32, #tpu.memory_space<vmem>>, %arg11: memref<2x8x32xf32, #tpu.memory_space<vmem>>, %arg12: memref<64x32xf32, #tpu.memory_space<vmem>>, %arg13: memref<64x96xf32, #tpu.memory_space<vmem>>, %arg14: memref<64x32xf32, #tpu.memory_space<vmem>>, %arg15: memref<64x192xf32, #tpu.memory_space<vmem>>, %arg16: memref<64x32xf32, #tpu.memory_space<vmem>>, %arg17: memref<64x32xf32, #tpu.memory_space<vmem>>) attributes {dimension_semantics = [#tpu.dimension_semantics<arbitrary>], iteration_bounds = array<i64: 1>, scalar_prefetch = 0 : i64, scratch_operands = 6 : i64, tpu.core_type = #tpu.core_type<tc>, window_params = [{pipeline_mode = #tpu.pipeline_mode<synchronous>, transform_indices = @transform_0, window_bounds = array<i64: 64, 1>}, {pipeline_mode = #tpu.pipeline_mode<synchronous>, transform_indices = @transform_1, window_bounds = array<i64: 128, 32>}, {pipeline_mode = #tpu.pipeline_mode<synchronous>, transform_indices = @transform_2, window_bounds = array<i64: 32, 96>}, {pipeline_mode = #tpu.pipeline_mode<synchronous>, transform_indices = @transform_3, window_bounds = array<i64: 32, 96>}, {pipeline_mode = #tpu.pipeline_mode<synchronous>, transform_indices = @transform_4, window_bounds = array<i64: 64, 32>}, {pipeline_mode = #tpu.pipeline_mode<synchronous>, transform_indices = @transform_5, window_bounds = array<i64: 32, 192>}, {pipeline_mode = #tpu.pipeline_mode<synchronous>, transform_indices = @transform_6, window_bounds = array<i64: 64, 192>}, {pipeline_mode = #tpu.pipeline_mode<synchronous>, transform_indices = @transform_7, window_bounds = array<i64: 64, 8>}, {pipeline_mode = #tpu.pipeline_mode<synchronous>, transform_indices = @transform_8, window_bounds = array<i64: 11, 192>}, {pipeline_mode = #tpu.pipeline_mode<synchronous>, transform_indices = @transform_9, window_bounds = array<i64: 64, 8>}, {pipeline_mode = #tpu.pipeline_mode<synchronous>, transform_indices = @transform_10, window_bounds = array<i64: 2, 8, 32>}]} {
    %c0 = arith.constant 0 : index
    %c0_0 = arith.constant 0 : index
    %0 = vector.load %arg1[%c0, %c0_0] : memref<64x1xi32, #tpu.memory_space<vmem>>, vector<64x1xi32>
    %1 = tpu.iota {dimensions = array<i32: 1>} : vector<64x128xi32>
    %2 = vector.broadcast %0 : vector<64x1xi32> to vector<64x128xi32>
    %3 = arith.cmpi eq, %2, %1 : vector<64x128xi32>
    %4 = arith.extui %3 : vector<64x128xi1> to vector<64x128xi32>
    %5 = arith.sitofp %4 : vector<64x128xi32> to vector<64x128xf32>
    %c0_1 = arith.constant 0 : index
    %c0_2 = arith.constant 0 : index
    %6 = vector.load %arg2[%c0_1, %c0_2] : memref<128x32xf32, #tpu.memory_space<vmem>>, vector<128x32xf32>
    %cst = arith.constant dense<0.000000e+00> : vector<64x32xf32>
    %7 = tpu.matmul %5, %6, %cst {dimension_numbers = #tpu.dot_dimension_numbers<[1], [0], [0], [1], [0, 0, 1, 1], [], []>} : vector<64x128xf32>, vector<128x32xf32>, vector<64x32xf32> -> vector<64x32xf32>
    %c0_3 = arith.constant 0 : index
    %c0_4 = arith.constant 0 : index
    %8 = vector.load %arg9[%c0_3, %c0_4] : memref<11x192xf32, #tpu.memory_space<vmem>>, vector<1x32xf32>
    %9 = vector.broadcast %8 : vector<1x32xf32> to vector<64x32xf32>
    %10 = arith.addf %7, %9 : vector<64x32xf32>
    %11 = math.tanh %10 : vector<64x32xf32>
    %c0_5 = arith.constant 0 : index
    %c0_6 = arith.constant 0 : index
    %12 = vector.load %arg12[%c0_5, %c0_6] : memref<64x32xf32, #tpu.memory_space<vmem>>, vector<64x32xf32>
    tpu.vector_store %arg12[%c0_5, %c0_6], %11 {strides = array<i32>} : memref<64x32xf32, #tpu.memory_space<vmem>>, vector<64x32xf32>,
    %c0_7 = arith.constant 0 : index
    %c0_8 = arith.constant 0 : index
    %13 = vector.load %arg3[%c0_7, %c0_8] : memref<32x96xf32, #tpu.memory_space<vmem>>, vector<32x96xf32>
    %cst_9 = arith.constant dense<0.000000e+00> : vector<64x96xf32>
    %14 = tpu.matmul %11, %13, %cst_9 {dimension_numbers = #tpu.dot_dimension_numbers<[1], [0], [0], [1], [0, 0, 1, 1], [], []>} : vector<64x32xf32>, vector<32x96xf32>, vector<64x96xf32> -> vector<64x96xf32>
    %c1 = arith.constant 1 : index
    %c0_10 = arith.constant 0 : index
    %15 = vector.load %arg9[%c1, %c0_10] : memref<11x192xf32, #tpu.memory_space<vmem>>, vector<1x96xf32>
    %16 = vector.broadcast %15 : vector<1x96xf32> to vector<64x96xf32>
    %17 = arith.addf %14, %16 : vector<64x96xf32>
    %c0_11 = arith.constant 0 : index
    %c0_12 = arith.constant 0 : index
    %18 = vector.load %arg13[%c0_11, %c0_12] : memref<64x96xf32, #tpu.memory_space<vmem>>, vector<64x96xf32>
    tpu.vector_store %arg13[%c0_11, %c0_12], %17 {strides = array<i32>} : memref<64x96xf32, #tpu.memory_space<vmem>>, vector<64x96xf32>,
    %c0_13 = arith.constant 0 : index
    %c0_14 = arith.constant 0 : index
    %19 = vector.load %arg4[%c0_13, %c0_14] : memref<32x96xf32, #tpu.memory_space<vmem>>, vector<32x96xf32>
    %c2 = arith.constant 2 : index
    %c0_15 = arith.constant 0 : index
    %20 = vector.load %arg9[%c2, %c0_15] : memref<11x192xf32, #tpu.memory_space<vmem>>, vector<1x96xf32>
    %21 = vector.shape_cast %20 : vector<1x96xf32> to vector<1x96xf32>
    %22 = vector.broadcast %21 : vector<1x96xf32> to vector<8x96xf32>
    %cst_16 = arith.constant 0.000000e+00 : f32
    %23 = vector.broadcast %cst_16 : f32 to vector<8x32xf32>
    %cst_17 = arith.constant dense<0.000000e+00> : vector<8x96xf32>
    %24 = tpu.matmul %23, %19, %cst_17 {dimension_numbers = #tpu.dot_dimension_numbers<[1], [0], [0], [1], [0, 0, 1, 1], [], []>} : vector<8x32xf32>, vector<32x96xf32>, vector<8x96xf32> -> vector<8x96xf32>
    %25 = arith.addf %24, %22 : vector<8x96xf32>
    %c0_18 = arith.constant 0 : index
    %c0_19 = arith.constant 0 : index
    %26 = vector.load %arg13[%c0_18, %c0_19] : memref<64x96xf32, #tpu.memory_space<vmem>>, vector<8x96xf32>
    %27 = vector.extract_strided_slice %26 {offsets = [0, 0], sizes = [8, 32], strides = [1, 1]} : vector<8x96xf32> to vector<8x32xf32>
    %28 = vector.extract_strided_slice %25 {offsets = [0, 0], sizes = [8, 32], strides = [1, 1]} : vector<8x96xf32> to vector<8x32xf32>
    %29 = arith.addf %27, %28 : vector<8x32xf32>
    %30 = arith.negf %29 : vector<8x32xf32>
    %31 = math.exp %30 : vector<8x32xf32>
    %cst_20 = arith.constant 1.000000e+00 : f32
    %32 = vector.broadcast %cst_20 : f32 to vector<8x32xf32>
    %33 = arith.addf %32, %31 : vector<8x32xf32>
    %34 = arith.divf %32, %33 : vector<8x32xf32>
    %35 = vector.extract_strided_slice %26 {offsets = [0, 32], sizes = [8, 32], strides = [1, 1]} : vector<8x96xf32> to vector<8x32xf32>
    %36 = vector.extract_strided_slice %25 {offsets = [0, 32], sizes = [8, 32], strides = [1, 1]} : vector<8x96xf32> to vector<8x32xf32>
    %37 = arith.addf %35, %36 : vector<8x32xf32>
    %38 = arith.negf %37 : vector<8x32xf32>
    %39 = math.exp %38 : vector<8x32xf32>
    %cst_21 = arith.constant 1.000000e+00 : f32
    %40 = vector.broadcast %cst_21 : f32 to vector<8x32xf32>
    %41 = arith.addf %40, %39 : vector<8x32xf32>
    %42 = arith.divf %40, %41 : vector<8x32xf32>
    %43 = vector.extract_strided_slice %26 {offsets = [0, 64], sizes = [8, 32], strides = [1, 1]} : vector<8x96xf32> to vector<8x32xf32>
    %44 = vector.extract_strided_slice %25 {offsets = [0, 64], sizes = [8, 32], strides = [1, 1]} : vector<8x96xf32> to vector<8x32xf32>
    %45 = arith.mulf %34, %44 : vector<8x32xf32>
    %46 = arith.addf %43, %45 : vector<8x32xf32>
    %47 = math.tanh %46 : vector<8x32xf32>
    %cst_22 = arith.constant 1.000000e+00 : f32
    %48 = vector.broadcast %cst_22 : f32 to vector<8x32xf32>
    %49 = arith.subf %48, %42 : vector<8x32xf32>
    %50 = arith.mulf %49, %47 : vector<8x32xf32>
    %51 = arith.mulf %42, %23 : vector<8x32xf32>
    %52 = arith.addf %50, %51 : vector<8x32xf32>
    %c0_23 = arith.constant 0 : index
    %c0_24 = arith.constant 0 : index
    %53 = vector.load %arg14[%c0_23, %c0_24] : memref<64x32xf32, #tpu.memory_space<vmem>>, vector<8x32xf32>
    tpu.vector_store %arg14[%c0_23, %c0_24], %52 {strides = array<i32>} : memref<64x32xf32, #tpu.memory_space<vmem>>, vector<8x32xf32>,
    %cst_25 = arith.constant dense<0.000000e+00> : vector<8x96xf32>
    %54 = tpu.matmul %52, %19, %cst_25 {dimension_numbers = #tpu.dot_dimension_numbers<[1], [0], [0], [1], [0, 0, 1, 1], [], []>} : vector<8x32xf32>, vector<32x96xf32>, vector<8x96xf32> -> vector<8x96xf32>
    %55 = arith.addf %54, %22 : vector<8x96xf32>
    %c8 = arith.constant 8 : index
    %c0_26 = arith.constant 0 : index
    %56 = vector.load %arg13[%c8, %c0_26] : memref<64x96xf32, #tpu.memory_space<vmem>>, vector<8x96xf32>
    %57 = vector.extract_strided_slice %56 {offsets = [0, 0], sizes = [8, 32], strides = [1, 1]} : vector<8x96xf32> to vector<8x32xf32>
    %58 = vector.extract_strided_slice %55 {offsets = [0, 0], sizes = [8, 32], strides = [1, 1]} : vector<8x96xf32> to vector<8x32xf32>
    %59 = arith.addf %57, %58 : vector<8x32xf32>
    %60 = arith.negf %59 : vector<8x32xf32>
    %61 = math.exp %60 : vector<8x32xf32>
    %cst_27 = arith.constant 1.000000e+00 : f32
    %62 = vector.broadcast %cst_27 : f32 to vector<8x32xf32>
    %63 = arith.addf %62, %61 : vector<8x32xf32>
    %64 = arith.divf %62, %63 : vector<8x32xf32>
    %65 = vector.extract_strided_slice %56 {offsets = [0, 32], sizes = [8, 32], strides = [1, 1]} : vector<8x96xf32> to vector<8x32xf32>
    %66 = vector.extract_strided_slice %55 {offsets = [0, 32], sizes = [8, 32], strides = [1, 1]} : vector<8x96xf32> to vector<8x32xf32>
    %67 = arith.addf %65, %66 : vector<8x32xf32>
    %68 = arith.negf %67 : vector<8x32xf32>
    %69 = math.exp %68 : vector<8x32xf32>
    %cst_28 = arith.constant 1.000000e+00 : f32
    %70 = vector.broadcast %cst_28 : f32 to vector<8x32xf32>
    %71 = arith.addf %70, %69 : vector<8x32xf32>
    %72 = arith.divf %70, %71 : vector<8x32xf32>
    %73 = vector.extract_strided_slice %56 {offsets = [0, 64], sizes = [8, 32], strides = [1, 1]} : vector<8x96xf32> to vector<8x32xf32>
    %74 = vector.extract_strided_slice %55 {offsets = [0, 64], sizes = [8, 32], strides = [1, 1]} : vector<8x96xf32> to vector<8x32xf32>
    %75 = arith.mulf %64, %74 : vector<8x32xf32>
    %76 = arith.addf %73, %75 : vector<8x32xf32>
    %77 = math.tanh %76 : vector<8x32xf32>
    %cst_29 = arith.constant 1.000000e+00 : f32
    %78 = vector.broadcast %cst_29 : f32 to vector<8x32xf32>
    %79 = arith.subf %78, %72 : vector<8x32xf32>
    %80 = arith.mulf %79, %77 : vector<8x32xf32>
    %81 = arith.mulf %72, %52 : vector<8x32xf32>
    %82 = arith.addf %80, %81 : vector<8x32xf32>
    %c8_30 = arith.constant 8 : index
    %c0_31 = arith.constant 0 : index
    %83 = vector.load %arg14[%c8_30, %c0_31] : memref<64x32xf32, #tpu.memory_space<vmem>>, vector<8x32xf32>
    tpu.vector_store %arg14[%c8_30, %c0_31], %82 {strides = array<i32>} : memref<64x32xf32, #tpu.memory_space<vmem>>, vector<8x32xf32>,
    %cst_32 = arith.constant dense<0.000000e+00> : vector<8x96xf32>
    %84 = tpu.matmul %82, %19, %cst_32 {dimension_numbers = #tpu.dot_dimension_numbers<[1], [0], [0], [1], [0, 0, 1, 1], [], []>} : vector<8x32xf32>, vector<32x96xf32>, vector<8x96xf32> -> vector<8x96xf32>
    %85 = arith.addf %84, %22 : vector<8x96xf32>
    %c16 = arith.constant 16 : index
    %c0_33 = arith.constant 0 : index
    %86 = vector.load %arg13[%c16, %c0_33] : memref<64x96xf32, #tpu.memory_space<vmem>>, vector<8x96xf32>
    %87 = vector.extract_strided_slice %86 {offsets = [0, 0], sizes = [8, 32], strides = [1, 1]} : vector<8x96xf32> to vector<8x32xf32>
    %88 = vector.extract_strided_slice %85 {offsets = [0, 0], sizes = [8, 32], strides = [1, 1]} : vector<8x96xf32> to vector<8x32xf32>
    %89 = arith.addf %87, %88 : vector<8x32xf32>
    %90 = arith.negf %89 : vector<8x32xf32>
    %91 = math.exp %90 : vector<8x32xf32>
    %cst_34 = arith.constant 1.000000e+00 : f32
    %92 = vector.broadcast %cst_34 : f32 to vector<8x32xf32>
    %93 = arith.addf %92, %91 : vector<8x32xf32>
    %94 = arith.divf %92, %93 : vector<8x32xf32>
    %95 = vector.extract_strided_slice %86 {offsets = [0, 32], sizes = [8, 32], strides = [1, 1]} : vector<8x96xf32> to vector<8x32xf32>
    %96 = vector.extract_strided_slice %85 {offsets = [0, 32], sizes = [8, 32], strides = [1, 1]} : vector<8x96xf32> to vector<8x32xf32>
    %97 = arith.addf %95, %96 : vector<8x32xf32>
    %98 = arith.negf %97 : vector<8x32xf32>
    %99 = math.exp %98 : vector<8x32xf32>
    %cst_35 = arith.constant 1.000000e+00 : f32
    %100 = vector.broadcast %cst_35 : f32 to vector<8x32xf32>
    %101 = arith.addf %100, %99 : vector<8x32xf32>
    %102 = arith.divf %100, %101 : vector<8x32xf32>
    %103 = vector.extract_strided_slice %86 {offsets = [0, 64], sizes = [8, 32], strides = [1, 1]} : vector<8x96xf32> to vector<8x32xf32>
    %104 = vector.extract_strided_slice %85 {offsets = [0, 64], sizes = [8, 32], strides = [1, 1]} : vector<8x96xf32> to vector<8x32xf32>
    %105 = arith.mulf %94, %104 : vector<8x32xf32>
    %106 = arith.addf %103, %105 : vector<8x32xf32>
    %107 = math.tanh %106 : vector<8x32xf32>
    %cst_36 = arith.constant 1.000000e+00 : f32
    %108 = vector.broadcast %cst_36 : f32 to vector<8x32xf32>
    %109 = arith.subf %108, %102 : vector<8x32xf32>
    %110 = arith.mulf %109, %107 : vector<8x32xf32>
    %111 = arith.mulf %102, %82 : vector<8x32xf32>
    %112 = arith.addf %110, %111 : vector<8x32xf32>
    %c16_37 = arith.constant 16 : index
    %c0_38 = arith.constant 0 : index
    %113 = vector.load %arg14[%c16_37, %c0_38] : memref<64x32xf32, #tpu.memory_space<vmem>>, vector<8x32xf32>
    tpu.vector_store %arg14[%c16_37, %c0_38], %112 {strides = array<i32>} : memref<64x32xf32, #tpu.memory_space<vmem>>, vector<8x32xf32>,
    %cst_39 = arith.constant dense<0.000000e+00> : vector<8x96xf32>
    %114 = tpu.matmul %112, %19, %cst_39 {dimension_numbers = #tpu.dot_dimension_numbers<[1], [0], [0], [1], [0, 0, 1, 1], [], []>} : vector<8x32xf32>, vector<32x96xf32>, vector<8x96xf32> -> vector<8x96xf32>
    %115 = arith.addf %114, %22 : vector<8x96xf32>
    %c24 = arith.constant 24 : index
    %c0_40 = arith.constant 0 : index
    %116 = vector.load %arg13[%c24, %c0_40] : memref<64x96xf32, #tpu.memory_space<vmem>>, vector<8x96xf32>
    %117 = vector.extract_strided_slice %116 {offsets = [0, 0], sizes = [8, 32], strides = [1, 1]} : vector<8x96xf32> to vector<8x32xf32>
    %118 = vector.extract_strided_slice %115 {offsets = [0, 0], sizes = [8, 32], strides = [1, 1]} : vector<8x96xf32> to vector<8x32xf32>
    %119 = arith.addf %117, %118 : vector<8x32xf32>
    %120 = arith.negf %119 : vector<8x32xf32>
    %121 = math.exp %120 : vector<8x32xf32>
    %cst_41 = arith.constant 1.000000e+00 : f32
    %122 = vector.broadcast %cst_41 : f32 to vector<8x32xf32>
    %123 = arith.addf %122, %121 : vector<8x32xf32>
    %124 = arith.divf %122, %123 : vector<8x32xf32>
    %125 = vector.extract_strided_slice %116 {offsets = [0, 32], sizes = [8, 32], strides = [1, 1]} : vector<8x96xf32> to vector<8x32xf32>
    %126 = vector.extract_strided_slice %115 {offsets = [0, 32], sizes = [8, 32], strides = [1, 1]} : vector<8x96xf32> to vector<8x32xf32>
    %127 = arith.addf %125, %126 : vector<8x32xf32>
    %128 = arith.negf %127 : vector<8x32xf32>
    %129 = math.exp %128 : vector<8x32xf32>
    %cst_42 = arith.constant 1.000000e+00 : f32
    %130 = vector.broadcast %cst_42 : f32 to vector<8x32xf32>
    %131 = arith.addf %130, %129 : vector<8x32xf32>
    %132 = arith.divf %130, %131 : vector<8x32xf32>
    %133 = vector.extract_strided_slice %116 {offsets = [0, 64], sizes = [8, 32], strides = [1, 1]} : vector<8x96xf32> to vector<8x32xf32>
    %134 = vector.extract_strided_slice %115 {offsets = [0, 64], sizes = [8, 32], strides = [1, 1]} : vector<8x96xf32> to vector<8x32xf32>
    %135 = arith.mulf %124, %134 : vector<8x32xf32>
    %136 = arith.addf %133, %135 : vector<8x32xf32>
    %137 = math.tanh %136 : vector<8x32xf32>
    %cst_43 = arith.constant 1.000000e+00 : f32
    %138 = vector.broadcast %cst_43 : f32 to vector<8x32xf32>
    %139 = arith.subf %138, %132 : vector<8x32xf32>
    %140 = arith.mulf %139, %137 : vector<8x32xf32>
    %141 = arith.mulf %132, %112 : vector<8x32xf32>
    %142 = arith.addf %140, %141 : vector<8x32xf32>
    %c24_44 = arith.constant 24 : index
    %c0_45 = arith.constant 0 : index
    %143 = vector.load %arg14[%c24_44, %c0_45] : memref<64x32xf32, #tpu.memory_space<vmem>>, vector<8x32xf32>
    tpu.vector_store %arg14[%c24_44, %c0_45], %142 {strides = array<i32>} : memref<64x32xf32, #tpu.memory_space<vmem>>, vector<8x32xf32>,
    %cst_46 = arith.constant dense<0.000000e+00> : vector<8x96xf32>
    %144 = tpu.matmul %142, %19, %cst_46 {dimension_numbers = #tpu.dot_dimension_numbers<[1], [0], [0], [1], [0, 0, 1, 1], [], []>} : vector<8x32xf32>, vector<32x96xf32>, vector<8x96xf32> -> vector<8x96xf32>
    %145 = arith.addf %144, %22 : vector<8x96xf32>
    %c32 = arith.constant 32 : index
    %c0_47 = arith.constant 0 : index
    %146 = vector.load %arg13[%c32, %c0_47] : memref<64x96xf32, #tpu.memory_space<vmem>>, vector<8x96xf32>
    %147 = vector.extract_strided_slice %146 {offsets = [0, 0], sizes = [8, 32], strides = [1, 1]} : vector<8x96xf32> to vector<8x32xf32>
    %148 = vector.extract_strided_slice %145 {offsets = [0, 0], sizes = [8, 32], strides = [1, 1]} : vector<8x96xf32> to vector<8x32xf32>
    %149 = arith.addf %147, %148 : vector<8x32xf32>
    %150 = arith.negf %149 : vector<8x32xf32>
    %151 = math.exp %150 : vector<8x32xf32>
    %cst_48 = arith.constant 1.000000e+00 : f32
    %152 = vector.broadcast %cst_48 : f32 to vector<8x32xf32>
    %153 = arith.addf %152, %151 : vector<8x32xf32>
    %154 = arith.divf %152, %153 : vector<8x32xf32>
    %155 = vector.extract_strided_slice %146 {offsets = [0, 32], sizes = [8, 32], strides = [1, 1]} : vector<8x96xf32> to vector<8x32xf32>
    %156 = vector.extract_strided_slice %145 {offsets = [0, 32], sizes = [8, 32], strides = [1, 1]} : vector<8x96xf32> to vector<8x32xf32>
    %157 = arith.addf %155, %156 : vector<8x32xf32>
    %158 = arith.negf %157 : vector<8x32xf32>
    %159 = math.exp %158 : vector<8x32xf32>
    %cst_49 = arith.constant 1.000000e+00 : f32
    %160 = vector.broadcast %cst_49 : f32 to vector<8x32xf32>
    %161 = arith.addf %160, %159 : vector<8x32xf32>
    %162 = arith.divf %160, %161 : vector<8x32xf32>
    %163 = vector.extract_strided_slice %146 {offsets = [0, 64], sizes = [8, 32], strides = [1, 1]} : vector<8x96xf32> to vector<8x32xf32>
    %164 = vector.extract_strided_slice %145 {offsets = [0, 64], sizes = [8, 32], strides = [1, 1]} : vector<8x96xf32> to vector<8x32xf32>
    %165 = arith.mulf %154, %164 : vector<8x32xf32>
    %166 = arith.addf %163, %165 : vector<8x32xf32>
    %167 = math.tanh %166 : vector<8x32xf32>
    %cst_50 = arith.constant 1.000000e+00 : f32
    %168 = vector.broadcast %cst_50 : f32 to vector<8x32xf32>
    %169 = arith.subf %168, %162 : vector<8x32xf32>
    %170 = arith.mulf %169, %167 : vector<8x32xf32>
    %171 = arith.mulf %162, %142 : vector<8x32xf32>
    %172 = arith.addf %170, %171 : vector<8x32xf32>
    %c32_51 = arith.constant 32 : index
    %c0_52 = arith.constant 0 : index
    %173 = vector.load %arg14[%c32_51, %c0_52] : memref<64x32xf32, #tpu.memory_space<vmem>>, vector<8x32xf32>
    tpu.vector_store %arg14[%c32_51, %c0_52], %172 {strides = array<i32>} : memref<64x32xf32, #tpu.memory_space<vmem>>, vector<8x32xf32>,
    %cst_53 = arith.constant dense<0.000000e+00> : vector<8x96xf32>
    %174 = tpu.matmul %172, %19, %cst_53 {dimension_numbers = #tpu.dot_dimension_numbers<[1], [0], [0], [1], [0, 0, 1, 1], [], []>} : vector<8x32xf32>, vector<32x96xf32>, vector<8x96xf32> -> vector<8x96xf32>
    %175 = arith.addf %174, %22 : vector<8x96xf32>
    %c40 = arith.constant 40 : index
    %c0_54 = arith.constant 0 : index
    %176 = vector.load %arg13[%c40, %c0_54] : memref<64x96xf32, #tpu.memory_space<vmem>>, vector<8x96xf32>
    %177 = vector.extract_strided_slice %176 {offsets = [0, 0], sizes = [8, 32], strides = [1, 1]} : vector<8x96xf32> to vector<8x32xf32>
    %178 = vector.extract_strided_slice %175 {offsets = [0, 0], sizes = [8, 32], strides = [1, 1]} : vector<8x96xf32> to vector<8x32xf32>
    %179 = arith.addf %177, %178 : vector<8x32xf32>
    %180 = arith.negf %179 : vector<8x32xf32>
    %181 = math.exp %180 : vector<8x32xf32>
    %cst_55 = arith.constant 1.000000e+00 : f32
    %182 = vector.broadcast %cst_55 : f32 to vector<8x32xf32>
    %183 = arith.addf %182, %181 : vector<8x32xf32>
    %184 = arith.divf %182, %183 : vector<8x32xf32>
    %185 = vector.extract_strided_slice %176 {offsets = [0, 32], sizes = [8, 32], strides = [1, 1]} : vector<8x96xf32> to vector<8x32xf32>
    %186 = vector.extract_strided_slice %175 {offsets = [0, 32], sizes = [8, 32], strides = [1, 1]} : vector<8x96xf32> to vector<8x32xf32>
    %187 = arith.addf %185, %186 : vector<8x32xf32>
    %188 = arith.negf %187 : vector<8x32xf32>
    %189 = math.exp %188 : vector<8x32xf32>
    %cst_56 = arith.constant 1.000000e+00 : f32
    %190 = vector.broadcast %cst_56 : f32 to vector<8x32xf32>
    %191 = arith.addf %190, %189 : vector<8x32xf32>
    %192 = arith.divf %190, %191 : vector<8x32xf32>
    %193 = vector.extract_strided_slice %176 {offsets = [0, 64], sizes = [8, 32], strides = [1, 1]} : vector<8x96xf32> to vector<8x32xf32>
    %194 = vector.extract_strided_slice %175 {offsets = [0, 64], sizes = [8, 32], strides = [1, 1]} : vector<8x96xf32> to vector<8x32xf32>
    %195 = arith.mulf %184, %194 : vector<8x32xf32>
    %196 = arith.addf %193, %195 : vector<8x32xf32>
    %197 = math.tanh %196 : vector<8x32xf32>
    %cst_57 = arith.constant 1.000000e+00 : f32
    %198 = vector.broadcast %cst_57 : f32 to vector<8x32xf32>
    %199 = arith.subf %198, %192 : vector<8x32xf32>
    %200 = arith.mulf %199, %197 : vector<8x32xf32>
    %201 = arith.mulf %192, %172 : vector<8x32xf32>
    %202 = arith.addf %200, %201 : vector<8x32xf32>
    %c40_58 = arith.constant 40 : index
    %c0_59 = arith.constant 0 : index
    %203 = vector.load %arg14[%c40_58, %c0_59] : memref<64x32xf32, #tpu.memory_space<vmem>>, vector<8x32xf32>
    tpu.vector_store %arg14[%c40_58, %c0_59], %202 {strides = array<i32>} : memref<64x32xf32, #tpu.memory_space<vmem>>, vector<8x32xf32>,
    %cst_60 = arith.constant dense<0.000000e+00> : vector<8x96xf32>
    %204 = tpu.matmul %202, %19, %cst_60 {dimension_numbers = #tpu.dot_dimension_numbers<[1], [0], [0], [1], [0, 0, 1, 1], [], []>} : vector<8x32xf32>, vector<32x96xf32>, vector<8x96xf32> -> vector<8x96xf32>
    %205 = arith.addf %204, %22 : vector<8x96xf32>
    %c48 = arith.constant 48 : index
    %c0_61 = arith.constant 0 : index
    %206 = vector.load %arg13[%c48, %c0_61] : memref<64x96xf32, #tpu.memory_space<vmem>>, vector<8x96xf32>
    %207 = vector.extract_strided_slice %206 {offsets = [0, 0], sizes = [8, 32], strides = [1, 1]} : vector<8x96xf32> to vector<8x32xf32>
    %208 = vector.extract_strided_slice %205 {offsets = [0, 0], sizes = [8, 32], strides = [1, 1]} : vector<8x96xf32> to vector<8x32xf32>
    %209 = arith.addf %207, %208 : vector<8x32xf32>
    %210 = arith.negf %209 : vector<8x32xf32>
    %211 = math.exp %210 : vector<8x32xf32>
    %cst_62 = arith.constant 1.000000e+00 : f32
    %212 = vector.broadcast %cst_62 : f32 to vector<8x32xf32>
    %213 = arith.addf %212, %211 : vector<8x32xf32>
    %214 = arith.divf %212, %213 : vector<8x32xf32>
    %215 = vector.extract_strided_slice %206 {offsets = [0, 32], sizes = [8, 32], strides = [1, 1]} : vector<8x96xf32> to vector<8x32xf32>
    %216 = vector.extract_strided_slice %205 {offsets = [0, 32], sizes = [8, 32], strides = [1, 1]} : vector<8x96xf32> to vector<8x32xf32>
    %217 = arith.addf %215, %216 : vector<8x32xf32>
    %218 = arith.negf %217 : vector<8x32xf32>
    %219 = math.exp %218 : vector<8x32xf32>
    %cst_63 = arith.constant 1.000000e+00 : f32
    %220 = vector.broadcast %cst_63 : f32 to vector<8x32xf32>
    %221 = arith.addf %220, %219 : vector<8x32xf32>
    %222 = arith.divf %220, %221 : vector<8x32xf32>
    %223 = vector.extract_strided_slice %206 {offsets = [0, 64], sizes = [8, 32], strides = [1, 1]} : vector<8x96xf32> to vector<8x32xf32>
    %224 = vector.extract_strided_slice %205 {offsets = [0, 64], sizes = [8, 32], strides = [1, 1]} : vector<8x96xf32> to vector<8x32xf32>
    %225 = arith.mulf %214, %224 : vector<8x32xf32>
    %226 = arith.addf %223, %225 : vector<8x32xf32>
    %227 = math.tanh %226 : vector<8x32xf32>
    %cst_64 = arith.constant 1.000000e+00 : f32
    %228 = vector.broadcast %cst_64 : f32 to vector<8x32xf32>
    %229 = arith.subf %228, %222 : vector<8x32xf32>
    %230 = arith.mulf %229, %227 : vector<8x32xf32>
    %231 = arith.mulf %222, %202 : vector<8x32xf32>
    %232 = arith.addf %230, %231 : vector<8x32xf32>
    %c48_65 = arith.constant 48 : index
    %c0_66 = arith.constant 0 : index
    %233 = vector.load %arg14[%c48_65, %c0_66] : memref<64x32xf32, #tpu.memory_space<vmem>>, vector<8x32xf32>
    tpu.vector_store %arg14[%c48_65, %c0_66], %232 {strides = array<i32>} : memref<64x32xf32, #tpu.memory_space<vmem>>, vector<8x32xf32>,
    %cst_67 = arith.constant dense<0.000000e+00> : vector<8x96xf32>
    %234 = tpu.matmul %232, %19, %cst_67 {dimension_numbers = #tpu.dot_dimension_numbers<[1], [0], [0], [1], [0, 0, 1, 1], [], []>} : vector<8x32xf32>, vector<32x96xf32>, vector<8x96xf32> -> vector<8x96xf32>
    %235 = arith.addf %234, %22 : vector<8x96xf32>
    %c56 = arith.constant 56 : index
    %c0_68 = arith.constant 0 : index
    %236 = vector.load %arg13[%c56, %c0_68] : memref<64x96xf32, #tpu.memory_space<vmem>>, vector<8x96xf32>
    %237 = vector.extract_strided_slice %236 {offsets = [0, 0], sizes = [8, 32], strides = [1, 1]} : vector<8x96xf32> to vector<8x32xf32>
    %238 = vector.extract_strided_slice %235 {offsets = [0, 0], sizes = [8, 32], strides = [1, 1]} : vector<8x96xf32> to vector<8x32xf32>
    %239 = arith.addf %237, %238 : vector<8x32xf32>
    %240 = arith.negf %239 : vector<8x32xf32>
    %241 = math.exp %240 : vector<8x32xf32>
    %cst_69 = arith.constant 1.000000e+00 : f32
    %242 = vector.broadcast %cst_69 : f32 to vector<8x32xf32>
    %243 = arith.addf %242, %241 : vector<8x32xf32>
    %244 = arith.divf %242, %243 : vector<8x32xf32>
    %245 = vector.extract_strided_slice %236 {offsets = [0, 32], sizes = [8, 32], strides = [1, 1]} : vector<8x96xf32> to vector<8x32xf32>
    %246 = vector.extract_strided_slice %235 {offsets = [0, 32], sizes = [8, 32], strides = [1, 1]} : vector<8x96xf32> to vector<8x32xf32>
    %247 = arith.addf %245, %246 : vector<8x32xf32>
    %248 = arith.negf %247 : vector<8x32xf32>
    %249 = math.exp %248 : vector<8x32xf32>
    %cst_70 = arith.constant 1.000000e+00 : f32
    %250 = vector.broadcast %cst_70 : f32 to vector<8x32xf32>
    %251 = arith.addf %250, %249 : vector<8x32xf32>
    %252 = arith.divf %250, %251 : vector<8x32xf32>
    %253 = vector.extract_strided_slice %236 {offsets = [0, 64], sizes = [8, 32], strides = [1, 1]} : vector<8x96xf32> to vector<8x32xf32>
    %254 = vector.extract_strided_slice %235 {offsets = [0, 64], sizes = [8, 32], strides = [1, 1]} : vector<8x96xf32> to vector<8x32xf32>
    %255 = arith.mulf %244, %254 : vector<8x32xf32>
    %256 = arith.addf %253, %255 : vector<8x32xf32>
    %257 = math.tanh %256 : vector<8x32xf32>
    %cst_71 = arith.constant 1.000000e+00 : f32
    %258 = vector.broadcast %cst_71 : f32 to vector<8x32xf32>
    %259 = arith.subf %258, %252 : vector<8x32xf32>
    %260 = arith.mulf %259, %257 : vector<8x32xf32>
    %261 = arith.mulf %252, %232 : vector<8x32xf32>
    %262 = arith.addf %260, %261 : vector<8x32xf32>
    %c56_72 = arith.constant 56 : index
    %c0_73 = arith.constant 0 : index
    %263 = vector.load %arg14[%c56_72, %c0_73] : memref<64x32xf32, #tpu.memory_space<vmem>>, vector<8x32xf32>
    tpu.vector_store %arg14[%c56_72, %c0_73], %262 {strides = array<i32>} : memref<64x32xf32, #tpu.memory_space<vmem>>, vector<8x32xf32>,
    %c0_74 = arith.constant 0 : index
    %c0_75 = arith.constant 0 : index
    %264 = vector.load %arg14[%c0_74, %c0_75] : memref<64x32xf32, #tpu.memory_space<vmem>>, vector<64x32xf32>
    %cst_76 = arith.constant dense<0.000000e+00> : vector<64xf32>
    %265 = vector.multi_reduction <add>, %264, %cst_76 [1] : vector<64x32xf32> to vector<64xf32>
    %266 = vector.shape_cast %265 : vector<64xf32> to vector<64x1xf32>
    %cst_77 = arith.constant 3.200000e+01 : f32
    %267 = vector.broadcast %cst_77 : f32 to vector<64x1xf32>
    %268 = arith.divf %266, %267 : vector<64x1xf32>
    %269 = vector.broadcast %268 : vector<64x1xf32> to vector<64x32xf32>
    %270 = arith.subf %264, %269 : vector<64x32xf32>
    %271 = arith.mulf %270, %270 : vector<64x32xf32>
    %cst_78 = arith.constant dense<0.000000e+00> : vector<64xf32>
    %272 = vector.multi_reduction <add>, %271, %cst_78 [1] : vector<64x32xf32> to vector<64xf32>
    %273 = vector.shape_cast %272 : vector<64xf32> to vector<64x1xf32>
    %cst_79 = arith.constant 3.200000e+01 : f32
    %274 = vector.broadcast %cst_79 : f32 to vector<64x1xf32>
    %275 = arith.divf %273, %274 : vector<64x1xf32>
    %276 = vector.broadcast %268 : vector<64x1xf32> to vector<64x32xf32>
    %277 = arith.subf %264, %276 : vector<64x32xf32>
    %cst_80 = arith.constant 9.99999974E-6 : f32
    %278 = vector.broadcast %cst_80 : f32 to vector<64x1xf32>
    %279 = arith.addf %275, %278 : vector<64x1xf32>
    %280 = math.rsqrt %279 : vector<64x1xf32>
    %281 = vector.broadcast %280 : vector<64x1xf32> to vector<64x32xf32>
    %282 = arith.mulf %277, %281 : vector<64x32xf32>
    %c3 = arith.constant 3 : index
    %c0_81 = arith.constant 0 : index
    %283 = vector.load %arg9[%c3, %c0_81] : memref<11x192xf32, #tpu.memory_space<vmem>>, vector<1x32xf32>
    %284 = vector.broadcast %283 : vector<1x32xf32> to vector<64x32xf32>
    %285 = arith.mulf %282, %284 : vector<64x32xf32>
    %c4 = arith.constant 4 : index
    %c0_82 = arith.constant 0 : index
    %286 = vector.load %arg9[%c4, %c0_82] : memref<11x192xf32, #tpu.memory_space<vmem>>, vector<1x32xf32>
    %287 = vector.broadcast %286 : vector<1x32xf32> to vector<64x32xf32>
    %288 = arith.addf %285, %287 : vector<64x32xf32>
    %c0_83 = arith.constant 0 : index
    %c0_84 = arith.constant 0 : index
    %289 = vector.load %arg12[%c0_83, %c0_84] : memref<64x32xf32, #tpu.memory_space<vmem>>, vector<64x32xf32>
    %290 = tpu.concatenate %288, %289 in 1 : vector<64x32xf32>, vector<64x32xf32> -> vector<64x64xf32>
    %c0_85 = arith.constant 0 : index
    %c0_86 = arith.constant 0 : index
    %291 = vector.load %arg5[%c0_85, %c0_86] : memref<64x32xf32, #tpu.memory_space<vmem>>, vector<64x32xf32>
    %cst_87 = arith.constant dense<0.000000e+00> : vector<64x32xf32>
    %292 = tpu.matmul %290, %291, %cst_87 {dimension_numbers = #tpu.dot_dimension_numbers<[1], [0], [0], [1], [0, 0, 1, 1], [], []>} : vector<64x64xf32>, vector<64x32xf32>, vector<64x32xf32> -> vector<64x32xf32>
    %c5 = arith.constant 5 : index
    %c0_88 = arith.constant 0 : index
    %293 = vector.load %arg9[%c5, %c0_88] : memref<11x192xf32, #tpu.memory_space<vmem>>, vector<1x32xf32>
    %294 = vector.broadcast %293 : vector<1x32xf32> to vector<64x32xf32>
    %295 = arith.addf %292, %294 : vector<64x32xf32>
    %c0_89 = arith.constant 0 : index
    %c0_90 = arith.constant 0 : index
    %296 = vector.load %arg6[%c0_89, %c0_90] : memref<32x192xf32, #tpu.memory_space<vmem>>, vector<32x192xf32>
    %cst_91 = arith.constant dense<0.000000e+00> : vector<64x192xf32>
    %297 = tpu.matmul %295, %296, %cst_91 {dimension_numbers = #tpu.dot_dimension_numbers<[1], [0], [0], [1], [0, 0, 1, 1], [], []>} : vector<64x32xf32>, vector<32x192xf32>, vector<64x192xf32> -> vector<64x192xf32>
    %c6 = arith.constant 6 : index
    %c0_92 = arith.constant 0 : index
    %298 = vector.load %arg9[%c6, %c0_92] : memref<11x192xf32, #tpu.memory_space<vmem>>, vector<1x192xf32>
    %299 = vector.broadcast %298 : vector<1x192xf32> to vector<64x192xf32>
    %300 = arith.addf %297, %299 : vector<64x192xf32>
    %c0_93 = arith.constant 0 : index
    %c0_94 = arith.constant 0 : index
    %301 = vector.load %arg15[%c0_93, %c0_94] : memref<64x192xf32, #tpu.memory_space<vmem>>, vector<64x192xf32>
    tpu.vector_store %arg15[%c0_93, %c0_94], %300 {strides = array<i32>} : memref<64x192xf32, #tpu.memory_space<vmem>>, vector<64x192xf32>,
    %c0_95 = arith.constant 0 : index
    %c0_96 = arith.constant 0 : index
    %302 = vector.load %arg7[%c0_95, %c0_96] : memref<64x192xf32, #tpu.memory_space<vmem>>, vector<64x192xf32>
    %c7 = arith.constant 7 : index
    %c0_97 = arith.constant 0 : index
    %303 = vector.load %arg9[%c7, %c0_97] : memref<11x192xf32, #tpu.memory_space<vmem>>, vector<1x192xf32>
    %304 = vector.shape_cast %303 : vector<1x192xf32> to vector<1x192xf32>
    %305 = vector.broadcast %304 : vector<1x192xf32> to vector<8x192xf32>
    %cst_98 = arith.constant 0.000000e+00 : f32
    %306 = vector.broadcast %cst_98 : f32 to vector<8x64xf32>
    %cst_99 = arith.constant dense<0.000000e+00> : vector<8x192xf32>
    %307 = tpu.matmul %306, %302, %cst_99 {dimension_numbers = #tpu.dot_dimension_numbers<[1], [0], [0], [1], [0, 0, 1, 1], [], []>} : vector<8x64xf32>, vector<64x192xf32>, vector<8x192xf32> -> vector<8x192xf32>
    %308 = arith.addf %307, %305 : vector<8x192xf32>
    %c0_100 = arith.constant 0 : index
    %c0_101 = arith.constant 0 : index
    %309 = vector.load %arg15[%c0_100, %c0_101] : memref<64x192xf32, #tpu.memory_space<vmem>>, vector<8x96xf32>
    %310 = vector.extract_strided_slice %308 {offsets = [0, 0], sizes = [8, 96], strides = [1, 1]} : vector<8x192xf32> to vector<8x96xf32>
    %311 = vector.extract_strided_slice %306 {offsets = [0, 0], sizes = [8, 32], strides = [1, 1]} : vector<8x64xf32> to vector<8x32xf32>
    %312 = vector.extract_strided_slice %309 {offsets = [0, 0], sizes = [8, 32], strides = [1, 1]} : vector<8x96xf32> to vector<8x32xf32>
    %313 = vector.extract_strided_slice %310 {offsets = [0, 0], sizes = [8, 32], strides = [1, 1]} : vector<8x96xf32> to vector<8x32xf32>
    %314 = arith.addf %312, %313 : vector<8x32xf32>
    %315 = arith.negf %314 : vector<8x32xf32>
    %316 = math.exp %315 : vector<8x32xf32>
    %cst_102 = arith.constant 1.000000e+00 : f32
    %317 = vector.broadcast %cst_102 : f32 to vector<8x32xf32>
    %318 = arith.addf %317, %316 : vector<8x32xf32>
    %319 = arith.divf %317, %318 : vector<8x32xf32>
    %320 = vector.extract_strided_slice %309 {offsets = [0, 32], sizes = [8, 32], strides = [1, 1]} : vector<8x96xf32> to vector<8x32xf32>
    %321 = vector.extract_strided_slice %310 {offsets = [0, 32], sizes = [8, 32], strides = [1, 1]} : vector<8x96xf32> to vector<8x32xf32>
    %322 = arith.addf %320, %321 : vector<8x32xf32>
    %323 = arith.negf %322 : vector<8x32xf32>
    %324 = math.exp %323 : vector<8x32xf32>
    %cst_103 = arith.constant 1.000000e+00 : f32
    %325 = vector.broadcast %cst_103 : f32 to vector<8x32xf32>
    %326 = arith.addf %325, %324 : vector<8x32xf32>
    %327 = arith.divf %325, %326 : vector<8x32xf32>
    %328 = vector.extract_strided_slice %309 {offsets = [0, 64], sizes = [8, 32], strides = [1, 1]} : vector<8x96xf32> to vector<8x32xf32>
    %329 = vector.extract_strided_slice %310 {offsets = [0, 64], sizes = [8, 32], strides = [1, 1]} : vector<8x96xf32> to vector<8x32xf32>
    %330 = arith.mulf %319, %329 : vector<8x32xf32>
    %331 = arith.addf %328, %330 : vector<8x32xf32>
    %332 = math.tanh %331 : vector<8x32xf32>
    %cst_104 = arith.constant 1.000000e+00 : f32
    %333 = vector.broadcast %cst_104 : f32 to vector<8x32xf32>
    %334 = arith.subf %333, %327 : vector<8x32xf32>
    %335 = arith.mulf %334, %332 : vector<8x32xf32>
    %336 = arith.mulf %327, %311 : vector<8x32xf32>
    %337 = arith.addf %335, %336 : vector<8x32xf32>
    %c56_105 = arith.constant 56 : index
    %c96 = arith.constant 96 : index
    %338 = vector.load %arg15[%c56_105, %c96] : memref<64x192xf32, #tpu.memory_space<vmem>>, vector<8x96xf32>
    %339 = vector.extract_strided_slice %308 {offsets = [0, 96], sizes = [8, 96], strides = [1, 1]} : vector<8x192xf32> to vector<8x96xf32>
    %340 = vector.extract_strided_slice %306 {offsets = [0, 32], sizes = [8, 32], strides = [1, 1]} : vector<8x64xf32> to vector<8x32xf32>
    %341 = vector.extract_strided_slice %338 {offsets = [0, 0], sizes = [8, 32], strides = [1, 1]} : vector<8x96xf32> to vector<8x32xf32>
    %342 = vector.extract_strided_slice %339 {offsets = [0, 0], sizes = [8, 32], strides = [1, 1]} : vector<8x96xf32> to vector<8x32xf32>
    %343 = arith.addf %341, %342 : vector<8x32xf32>
    %344 = arith.negf %343 : vector<8x32xf32>
    %345 = math.exp %344 : vector<8x32xf32>
    %cst_106 = arith.constant 1.000000e+00 : f32
    %346 = vector.broadcast %cst_106 : f32 to vector<8x32xf32>
    %347 = arith.addf %346, %345 : vector<8x32xf32>
    %348 = arith.divf %346, %347 : vector<8x32xf32>
    %349 = vector.extract_strided_slice %338 {offsets = [0, 32], sizes = [8, 32], strides = [1, 1]} : vector<8x96xf32> to vector<8x32xf32>
    %350 = vector.extract_strided_slice %339 {offsets = [0, 32], sizes = [8, 32], strides = [1, 1]} : vector<8x96xf32> to vector<8x32xf32>
    %351 = arith.addf %349, %350 : vector<8x32xf32>
    %352 = arith.negf %351 : vector<8x32xf32>
    %353 = math.exp %352 : vector<8x32xf32>
    %cst_107 = arith.constant 1.000000e+00 : f32
    %354 = vector.broadcast %cst_107 : f32 to vector<8x32xf32>
    %355 = arith.addf %354, %353 : vector<8x32xf32>
    %356 = arith.divf %354, %355 : vector<8x32xf32>
    %357 = vector.extract_strided_slice %338 {offsets = [0, 64], sizes = [8, 32], strides = [1, 1]} : vector<8x96xf32> to vector<8x32xf32>
    %358 = vector.extract_strided_slice %339 {offsets = [0, 64], sizes = [8, 32], strides = [1, 1]} : vector<8x96xf32> to vector<8x32xf32>
    %359 = arith.mulf %348, %358 : vector<8x32xf32>
    %360 = arith.addf %357, %359 : vector<8x32xf32>
    %361 = math.tanh %360 : vector<8x32xf32>
    %cst_108 = arith.constant 1.000000e+00 : f32
    %362 = vector.broadcast %cst_108 : f32 to vector<8x32xf32>
    %363 = arith.subf %362, %356 : vector<8x32xf32>
    %364 = arith.mulf %363, %361 : vector<8x32xf32>
    %365 = arith.mulf %356, %340 : vector<8x32xf32>
    %366 = arith.addf %364, %365 : vector<8x32xf32>
    %c0_109 = arith.constant 0 : index
    %c0_110 = arith.constant 0 : index
    %367 = vector.load %arg16[%c0_109, %c0_110] : memref<64x32xf32, #tpu.memory_space<vmem>>, vector<8x32xf32>
    tpu.vector_store %arg16[%c0_109, %c0_110], %337 {strides = array<i32>} : memref<64x32xf32, #tpu.memory_space<vmem>>, vector<8x32xf32>,
    %c56_111 = arith.constant 56 : index
    %c0_112 = arith.constant 0 : index
    %368 = vector.load %arg17[%c56_111, %c0_112] : memref<64x32xf32, #tpu.memory_space<vmem>>, vector<8x32xf32>
    tpu.vector_store %arg17[%c56_111, %c0_112], %366 {strides = array<i32>} : memref<64x32xf32, #tpu.memory_space<vmem>>, vector<8x32xf32>,
    %369 = tpu.concatenate %337, %366 in 1 : vector<8x32xf32>, vector<8x32xf32> -> vector<8x64xf32>
    %cst_113 = arith.constant dense<0.000000e+00> : vector<8x192xf32>
    %370 = tpu.matmul %369, %302, %cst_113 {dimension_numbers = #tpu.dot_dimension_numbers<[1], [0], [0], [1], [0, 0, 1, 1], [], []>} : vector<8x64xf32>, vector<64x192xf32>, vector<8x192xf32> -> vector<8x192xf32>
    %371 = arith.addf %370, %305 : vector<8x192xf32>
    %c8_114 = arith.constant 8 : index
    %c0_115 = arith.constant 0 : index
    %372 = vector.load %arg15[%c8_114, %c0_115] : memref<64x192xf32, #tpu.memory_space<vmem>>, vector<8x96xf32>
    %373 = vector.extract_strided_slice %371 {offsets = [0, 0], sizes = [8, 96], strides = [1, 1]} : vector<8x192xf32> to vector<8x96xf32>
    %374 = vector.extract_strided_slice %369 {offsets = [0, 0], sizes = [8, 32], strides = [1, 1]} : vector<8x64xf32> to vector<8x32xf32>
    %375 = vector.extract_strided_slice %372 {offsets = [0, 0], sizes = [8, 32], strides = [1, 1]} : vector<8x96xf32> to vector<8x32xf32>
    %376 = vector.extract_strided_slice %373 {offsets = [0, 0], sizes = [8, 32], strides = [1, 1]} : vector<8x96xf32> to vector<8x32xf32>
    %377 = arith.addf %375, %376 : vector<8x32xf32>
    %378 = arith.negf %377 : vector<8x32xf32>
    %379 = math.exp %378 : vector<8x32xf32>
    %cst_116 = arith.constant 1.000000e+00 : f32
    %380 = vector.broadcast %cst_116 : f32 to vector<8x32xf32>
    %381 = arith.addf %380, %379 : vector<8x32xf32>
    %382 = arith.divf %380, %381 : vector<8x32xf32>
    %383 = vector.extract_strided_slice %372 {offsets = [0, 32], sizes = [8, 32], strides = [1, 1]} : vector<8x96xf32> to vector<8x32xf32>
    %384 = vector.extract_strided_slice %373 {offsets = [0, 32], sizes = [8, 32], strides = [1, 1]} : vector<8x96xf32> to vector<8x32xf32>
    %385 = arith.addf %383, %384 : vector<8x32xf32>
    %386 = arith.negf %385 : vector<8x32xf32>
    %387 = math.exp %386 : vector<8x32xf32>
    %cst_117 = arith.constant 1.000000e+00 : f32
    %388 = vector.broadcast %cst_117 : f32 to vector<8x32xf32>
    %389 = arith.addf %388, %387 : vector<8x32xf32>
    %390 = arith.divf %388, %389 : vector<8x32xf32>
    %391 = vector.extract_strided_slice %372 {offsets = [0, 64], sizes = [8, 32], strides = [1, 1]} : vector<8x96xf32> to vector<8x32xf32>
    %392 = vector.extract_strided_slice %373 {offsets = [0, 64], sizes = [8, 32], strides = [1, 1]} : vector<8x96xf32> to vector<8x32xf32>
    %393 = arith.mulf %382, %392 : vector<8x32xf32>
    %394 = arith.addf %391, %393 : vector<8x32xf32>
    %395 = math.tanh %394 : vector<8x32xf32>
    %cst_118 = arith.constant 1.000000e+00 : f32
    %396 = vector.broadcast %cst_118 : f32 to vector<8x32xf32>
    %397 = arith.subf %396, %390 : vector<8x32xf32>
    %398 = arith.mulf %397, %395 : vector<8x32xf32>
    %399 = arith.mulf %390, %374 : vector<8x32xf32>
    %400 = arith.addf %398, %399 : vector<8x32xf32>
    %c48_119 = arith.constant 48 : index
    %c96_120 = arith.constant 96 : index
    %401 = vector.load %arg15[%c48_119, %c96_120] : memref<64x192xf32, #tpu.memory_space<vmem>>, vector<8x96xf32>
    %402 = vector.extract_strided_slice %371 {offsets = [0, 96], sizes = [8, 96], strides = [1, 1]} : vector<8x192xf32> to vector<8x96xf32>
    %403 = vector.extract_strided_slice %369 {offsets = [0, 32], sizes = [8, 32], strides = [1, 1]} : vector<8x64xf32> to vector<8x32xf32>
    %404 = vector.extract_strided_slice %401 {offsets = [0, 0], sizes = [8, 32], strides = [1, 1]} : vector<8x96xf32> to vector<8x32xf32>
    %405 = vector.extract_strided_slice %402 {offsets = [0, 0], sizes = [8, 32], strides = [1, 1]} : vector<8x96xf32> to vector<8x32xf32>
    %406 = arith.addf %404, %405 : vector<8x32xf32>
    %407 = arith.negf %406 : vector<8x32xf32>
    %408 = math.exp %407 : vector<8x32xf32>
    %cst_121 = arith.constant 1.000000e+00 : f32
    %409 = vector.broadcast %cst_121 : f32 to vector<8x32xf32>
    %410 = arith.addf %409, %408 : vector<8x32xf32>
    %411 = arith.divf %409, %410 : vector<8x32xf32>
    %412 = vector.extract_strided_slice %401 {offsets = [0, 32], sizes = [8, 32], strides = [1, 1]} : vector<8x96xf32> to vector<8x32xf32>
    %413 = vector.extract_strided_slice %402 {offsets = [0, 32], sizes = [8, 32], strides = [1, 1]} : vector<8x96xf32> to vector<8x32xf32>
    %414 = arith.addf %412, %413 : vector<8x32xf32>
    %415 = arith.negf %414 : vector<8x32xf32>
    %416 = math.exp %415 : vector<8x32xf32>
    %cst_122 = arith.constant 1.000000e+00 : f32
    %417 = vector.broadcast %cst_122 : f32 to vector<8x32xf32>
    %418 = arith.addf %417, %416 : vector<8x32xf32>
    %419 = arith.divf %417, %418 : vector<8x32xf32>
    %420 = vector.extract_strided_slice %401 {offsets = [0, 64], sizes = [8, 32], strides = [1, 1]} : vector<8x96xf32> to vector<8x32xf32>
    %421 = vector.extract_strided_slice %402 {offsets = [0, 64], sizes = [8, 32], strides = [1, 1]} : vector<8x96xf32> to vector<8x32xf32>
    %422 = arith.mulf %411, %421 : vector<8x32xf32>
    %423 = arith.addf %420, %422 : vector<8x32xf32>
    %424 = math.tanh %423 : vector<8x32xf32>
    %cst_123 = arith.constant 1.000000e+00 : f32
    %425 = vector.broadcast %cst_123 : f32 to vector<8x32xf32>
    %426 = arith.subf %425, %419 : vector<8x32xf32>
    %427 = arith.mulf %426, %424 : vector<8x32xf32>
    %428 = arith.mulf %419, %403 : vector<8x32xf32>
    %429 = arith.addf %427, %428 : vector<8x32xf32>
    %c8_124 = arith.constant 8 : index
    %c0_125 = arith.constant 0 : index
    %430 = vector.load %arg16[%c8_124, %c0_125] : memref<64x32xf32, #tpu.memory_space<vmem>>, vector<8x32xf32>
    tpu.vector_store %arg16[%c8_124, %c0_125], %400 {strides = array<i32>} : memref<64x32xf32, #tpu.memory_space<vmem>>, vector<8x32xf32>,
    %c48_126 = arith.constant 48 : index
    %c0_127 = arith.constant 0 : index
    %431 = vector.load %arg17[%c48_126, %c0_127] : memref<64x32xf32, #tpu.memory_space<vmem>>, vector<8x32xf32>
    tpu.vector_store %arg17[%c48_126, %c0_127], %429 {strides = array<i32>} : memref<64x32xf32, #tpu.memory_space<vmem>>, vector<8x32xf32>,
    %432 = tpu.concatenate %400, %429 in 1 : vector<8x32xf32>, vector<8x32xf32> -> vector<8x64xf32>
    %cst_128 = arith.constant dense<0.000000e+00> : vector<8x192xf32>
    %433 = tpu.matmul %432, %302, %cst_128 {dimension_numbers = #tpu.dot_dimension_numbers<[1], [0], [0], [1], [0, 0, 1, 1], [], []>} : vector<8x64xf32>, vector<64x192xf32>, vector<8x192xf32> -> vector<8x192xf32>
    %434 = arith.addf %433, %305 : vector<8x192xf32>
    %c16_129 = arith.constant 16 : index
    %c0_130 = arith.constant 0 : index
    %435 = vector.load %arg15[%c16_129, %c0_130] : memref<64x192xf32, #tpu.memory_space<vmem>>, vector<8x96xf32>
    %436 = vector.extract_strided_slice %434 {offsets = [0, 0], sizes = [8, 96], strides = [1, 1]} : vector<8x192xf32> to vector<8x96xf32>
    %437 = vector.extract_strided_slice %432 {offsets = [0, 0], sizes = [8, 32], strides = [1, 1]} : vector<8x64xf32> to vector<8x32xf32>
    %438 = vector.extract_strided_slice %435 {offsets = [0, 0], sizes = [8, 32], strides = [1, 1]} : vector<8x96xf32> to vector<8x32xf32>
    %439 = vector.extract_strided_slice %436 {offsets = [0, 0], sizes = [8, 32], strides = [1, 1]} : vector<8x96xf32> to vector<8x32xf32>
    %440 = arith.addf %438, %439 : vector<8x32xf32>
    %441 = arith.negf %440 : vector<8x32xf32>
    %442 = math.exp %441 : vector<8x32xf32>
    %cst_131 = arith.constant 1.000000e+00 : f32
    %443 = vector.broadcast %cst_131 : f32 to vector<8x32xf32>
    %444 = arith.addf %443, %442 : vector<8x32xf32>
    %445 = arith.divf %443, %444 : vector<8x32xf32>
    %446 = vector.extract_strided_slice %435 {offsets = [0, 32], sizes = [8, 32], strides = [1, 1]} : vector<8x96xf32> to vector<8x32xf32>
    %447 = vector.extract_strided_slice %436 {offsets = [0, 32], sizes = [8, 32], strides = [1, 1]} : vector<8x96xf32> to vector<8x32xf32>
    %448 = arith.addf %446, %447 : vector<8x32xf32>
    %449 = arith.negf %448 : vector<8x32xf32>
    %450 = math.exp %449 : vector<8x32xf32>
    %cst_132 = arith.constant 1.000000e+00 : f32
    %451 = vector.broadcast %cst_132 : f32 to vector<8x32xf32>
    %452 = arith.addf %451, %450 : vector<8x32xf32>
    %453 = arith.divf %451, %452 : vector<8x32xf32>
    %454 = vector.extract_strided_slice %435 {offsets = [0, 64], sizes = [8, 32], strides = [1, 1]} : vector<8x96xf32> to vector<8x32xf32>
    %455 = vector.extract_strided_slice %436 {offsets = [0, 64], sizes = [8, 32], strides = [1, 1]} : vector<8x96xf32> to vector<8x32xf32>
    %456 = arith.mulf %445, %455 : vector<8x32xf32>
    %457 = arith.addf %454, %456 : vector<8x32xf32>
    %458 = math.tanh %457 : vector<8x32xf32>
    %cst_133 = arith.constant 1.000000e+00 : f32
    %459 = vector.broadcast %cst_133 : f32 to vector<8x32xf32>
    %460 = arith.subf %459, %453 : vector<8x32xf32>
    %461 = arith.mulf %460, %458 : vector<8x32xf32>
    %462 = arith.mulf %453, %437 : vector<8x32xf32>
    %463 = arith.addf %461, %462 : vector<8x32xf32>
    %c40_134 = arith.constant 40 : index
    %c96_135 = arith.constant 96 : index
    %464 = vector.load %arg15[%c40_134, %c96_135] : memref<64x192xf32, #tpu.memory_space<vmem>>, vector<8x96xf32>
    %465 = vector.extract_strided_slice %434 {offsets = [0, 96], sizes = [8, 96], strides = [1, 1]} : vector<8x192xf32> to vector<8x96xf32>
    %466 = vector.extract_strided_slice %432 {offsets = [0, 32], sizes = [8, 32], strides = [1, 1]} : vector<8x64xf32> to vector<8x32xf32>
    %467 = vector.extract_strided_slice %464 {offsets = [0, 0], sizes = [8, 32], strides = [1, 1]} : vector<8x96xf32> to vector<8x32xf32>
    %468 = vector.extract_strided_slice %465 {offsets = [0, 0], sizes = [8, 32], strides = [1, 1]} : vector<8x96xf32> to vector<8x32xf32>
    %469 = arith.addf %467, %468 : vector<8x32xf32>
    %470 = arith.negf %469 : vector<8x32xf32>
    %471 = math.exp %470 : vector<8x32xf32>
    %cst_136 = arith.constant 1.000000e+00 : f32
    %472 = vector.broadcast %cst_136 : f32 to vector<8x32xf32>
    %473 = arith.addf %472, %471 : vector<8x32xf32>
    %474 = arith.divf %472, %473 : vector<8x32xf32>
    %475 = vector.extract_strided_slice %464 {offsets = [0, 32], sizes = [8, 32], strides = [1, 1]} : vector<8x96xf32> to vector<8x32xf32>
    %476 = vector.extract_strided_slice %465 {offsets = [0, 32], sizes = [8, 32], strides = [1, 1]} : vector<8x96xf32> to vector<8x32xf32>
    %477 = arith.addf %475, %476 : vector<8x32xf32>
    %478 = arith.negf %477 : vector<8x32xf32>
    %479 = math.exp %478 : vector<8x32xf32>
    %cst_137 = arith.constant 1.000000e+00 : f32
    %480 = vector.broadcast %cst_137 : f32 to vector<8x32xf32>
    %481 = arith.addf %480, %479 : vector<8x32xf32>
    %482 = arith.divf %480, %481 : vector<8x32xf32>
    %483 = vector.extract_strided_slice %464 {offsets = [0, 64], sizes = [8, 32], strides = [1, 1]} : vector<8x96xf32> to vector<8x32xf32>
    %484 = vector.extract_strided_slice %465 {offsets = [0, 64], sizes = [8, 32], strides = [1, 1]} : vector<8x96xf32> to vector<8x32xf32>
    %485 = arith.mulf %474, %484 : vector<8x32xf32>
    %486 = arith.addf %483, %485 : vector<8x32xf32>
    %487 = math.tanh %486 : vector<8x32xf32>
    %cst_138 = arith.constant 1.000000e+00 : f32
    %488 = vector.broadcast %cst_138 : f32 to vector<8x32xf32>
    %489 = arith.subf %488, %482 : vector<8x32xf32>
    %490 = arith.mulf %489, %487 : vector<8x32xf32>
    %491 = arith.mulf %482, %466 : vector<8x32xf32>
    %492 = arith.addf %490, %491 : vector<8x32xf32>
    %c16_139 = arith.constant 16 : index
    %c0_140 = arith.constant 0 : index
    %493 = vector.load %arg16[%c16_139, %c0_140] : memref<64x32xf32, #tpu.memory_space<vmem>>, vector<8x32xf32>
    tpu.vector_store %arg16[%c16_139, %c0_140], %463 {strides = array<i32>} : memref<64x32xf32, #tpu.memory_space<vmem>>, vector<8x32xf32>,
    %c40_141 = arith.constant 40 : index
    %c0_142 = arith.constant 0 : index
    %494 = vector.load %arg17[%c40_141, %c0_142] : memref<64x32xf32, #tpu.memory_space<vmem>>, vector<8x32xf32>
    tpu.vector_store %arg17[%c40_141, %c0_142], %492 {strides = array<i32>} : memref<64x32xf32, #tpu.memory_space<vmem>>, vector<8x32xf32>,
    %495 = tpu.concatenate %463, %492 in 1 : vector<8x32xf32>, vector<8x32xf32> -> vector<8x64xf32>
    %cst_143 = arith.constant dense<0.000000e+00> : vector<8x192xf32>
    %496 = tpu.matmul %495, %302, %cst_143 {dimension_numbers = #tpu.dot_dimension_numbers<[1], [0], [0], [1], [0, 0, 1, 1], [], []>} : vector<8x64xf32>, vector<64x192xf32>, vector<8x192xf32> -> vector<8x192xf32>
    %497 = arith.addf %496, %305 : vector<8x192xf32>
    %c24_144 = arith.constant 24 : index
    %c0_145 = arith.constant 0 : index
    %498 = vector.load %arg15[%c24_144, %c0_145] : memref<64x192xf32, #tpu.memory_space<vmem>>, vector<8x96xf32>
    %499 = vector.extract_strided_slice %497 {offsets = [0, 0], sizes = [8, 96], strides = [1, 1]} : vector<8x192xf32> to vector<8x96xf32>
    %500 = vector.extract_strided_slice %495 {offsets = [0, 0], sizes = [8, 32], strides = [1, 1]} : vector<8x64xf32> to vector<8x32xf32>
    %501 = vector.extract_strided_slice %498 {offsets = [0, 0], sizes = [8, 32], strides = [1, 1]} : vector<8x96xf32> to vector<8x32xf32>
    %502 = vector.extract_strided_slice %499 {offsets = [0, 0], sizes = [8, 32], strides = [1, 1]} : vector<8x96xf32> to vector<8x32xf32>
    %503 = arith.addf %501, %502 : vector<8x32xf32>
    %504 = arith.negf %503 : vector<8x32xf32>
    %505 = math.exp %504 : vector<8x32xf32>
    %cst_146 = arith.constant 1.000000e+00 : f32
    %506 = vector.broadcast %cst_146 : f32 to vector<8x32xf32>
    %507 = arith.addf %506, %505 : vector<8x32xf32>
    %508 = arith.divf %506, %507 : vector<8x32xf32>
    %509 = vector.extract_strided_slice %498 {offsets = [0, 32], sizes = [8, 32], strides = [1, 1]} : vector<8x96xf32> to vector<8x32xf32>
    %510 = vector.extract_strided_slice %499 {offsets = [0, 32], sizes = [8, 32], strides = [1, 1]} : vector<8x96xf32> to vector<8x32xf32>
    %511 = arith.addf %509, %510 : vector<8x32xf32>
    %512 = arith.negf %511 : vector<8x32xf32>
    %513 = math.exp %512 : vector<8x32xf32>
    %cst_147 = arith.constant 1.000000e+00 : f32
    %514 = vector.broadcast %cst_147 : f32 to vector<8x32xf32>
    %515 = arith.addf %514, %513 : vector<8x32xf32>
    %516 = arith.divf %514, %515 : vector<8x32xf32>
    %517 = vector.extract_strided_slice %498 {offsets = [0, 64], sizes = [8, 32], strides = [1, 1]} : vector<8x96xf32> to vector<8x32xf32>
    %518 = vector.extract_strided_slice %499 {offsets = [0, 64], sizes = [8, 32], strides = [1, 1]} : vector<8x96xf32> to vector<8x32xf32>
    %519 = arith.mulf %508, %518 : vector<8x32xf32>
    %520 = arith.addf %517, %519 : vector<8x32xf32>
    %521 = math.tanh %520 : vector<8x32xf32>
    %cst_148 = arith.constant 1.000000e+00 : f32
    %522 = vector.broadcast %cst_148 : f32 to vector<8x32xf32>
    %523 = arith.subf %522, %516 : vector<8x32xf32>
    %524 = arith.mulf %523, %521 : vector<8x32xf32>
    %525 = arith.mulf %516, %500 : vector<8x32xf32>
    %526 = arith.addf %524, %525 : vector<8x32xf32>
    %c32_149 = arith.constant 32 : index
    %c96_150 = arith.constant 96 : index
    %527 = vector.load %arg15[%c32_149, %c96_150] : memref<64x192xf32, #tpu.memory_space<vmem>>, vector<8x96xf32>
    %528 = vector.extract_strided_slice %497 {offsets = [0, 96], sizes = [8, 96], strides = [1, 1]} : vector<8x192xf32> to vector<8x96xf32>
    %529 = vector.extract_strided_slice %495 {offsets = [0, 32], sizes = [8, 32], strides = [1, 1]} : vector<8x64xf32> to vector<8x32xf32>
    %530 = vector.extract_strided_slice %527 {offsets = [0, 0], sizes = [8, 32], strides = [1, 1]} : vector<8x96xf32> to vector<8x32xf32>
    %531 = vector.extract_strided_slice %528 {offsets = [0, 0], sizes = [8, 32], strides = [1, 1]} : vector<8x96xf32> to vector<8x32xf32>
    %532 = arith.addf %530, %531 : vector<8x32xf32>
    %533 = arith.negf %532 : vector<8x32xf32>
    %534 = math.exp %533 : vector<8x32xf32>
    %cst_151 = arith.constant 1.000000e+00 : f32
    %535 = vector.broadcast %cst_151 : f32 to vector<8x32xf32>
    %536 = arith.addf %535, %534 : vector<8x32xf32>
    %537 = arith.divf %535, %536 : vector<8x32xf32>
    %538 = vector.extract_strided_slice %527 {offsets = [0, 32], sizes = [8, 32], strides = [1, 1]} : vector<8x96xf32> to vector<8x32xf32>
    %539 = vector.extract_strided_slice %528 {offsets = [0, 32], sizes = [8, 32], strides = [1, 1]} : vector<8x96xf32> to vector<8x32xf32>
    %540 = arith.addf %538, %539 : vector<8x32xf32>
    %541 = arith.negf %540 : vector<8x32xf32>
    %542 = math.exp %541 : vector<8x32xf32>
    %cst_152 = arith.constant 1.000000e+00 : f32
    %543 = vector.broadcast %cst_152 : f32 to vector<8x32xf32>
    %544 = arith.addf %543, %542 : vector<8x32xf32>
    %545 = arith.divf %543, %544 : vector<8x32xf32>
    %546 = vector.extract_strided_slice %527 {offsets = [0, 64], sizes = [8, 32], strides = [1, 1]} : vector<8x96xf32> to vector<8x32xf32>
    %547 = vector.extract_strided_slice %528 {offsets = [0, 64], sizes = [8, 32], strides = [1, 1]} : vector<8x96xf32> to vector<8x32xf32>
    %548 = arith.mulf %537, %547 : vector<8x32xf32>
    %549 = arith.addf %546, %548 : vector<8x32xf32>
    %550 = math.tanh %549 : vector<8x32xf32>
    %cst_153 = arith.constant 1.000000e+00 : f32
    %551 = vector.broadcast %cst_153 : f32 to vector<8x32xf32>
    %552 = arith.subf %551, %545 : vector<8x32xf32>
    %553 = arith.mulf %552, %550 : vector<8x32xf32>
    %554 = arith.mulf %545, %529 : vector<8x32xf32>
    %555 = arith.addf %553, %554 : vector<8x32xf32>
    %c24_154 = arith.constant 24 : index
    %c0_155 = arith.constant 0 : index
    %556 = vector.load %arg16[%c24_154, %c0_155] : memref<64x32xf32, #tpu.memory_space<vmem>>, vector<8x32xf32>
    tpu.vector_store %arg16[%c24_154, %c0_155], %526 {strides = array<i32>} : memref<64x32xf32, #tpu.memory_space<vmem>>, vector<8x32xf32>,
    %c32_156 = arith.constant 32 : index
    %c0_157 = arith.constant 0 : index
    %557 = vector.load %arg17[%c32_156, %c0_157] : memref<64x32xf32, #tpu.memory_space<vmem>>, vector<8x32xf32>
    tpu.vector_store %arg17[%c32_156, %c0_157], %555 {strides = array<i32>} : memref<64x32xf32, #tpu.memory_space<vmem>>, vector<8x32xf32>,
    %558 = tpu.concatenate %526, %555 in 1 : vector<8x32xf32>, vector<8x32xf32> -> vector<8x64xf32>
    %cst_158 = arith.constant dense<0.000000e+00> : vector<8x192xf32>
    %559 = tpu.matmul %558, %302, %cst_158 {dimension_numbers = #tpu.dot_dimension_numbers<[1], [0], [0], [1], [0, 0, 1, 1], [], []>} : vector<8x64xf32>, vector<64x192xf32>, vector<8x192xf32> -> vector<8x192xf32>
    %560 = arith.addf %559, %305 : vector<8x192xf32>
    %c32_159 = arith.constant 32 : index
    %c0_160 = arith.constant 0 : index
    %561 = vector.load %arg15[%c32_159, %c0_160] : memref<64x192xf32, #tpu.memory_space<vmem>>, vector<8x96xf32>
    %562 = vector.extract_strided_slice %560 {offsets = [0, 0], sizes = [8, 96], strides = [1, 1]} : vector<8x192xf32> to vector<8x96xf32>
    %563 = vector.extract_strided_slice %558 {offsets = [0, 0], sizes = [8, 32], strides = [1, 1]} : vector<8x64xf32> to vector<8x32xf32>
    %564 = vector.extract_strided_slice %561 {offsets = [0, 0], sizes = [8, 32], strides = [1, 1]} : vector<8x96xf32> to vector<8x32xf32>
    %565 = vector.extract_strided_slice %562 {offsets = [0, 0], sizes = [8, 32], strides = [1, 1]} : vector<8x96xf32> to vector<8x32xf32>
    %566 = arith.addf %564, %565 : vector<8x32xf32>
    %567 = arith.negf %566 : vector<8x32xf32>
    %568 = math.exp %567 : vector<8x32xf32>
    %cst_161 = arith.constant 1.000000e+00 : f32
    %569 = vector.broadcast %cst_161 : f32 to vector<8x32xf32>
    %570 = arith.addf %569, %568 : vector<8x32xf32>
    %571 = arith.divf %569, %570 : vector<8x32xf32>
    %572 = vector.extract_strided_slice %561 {offsets = [0, 32], sizes = [8, 32], strides = [1, 1]} : vector<8x96xf32> to vector<8x32xf32>
    %573 = vector.extract_strided_slice %562 {offsets = [0, 32], sizes = [8, 32], strides = [1, 1]} : vector<8x96xf32> to vector<8x32xf32>
    %574 = arith.addf %572, %573 : vector<8x32xf32>
    %575 = arith.negf %574 : vector<8x32xf32>
    %576 = math.exp %575 : vector<8x32xf32>
    %cst_162 = arith.constant 1.000000e+00 : f32
    %577 = vector.broadcast %cst_162 : f32 to vector<8x32xf32>
    %578 = arith.addf %577, %576 : vector<8x32xf32>
    %579 = arith.divf %577, %578 : vector<8x32xf32>
    %580 = vector.extract_strided_slice %561 {offsets = [0, 64], sizes = [8, 32], strides = [1, 1]} : vector<8x96xf32> to vector<8x32xf32>
    %581 = vector.extract_strided_slice %562 {offsets = [0, 64], sizes = [8, 32], strides = [1, 1]} : vector<8x96xf32> to vector<8x32xf32>
    %582 = arith.mulf %571, %581 : vector<8x32xf32>
    %583 = arith.addf %580, %582 : vector<8x32xf32>
    %584 = math.tanh %583 : vector<8x32xf32>
    %cst_163 = arith.constant 1.000000e+00 : f32
    %585 = vector.broadcast %cst_163 : f32 to vector<8x32xf32>
    %586 = arith.subf %585, %579 : vector<8x32xf32>
    %587 = arith.mulf %586, %584 : vector<8x32xf32>
    %588 = arith.mulf %579, %563 : vector<8x32xf32>
    %589 = arith.addf %587, %588 : vector<8x32xf32>
    %c24_164 = arith.constant 24 : index
    %c96_165 = arith.constant 96 : index
    %590 = vector.load %arg15[%c24_164, %c96_165] : memref<64x192xf32, #tpu.memory_space<vmem>>, vector<8x96xf32>
    %591 = vector.extract_strided_slice %560 {offsets = [0, 96], sizes = [8, 96], strides = [1, 1]} : vector<8x192xf32> to vector<8x96xf32>
    %592 = vector.extract_strided_slice %558 {offsets = [0, 32], sizes = [8, 32], strides = [1, 1]} : vector<8x64xf32> to vector<8x32xf32>
    %593 = vector.extract_strided_slice %590 {offsets = [0, 0], sizes = [8, 32], strides = [1, 1]} : vector<8x96xf32> to vector<8x32xf32>
    %594 = vector.extract_strided_slice %591 {offsets = [0, 0], sizes = [8, 32], strides = [1, 1]} : vector<8x96xf32> to vector<8x32xf32>
    %595 = arith.addf %593, %594 : vector<8x32xf32>
    %596 = arith.negf %595 : vector<8x32xf32>
    %597 = math.exp %596 : vector<8x32xf32>
    %cst_166 = arith.constant 1.000000e+00 : f32
    %598 = vector.broadcast %cst_166 : f32 to vector<8x32xf32>
    %599 = arith.addf %598, %597 : vector<8x32xf32>
    %600 = arith.divf %598, %599 : vector<8x32xf32>
    %601 = vector.extract_strided_slice %590 {offsets = [0, 32], sizes = [8, 32], strides = [1, 1]} : vector<8x96xf32> to vector<8x32xf32>
    %602 = vector.extract_strided_slice %591 {offsets = [0, 32], sizes = [8, 32], strides = [1, 1]} : vector<8x96xf32> to vector<8x32xf32>
    %603 = arith.addf %601, %602 : vector<8x32xf32>
    %604 = arith.negf %603 : vector<8x32xf32>
    %605 = math.exp %604 : vector<8x32xf32>
    %cst_167 = arith.constant 1.000000e+00 : f32
    %606 = vector.broadcast %cst_167 : f32 to vector<8x32xf32>
    %607 = arith.addf %606, %605 : vector<8x32xf32>
    %608 = arith.divf %606, %607 : vector<8x32xf32>
    %609 = vector.extract_strided_slice %590 {offsets = [0, 64], sizes = [8, 32], strides = [1, 1]} : vector<8x96xf32> to vector<8x32xf32>
    %610 = vector.extract_strided_slice %591 {offsets = [0, 64], sizes = [8, 32], strides = [1, 1]} : vector<8x96xf32> to vector<8x32xf32>
    %611 = arith.mulf %600, %610 : vector<8x32xf32>
    %612 = arith.addf %609, %611 : vector<8x32xf32>
    %613 = math.tanh %612 : vector<8x32xf32>
    %cst_168 = arith.constant 1.000000e+00 : f32
    %614 = vector.broadcast %cst_168 : f32 to vector<8x32xf32>
    %615 = arith.subf %614, %608 : vector<8x32xf32>
    %616 = arith.mulf %615, %613 : vector<8x32xf32>
    %617 = arith.mulf %608, %592 : vector<8x32xf32>
    %618 = arith.addf %616, %617 : vector<8x32xf32>
    %c32_169 = arith.constant 32 : index
    %c0_170 = arith.constant 0 : index
    %619 = vector.load %arg16[%c32_169, %c0_170] : memref<64x32xf32, #tpu.memory_space<vmem>>, vector<8x32xf32>
    tpu.vector_store %arg16[%c32_169, %c0_170], %589 {strides = array<i32>} : memref<64x32xf32, #tpu.memory_space<vmem>>, vector<8x32xf32>,
    %c24_171 = arith.constant 24 : index
    %c0_172 = arith.constant 0 : index
    %620 = vector.load %arg17[%c24_171, %c0_172] : memref<64x32xf32, #tpu.memory_space<vmem>>, vector<8x32xf32>
    tpu.vector_store %arg17[%c24_171, %c0_172], %618 {strides = array<i32>} : memref<64x32xf32, #tpu.memory_space<vmem>>, vector<8x32xf32>,
    %621 = tpu.concatenate %589, %618 in 1 : vector<8x32xf32>, vector<8x32xf32> -> vector<8x64xf32>
    %cst_173 = arith.constant dense<0.000000e+00> : vector<8x192xf32>
    %622 = tpu.matmul %621, %302, %cst_173 {dimension_numbers = #tpu.dot_dimension_numbers<[1], [0], [0], [1], [0, 0, 1, 1], [], []>} : vector<8x64xf32>, vector<64x192xf32>, vector<8x192xf32> -> vector<8x192xf32>
    %623 = arith.addf %622, %305 : vector<8x192xf32>
    %c40_174 = arith.constant 40 : index
    %c0_175 = arith.constant 0 : index
    %624 = vector.load %arg15[%c40_174, %c0_175] : memref<64x192xf32, #tpu.memory_space<vmem>>, vector<8x96xf32>
    %625 = vector.extract_strided_slice %623 {offsets = [0, 0], sizes = [8, 96], strides = [1, 1]} : vector<8x192xf32> to vector<8x96xf32>
    %626 = vector.extract_strided_slice %621 {offsets = [0, 0], sizes = [8, 32], strides = [1, 1]} : vector<8x64xf32> to vector<8x32xf32>
    %627 = vector.extract_strided_slice %624 {offsets = [0, 0], sizes = [8, 32], strides = [1, 1]} : vector<8x96xf32> to vector<8x32xf32>
    %628 = vector.extract_strided_slice %625 {offsets = [0, 0], sizes = [8, 32], strides = [1, 1]} : vector<8x96xf32> to vector<8x32xf32>
    %629 = arith.addf %627, %628 : vector<8x32xf32>
    %630 = arith.negf %629 : vector<8x32xf32>
    %631 = math.exp %630 : vector<8x32xf32>
    %cst_176 = arith.constant 1.000000e+00 : f32
    %632 = vector.broadcast %cst_176 : f32 to vector<8x32xf32>
    %633 = arith.addf %632, %631 : vector<8x32xf32>
    %634 = arith.divf %632, %633 : vector<8x32xf32>
    %635 = vector.extract_strided_slice %624 {offsets = [0, 32], sizes = [8, 32], strides = [1, 1]} : vector<8x96xf32> to vector<8x32xf32>
    %636 = vector.extract_strided_slice %625 {offsets = [0, 32], sizes = [8, 32], strides = [1, 1]} : vector<8x96xf32> to vector<8x32xf32>
    %637 = arith.addf %635, %636 : vector<8x32xf32>
    %638 = arith.negf %637 : vector<8x32xf32>
    %639 = math.exp %638 : vector<8x32xf32>
    %cst_177 = arith.constant 1.000000e+00 : f32
    %640 = vector.broadcast %cst_177 : f32 to vector<8x32xf32>
    %641 = arith.addf %640, %639 : vector<8x32xf32>
    %642 = arith.divf %640, %641 : vector<8x32xf32>
    %643 = vector.extract_strided_slice %624 {offsets = [0, 64], sizes = [8, 32], strides = [1, 1]} : vector<8x96xf32> to vector<8x32xf32>
    %644 = vector.extract_strided_slice %625 {offsets = [0, 64], sizes = [8, 32], strides = [1, 1]} : vector<8x96xf32> to vector<8x32xf32>
    %645 = arith.mulf %634, %644 : vector<8x32xf32>
    %646 = arith.addf %643, %645 : vector<8x32xf32>
    %647 = math.tanh %646 : vector<8x32xf32>
    %cst_178 = arith.constant 1.000000e+00 : f32
    %648 = vector.broadcast %cst_178 : f32 to vector<8x32xf32>
    %649 = arith.subf %648, %642 : vector<8x32xf32>
    %650 = arith.mulf %649, %647 : vector<8x32xf32>
    %651 = arith.mulf %642, %626 : vector<8x32xf32>
    %652 = arith.addf %650, %651 : vector<8x32xf32>
    %c16_179 = arith.constant 16 : index
    %c96_180 = arith.constant 96 : index
    %653 = vector.load %arg15[%c16_179, %c96_180] : memref<64x192xf32, #tpu.memory_space<vmem>>, vector<8x96xf32>
    %654 = vector.extract_strided_slice %623 {offsets = [0, 96], sizes = [8, 96], strides = [1, 1]} : vector<8x192xf32> to vector<8x96xf32>
    %655 = vector.extract_strided_slice %621 {offsets = [0, 32], sizes = [8, 32], strides = [1, 1]} : vector<8x64xf32> to vector<8x32xf32>
    %656 = vector.extract_strided_slice %653 {offsets = [0, 0], sizes = [8, 32], strides = [1, 1]} : vector<8x96xf32> to vector<8x32xf32>
    %657 = vector.extract_strided_slice %654 {offsets = [0, 0], sizes = [8, 32], strides = [1, 1]} : vector<8x96xf32> to vector<8x32xf32>
    %658 = arith.addf %656, %657 : vector<8x32xf32>
    %659 = arith.negf %658 : vector<8x32xf32>
    %660 = math.exp %659 : vector<8x32xf32>
    %cst_181 = arith.constant 1.000000e+00 : f32
    %661 = vector.broadcast %cst_181 : f32 to vector<8x32xf32>
    %662 = arith.addf %661, %660 : vector<8x32xf32>
    %663 = arith.divf %661, %662 : vector<8x32xf32>
    %664 = vector.extract_strided_slice %653 {offsets = [0, 32], sizes = [8, 32], strides = [1, 1]} : vector<8x96xf32> to vector<8x32xf32>
    %665 = vector.extract_strided_slice %654 {offsets = [0, 32], sizes = [8, 32], strides = [1, 1]} : vector<8x96xf32> to vector<8x32xf32>
    %666 = arith.addf %664, %665 : vector<8x32xf32>
    %667 = arith.negf %666 : vector<8x32xf32>
    %668 = math.exp %667 : vector<8x32xf32>
    %cst_182 = arith.constant 1.000000e+00 : f32
    %669 = vector.broadcast %cst_182 : f32 to vector<8x32xf32>
    %670 = arith.addf %669, %668 : vector<8x32xf32>
    %671 = arith.divf %669, %670 : vector<8x32xf32>
    %672 = vector.extract_strided_slice %653 {offsets = [0, 64], sizes = [8, 32], strides = [1, 1]} : vector<8x96xf32> to vector<8x32xf32>
    %673 = vector.extract_strided_slice %654 {offsets = [0, 64], sizes = [8, 32], strides = [1, 1]} : vector<8x96xf32> to vector<8x32xf32>
    %674 = arith.mulf %663, %673 : vector<8x32xf32>
    %675 = arith.addf %672, %674 : vector<8x32xf32>
    %676 = math.tanh %675 : vector<8x32xf32>
    %cst_183 = arith.constant 1.000000e+00 : f32
    %677 = vector.broadcast %cst_183 : f32 to vector<8x32xf32>
    %678 = arith.subf %677, %671 : vector<8x32xf32>
    %679 = arith.mulf %678, %676 : vector<8x32xf32>
    %680 = arith.mulf %671, %655 : vector<8x32xf32>
    %681 = arith.addf %679, %680 : vector<8x32xf32>
    %c40_184 = arith.constant 40 : index
    %c0_185 = arith.constant 0 : index
    %682 = vector.load %arg16[%c40_184, %c0_185] : memref<64x32xf32, #tpu.memory_space<vmem>>, vector<8x32xf32>
    tpu.vector_store %arg16[%c40_184, %c0_185], %652 {strides = array<i32>} : memref<64x32xf32, #tpu.memory_space<vmem>>, vector<8x32xf32>,
    %c16_186 = arith.constant 16 : index
    %c0_187 = arith.constant 0 : index
    %683 = vector.load %arg17[%c16_186, %c0_187] : memref<64x32xf32, #tpu.memory_space<vmem>>, vector<8x32xf32>
    tpu.vector_store %arg17[%c16_186, %c0_187], %681 {strides = array<i32>} : memref<64x32xf32, #tpu.memory_space<vmem>>, vector<8x32xf32>,
    %684 = tpu.concatenate %652, %681 in 1 : vector<8x32xf32>, vector<8x32xf32> -> vector<8x64xf32>
    %cst_188 = arith.constant dense<0.000000e+00> : vector<8x192xf32>
    %685 = tpu.matmul %684, %302, %cst_188 {dimension_numbers = #tpu.dot_dimension_numbers<[1], [0], [0], [1], [0, 0, 1, 1], [], []>} : vector<8x64xf32>, vector<64x192xf32>, vector<8x192xf32> -> vector<8x192xf32>
    %686 = arith.addf %685, %305 : vector<8x192xf32>
    %c48_189 = arith.constant 48 : index
    %c0_190 = arith.constant 0 : index
    %687 = vector.load %arg15[%c48_189, %c0_190] : memref<64x192xf32, #tpu.memory_space<vmem>>, vector<8x96xf32>
    %688 = vector.extract_strided_slice %686 {offsets = [0, 0], sizes = [8, 96], strides = [1, 1]} : vector<8x192xf32> to vector<8x96xf32>
    %689 = vector.extract_strided_slice %684 {offsets = [0, 0], sizes = [8, 32], strides = [1, 1]} : vector<8x64xf32> to vector<8x32xf32>
    %690 = vector.extract_strided_slice %687 {offsets = [0, 0], sizes = [8, 32], strides = [1, 1]} : vector<8x96xf32> to vector<8x32xf32>
    %691 = vector.extract_strided_slice %688 {offsets = [0, 0], sizes = [8, 32], strides = [1, 1]} : vector<8x96xf32> to vector<8x32xf32>
    %692 = arith.addf %690, %691 : vector<8x32xf32>
    %693 = arith.negf %692 : vector<8x32xf32>
    %694 = math.exp %693 : vector<8x32xf32>
    %cst_191 = arith.constant 1.000000e+00 : f32
    %695 = vector.broadcast %cst_191 : f32 to vector<8x32xf32>
    %696 = arith.addf %695, %694 : vector<8x32xf32>
    %697 = arith.divf %695, %696 : vector<8x32xf32>
    %698 = vector.extract_strided_slice %687 {offsets = [0, 32], sizes = [8, 32], strides = [1, 1]} : vector<8x96xf32> to vector<8x32xf32>
    %699 = vector.extract_strided_slice %688 {offsets = [0, 32], sizes = [8, 32], strides = [1, 1]} : vector<8x96xf32> to vector<8x32xf32>
    %700 = arith.addf %698, %699 : vector<8x32xf32>
    %701 = arith.negf %700 : vector<8x32xf32>
    %702 = math.exp %701 : vector<8x32xf32>
    %cst_192 = arith.constant 1.000000e+00 : f32
    %703 = vector.broadcast %cst_192 : f32 to vector<8x32xf32>
    %704 = arith.addf %703, %702 : vector<8x32xf32>
    %705 = arith.divf %703, %704 : vector<8x32xf32>
    %706 = vector.extract_strided_slice %687 {offsets = [0, 64], sizes = [8, 32], strides = [1, 1]} : vector<8x96xf32> to vector<8x32xf32>
    %707 = vector.extract_strided_slice %688 {offsets = [0, 64], sizes = [8, 32], strides = [1, 1]} : vector<8x96xf32> to vector<8x32xf32>
    %708 = arith.mulf %697, %707 : vector<8x32xf32>
    %709 = arith.addf %706, %708 : vector<8x32xf32>
    %710 = math.tanh %709 : vector<8x32xf32>
    %cst_193 = arith.constant 1.000000e+00 : f32
    %711 = vector.broadcast %cst_193 : f32 to vector<8x32xf32>
    %712 = arith.subf %711, %705 : vector<8x32xf32>
    %713 = arith.mulf %712, %710 : vector<8x32xf32>
    %714 = arith.mulf %705, %689 : vector<8x32xf32>
    %715 = arith.addf %713, %714 : vector<8x32xf32>
    %c8_194 = arith.constant 8 : index
    %c96_195 = arith.constant 96 : index
    %716 = vector.load %arg15[%c8_194, %c96_195] : memref<64x192xf32, #tpu.memory_space<vmem>>, vector<8x96xf32>
    %717 = vector.extract_strided_slice %686 {offsets = [0, 96], sizes = [8, 96], strides = [1, 1]} : vector<8x192xf32> to vector<8x96xf32>
    %718 = vector.extract_strided_slice %684 {offsets = [0, 32], sizes = [8, 32], strides = [1, 1]} : vector<8x64xf32> to vector<8x32xf32>
    %719 = vector.extract_strided_slice %716 {offsets = [0, 0], sizes = [8, 32], strides = [1, 1]} : vector<8x96xf32> to vector<8x32xf32>
    %720 = vector.extract_strided_slice %717 {offsets = [0, 0], sizes = [8, 32], strides = [1, 1]} : vector<8x96xf32> to vector<8x32xf32>
    %721 = arith.addf %719, %720 : vector<8x32xf32>
    %722 = arith.negf %721 : vector<8x32xf32>
    %723 = math.exp %722 : vector<8x32xf32>
    %cst_196 = arith.constant 1.000000e+00 : f32
    %724 = vector.broadcast %cst_196 : f32 to vector<8x32xf32>
    %725 = arith.addf %724, %723 : vector<8x32xf32>
    %726 = arith.divf %724, %725 : vector<8x32xf32>
    %727 = vector.extract_strided_slice %716 {offsets = [0, 32], sizes = [8, 32], strides = [1, 1]} : vector<8x96xf32> to vector<8x32xf32>
    %728 = vector.extract_strided_slice %717 {offsets = [0, 32], sizes = [8, 32], strides = [1, 1]} : vector<8x96xf32> to vector<8x32xf32>
    %729 = arith.addf %727, %728 : vector<8x32xf32>
    %730 = arith.negf %729 : vector<8x32xf32>
    %731 = math.exp %730 : vector<8x32xf32>
    %cst_197 = arith.constant 1.000000e+00 : f32
    %732 = vector.broadcast %cst_197 : f32 to vector<8x32xf32>
    %733 = arith.addf %732, %731 : vector<8x32xf32>
    %734 = arith.divf %732, %733 : vector<8x32xf32>
    %735 = vector.extract_strided_slice %716 {offsets = [0, 64], sizes = [8, 32], strides = [1, 1]} : vector<8x96xf32> to vector<8x32xf32>
    %736 = vector.extract_strided_slice %717 {offsets = [0, 64], sizes = [8, 32], strides = [1, 1]} : vector<8x96xf32> to vector<8x32xf32>
    %737 = arith.mulf %726, %736 : vector<8x32xf32>
    %738 = arith.addf %735, %737 : vector<8x32xf32>
    %739 = math.tanh %738 : vector<8x32xf32>
    %cst_198 = arith.constant 1.000000e+00 : f32
    %740 = vector.broadcast %cst_198 : f32 to vector<8x32xf32>
    %741 = arith.subf %740, %734 : vector<8x32xf32>
    %742 = arith.mulf %741, %739 : vector<8x32xf32>
    %743 = arith.mulf %734, %718 : vector<8x32xf32>
    %744 = arith.addf %742, %743 : vector<8x32xf32>
    %c48_199 = arith.constant 48 : index
    %c0_200 = arith.constant 0 : index
    %745 = vector.load %arg16[%c48_199, %c0_200] : memref<64x32xf32, #tpu.memory_space<vmem>>, vector<8x32xf32>
    tpu.vector_store %arg16[%c48_199, %c0_200], %715 {strides = array<i32>} : memref<64x32xf32, #tpu.memory_space<vmem>>, vector<8x32xf32>,
    %c8_201 = arith.constant 8 : index
    %c0_202 = arith.constant 0 : index
    %746 = vector.load %arg17[%c8_201, %c0_202] : memref<64x32xf32, #tpu.memory_space<vmem>>, vector<8x32xf32>
    tpu.vector_store %arg17[%c8_201, %c0_202], %744 {strides = array<i32>} : memref<64x32xf32, #tpu.memory_space<vmem>>, vector<8x32xf32>,
    %747 = tpu.concatenate %715, %744 in 1 : vector<8x32xf32>, vector<8x32xf32> -> vector<8x64xf32>
    %cst_203 = arith.constant dense<0.000000e+00> : vector<8x192xf32>
    %748 = tpu.matmul %747, %302, %cst_203 {dimension_numbers = #tpu.dot_dimension_numbers<[1], [0], [0], [1], [0, 0, 1, 1], [], []>} : vector<8x64xf32>, vector<64x192xf32>, vector<8x192xf32> -> vector<8x192xf32>
    %749 = arith.addf %748, %305 : vector<8x192xf32>
    %c56_204 = arith.constant 56 : index
    %c0_205 = arith.constant 0 : index
    %750 = vector.load %arg15[%c56_204, %c0_205] : memref<64x192xf32, #tpu.memory_space<vmem>>, vector<8x96xf32>
    %751 = vector.extract_strided_slice %749 {offsets = [0, 0], sizes = [8, 96], strides = [1, 1]} : vector<8x192xf32> to vector<8x96xf32>
    %752 = vector.extract_strided_slice %747 {offsets = [0, 0], sizes = [8, 32], strides = [1, 1]} : vector<8x64xf32> to vector<8x32xf32>
    %753 = vector.extract_strided_slice %750 {offsets = [0, 0], sizes = [8, 32], strides = [1, 1]} : vector<8x96xf32> to vector<8x32xf32>
    %754 = vector.extract_strided_slice %751 {offsets = [0, 0], sizes = [8, 32], strides = [1, 1]} : vector<8x96xf32> to vector<8x32xf32>
    %755 = arith.addf %753, %754 : vector<8x32xf32>
    %756 = arith.negf %755 : vector<8x32xf32>
    %757 = math.exp %756 : vector<8x32xf32>
    %cst_206 = arith.constant 1.000000e+00 : f32
    %758 = vector.broadcast %cst_206 : f32 to vector<8x32xf32>
    %759 = arith.addf %758, %757 : vector<8x32xf32>
    %760 = arith.divf %758, %759 : vector<8x32xf32>
    %761 = vector.extract_strided_slice %750 {offsets = [0, 32], sizes = [8, 32], strides = [1, 1]} : vector<8x96xf32> to vector<8x32xf32>
    %762 = vector.extract_strided_slice %751 {offsets = [0, 32], sizes = [8, 32], strides = [1, 1]} : vector<8x96xf32> to vector<8x32xf32>
    %763 = arith.addf %761, %762 : vector<8x32xf32>
    %764 = arith.negf %763 : vector<8x32xf32>
    %765 = math.exp %764 : vector<8x32xf32>
    %cst_207 = arith.constant 1.000000e+00 : f32
    %766 = vector.broadcast %cst_207 : f32 to vector<8x32xf32>
    %767 = arith.addf %766, %765 : vector<8x32xf32>
    %768 = arith.divf %766, %767 : vector<8x32xf32>
    %769 = vector.extract_strided_slice %750 {offsets = [0, 64], sizes = [8, 32], strides = [1, 1]} : vector<8x96xf32> to vector<8x32xf32>
    %770 = vector.extract_strided_slice %751 {offsets = [0, 64], sizes = [8, 32], strides = [1, 1]} : vector<8x96xf32> to vector<8x32xf32>
    %771 = arith.mulf %760, %770 : vector<8x32xf32>
    %772 = arith.addf %769, %771 : vector<8x32xf32>
    %773 = math.tanh %772 : vector<8x32xf32>
    %cst_208 = arith.constant 1.000000e+00 : f32
    %774 = vector.broadcast %cst_208 : f32 to vector<8x32xf32>
    %775 = arith.subf %774, %768 : vector<8x32xf32>
    %776 = arith.mulf %775, %773 : vector<8x32xf32>
    %777 = arith.mulf %768, %752 : vector<8x32xf32>
    %778 = arith.addf %776, %777 : vector<8x32xf32>
    %c0_209 = arith.constant 0 : index
    %c96_210 = arith.constant 96 : index
    %779 = vector.load %arg15[%c0_209, %c96_210] : memref<64x192xf32, #tpu.memory_space<vmem>>, vector<8x96xf32>
    %780 = vector.extract_strided_slice %749 {offsets = [0, 96], sizes = [8, 96], strides = [1, 1]} : vector<8x192xf32> to vector<8x96xf32>
    %781 = vector.extract_strided_slice %747 {offsets = [0, 32], sizes = [8, 32], strides = [1, 1]} : vector<8x64xf32> to vector<8x32xf32>
    %782 = vector.extract_strided_slice %779 {offsets = [0, 0], sizes = [8, 32], strides = [1, 1]} : vector<8x96xf32> to vector<8x32xf32>
    %783 = vector.extract_strided_slice %780 {offsets = [0, 0], sizes = [8, 32], strides = [1, 1]} : vector<8x96xf32> to vector<8x32xf32>
    %784 = arith.addf %782, %783 : vector<8x32xf32>
    %785 = arith.negf %784 : vector<8x32xf32>
    %786 = math.exp %785 : vector<8x32xf32>
    %cst_211 = arith.constant 1.000000e+00 : f32
    %787 = vector.broadcast %cst_211 : f32 to vector<8x32xf32>
    %788 = arith.addf %787, %786 : vector<8x32xf32>
    %789 = arith.divf %787, %788 : vector<8x32xf32>
    %790 = vector.extract_strided_slice %779 {offsets = [0, 32], sizes = [8, 32], strides = [1, 1]} : vector<8x96xf32> to vector<8x32xf32>
    %791 = vector.extract_strided_slice %780 {offsets = [0, 32], sizes = [8, 32], strides = [1, 1]} : vector<8x96xf32> to vector<8x32xf32>
    %792 = arith.addf %790, %791 : vector<8x32xf32>
    %793 = arith.negf %792 : vector<8x32xf32>
    %794 = math.exp %793 : vector<8x32xf32>
    %cst_212 = arith.constant 1.000000e+00 : f32
    %795 = vector.broadcast %cst_212 : f32 to vector<8x32xf32>
    %796 = arith.addf %795, %794 : vector<8x32xf32>
    %797 = arith.divf %795, %796 : vector<8x32xf32>
    %798 = vector.extract_strided_slice %779 {offsets = [0, 64], sizes = [8, 32], strides = [1, 1]} : vector<8x96xf32> to vector<8x32xf32>
    %799 = vector.extract_strided_slice %780 {offsets = [0, 64], sizes = [8, 32], strides = [1, 1]} : vector<8x96xf32> to vector<8x32xf32>
    %800 = arith.mulf %789, %799 : vector<8x32xf32>
    %801 = arith.addf %798, %800 : vector<8x32xf32>
    %802 = math.tanh %801 : vector<8x32xf32>
    %cst_213 = arith.constant 1.000000e+00 : f32
    %803 = vector.broadcast %cst_213 : f32 to vector<8x32xf32>
    %804 = arith.subf %803, %797 : vector<8x32xf32>
    %805 = arith.mulf %804, %802 : vector<8x32xf32>
    %806 = arith.mulf %797, %781 : vector<8x32xf32>
    %807 = arith.addf %805, %806 : vector<8x32xf32>
    %c56_214 = arith.constant 56 : index
    %c0_215 = arith.constant 0 : index
    %808 = vector.load %arg16[%c56_214, %c0_215] : memref<64x32xf32, #tpu.memory_space<vmem>>, vector<8x32xf32>
    tpu.vector_store %arg16[%c56_214, %c0_215], %778 {strides = array<i32>} : memref<64x32xf32, #tpu.memory_space<vmem>>, vector<8x32xf32>,
    %c0_216 = arith.constant 0 : index
    %c0_217 = arith.constant 0 : index
    %809 = vector.load %arg17[%c0_216, %c0_217] : memref<64x32xf32, #tpu.memory_space<vmem>>, vector<8x32xf32>
    tpu.vector_store %arg17[%c0_216, %c0_217], %807 {strides = array<i32>} : memref<64x32xf32, #tpu.memory_space<vmem>>, vector<8x32xf32>,
    %810 = tpu.concatenate %778, %807 in 1 : vector<8x32xf32>, vector<8x32xf32> -> vector<8x64xf32>
    %811 = vector.extract_strided_slice %810 {offsets = [0, 0], sizes = [8, 32], strides = [1, 1]} : vector<8x64xf32> to vector<8x32xf32>
    %c0_218 = arith.constant 0 : index
    %c0_219 = arith.constant 0 : index
    %c0_220 = arith.constant 0 : index
    %812 = vector.load %arg11[%c0_218, %c0_219, %c0_220] : memref<2x8x32xf32, #tpu.memory_space<vmem>>, vector<1x8x32xf32>
    %813 = vector.shape_cast %812 : vector<1x8x32xf32> to vector<8x32xf32>
    %814 = vector.shape_cast %811 : vector<8x32xf32> to vector<1x8x32xf32>
    tpu.vector_store %arg11[%c0_218, %c0_219, %c0_220], %814 {strides = array<i32>} : memref<2x8x32xf32, #tpu.memory_space<vmem>>, vector<1x8x32xf32>,
    %815 = vector.extract_strided_slice %810 {offsets = [0, 32], sizes = [8, 32], strides = [1, 1]} : vector<8x64xf32> to vector<8x32xf32>
    %c1_221 = arith.constant 1 : index
    %c0_222 = arith.constant 0 : index
    %c0_223 = arith.constant 0 : index
    %816 = vector.load %arg11[%c1_221, %c0_222, %c0_223] : memref<2x8x32xf32, #tpu.memory_space<vmem>>, vector<1x8x32xf32>
    %817 = vector.shape_cast %816 : vector<1x8x32xf32> to vector<8x32xf32>
    %818 = vector.shape_cast %815 : vector<8x32xf32> to vector<1x8x32xf32>
    tpu.vector_store %arg11[%c1_221, %c0_222, %c0_223], %818 {strides = array<i32>} : memref<2x8x32xf32, #tpu.memory_space<vmem>>, vector<1x8x32xf32>,
    %c0_224 = arith.constant 0 : index
    %c0_225 = arith.constant 0 : index
    %819 = vector.load %arg16[%c0_224, %c0_225] : memref<64x32xf32, #tpu.memory_space<vmem>>, vector<64x32xf32>
    %c0_226 = arith.constant 0 : index
    %c0_227 = arith.constant 0 : index
    %820 = vector.load %arg17[%c0_226, %c0_227] : memref<64x32xf32, #tpu.memory_space<vmem>>, vector<64x32xf32>
    %821 = tpu.concatenate %819, %820 in 1 : vector<64x32xf32>, vector<64x32xf32> -> vector<64x64xf32>
    %cst_228 = arith.constant dense<0.000000e+00> : vector<64xf32>
    %822 = vector.multi_reduction <add>, %821, %cst_228 [1] : vector<64x64xf32> to vector<64xf32>
    %823 = vector.shape_cast %822 : vector<64xf32> to vector<64x1xf32>
    %cst_229 = arith.constant 6.400000e+01 : f32
    %824 = vector.broadcast %cst_229 : f32 to vector<64x1xf32>
    %825 = arith.divf %823, %824 : vector<64x1xf32>
    %826 = vector.broadcast %825 : vector<64x1xf32> to vector<64x64xf32>
    %827 = arith.subf %821, %826 : vector<64x64xf32>
    %828 = arith.mulf %827, %827 : vector<64x64xf32>
    %cst_230 = arith.constant dense<0.000000e+00> : vector<64xf32>
    %829 = vector.multi_reduction <add>, %828, %cst_230 [1] : vector<64x64xf32> to vector<64xf32>
    %830 = vector.shape_cast %829 : vector<64xf32> to vector<64x1xf32>
    %cst_231 = arith.constant 6.400000e+01 : f32
    %831 = vector.broadcast %cst_231 : f32 to vector<64x1xf32>
    %832 = arith.divf %830, %831 : vector<64x1xf32>
    %833 = vector.broadcast %825 : vector<64x1xf32> to vector<64x64xf32>
    %834 = arith.subf %821, %833 : vector<64x64xf32>
    %cst_232 = arith.constant 9.99999974E-6 : f32
    %835 = vector.broadcast %cst_232 : f32 to vector<64x1xf32>
    %836 = arith.addf %832, %835 : vector<64x1xf32>
    %837 = math.rsqrt %836 : vector<64x1xf32>
    %838 = vector.broadcast %837 : vector<64x1xf32> to vector<64x64xf32>
    %839 = arith.mulf %834, %838 : vector<64x64xf32>
    %c8_233 = arith.constant 8 : index
    %c0_234 = arith.constant 0 : index
    %840 = vector.load %arg9[%c8_233, %c0_234] : memref<11x192xf32, #tpu.memory_space<vmem>>, vector<1x64xf32>
    %841 = vector.broadcast %840 : vector<1x64xf32> to vector<64x64xf32>
    %842 = arith.mulf %839, %841 : vector<64x64xf32>
    %c9 = arith.constant 9 : index
    %c0_235 = arith.constant 0 : index
    %843 = vector.load %arg9[%c9, %c0_235] : memref<11x192xf32, #tpu.memory_space<vmem>>, vector<1x64xf32>
    %844 = vector.broadcast %843 : vector<1x64xf32> to vector<64x64xf32>
    %845 = arith.addf %842, %844 : vector<64x64xf32>
    %c0_236 = arith.constant 0 : index
    %c0_237 = arith.constant 0 : index
    %846 = vector.load %arg8[%c0_236, %c0_237] : memref<64x8xf32, #tpu.memory_space<vmem>>, vector<64x8xf32>
    %cst_238 = arith.constant dense<0.000000e+00> : vector<64x8xf32>
    %847 = tpu.matmul %845, %846, %cst_238 {dimension_numbers = #tpu.dot_dimension_numbers<[1], [0], [0], [1], [0, 0, 1, 1], [], []>} : vector<64x64xf32>, vector<64x8xf32>, vector<64x8xf32> -> vector<64x8xf32>
    %c10 = arith.constant 10 : index
    %c0_239 = arith.constant 0 : index
    %848 = vector.load %arg9[%c10, %c0_239] : memref<11x192xf32, #tpu.memory_space<vmem>>, vector<1x8xf32>
    %849 = vector.broadcast %848 : vector<1x8xf32> to vector<64x8xf32>
    %850 = arith.addf %847, %849 : vector<64x8xf32>
    %c0_240 = arith.constant 0 : index
    %c0_241 = arith.constant 0 : index
    %851 = vector.load %arg10[%c0_240, %c0_241] : memref<64x8xf32, #tpu.memory_space<vmem>>, vector<64x8xf32>
    tpu.vector_store %arg10[%c0_240, %c0_241], %850 {strides = array<i32>} : memref<64x8xf32, #tpu.memory_space<vmem>>, vector<64x8xf32>,
    return
  }
  func.func @transform_0(%arg0: i32) -> (i32, i32) {
    %c0_i32 = arith.constant 0 : i32
    %c0_i32_0 = arith.constant 0 : i32
    %c0_i32_1 = arith.constant 0 : i32
    return %c0_i32, %c0_i32_0 : i32, i32
  }
  func.func @transform_1(%arg0: i32) -> (i32, i32) {
    %c0_i32 = arith.constant 0 : i32
    %c0_i32_0 = arith.constant 0 : i32
    %c0_i32_1 = arith.constant 0 : i32
    return %c0_i32, %c0_i32_0 : i32, i32
  }
  func.func @transform_2(%arg0: i32) -> (i32, i32) {
    %c0_i32 = arith.constant 0 : i32
    %c0_i32_0 = arith.constant 0 : i32
    %c0_i32_1 = arith.constant 0 : i32
    return %c0_i32, %c0_i32_0 : i32, i32
  }
  func.func @transform_3(%arg0: i32) -> (i32, i32) {
    %c0_i32 = arith.constant 0 : i32
    %c0_i32_0 = arith.constant 0 : i32
    %c0_i32_1 = arith.constant 0 : i32
    return %c0_i32, %c0_i32_0 : i32, i32
  }
  func.func @transform_4(%arg0: i32) -> (i32, i32) {
    %c0_i32 = arith.constant 0 : i32
    %c0_i32_0 = arith.constant 0 : i32
    %c0_i32_1 = arith.constant 0 : i32
    return %c0_i32, %c0_i32_0 : i32, i32
  }
  func.func @transform_5(%arg0: i32) -> (i32, i32) {
    %c0_i32 = arith.constant 0 : i32
    %c0_i32_0 = arith.constant 0 : i32
    %c0_i32_1 = arith.constant 0 : i32
    return %c0_i32, %c0_i32_0 : i32, i32
  }
  func.func @transform_6(%arg0: i32) -> (i32, i32) {
    %c0_i32 = arith.constant 0 : i32
    %c0_i32_0 = arith.constant 0 : i32
    %c0_i32_1 = arith.constant 0 : i32
    return %c0_i32, %c0_i32_0 : i32, i32
  }
  func.func @transform_7(%arg0: i32) -> (i32, i32) {
    %c0_i32 = arith.constant 0 : i32
    %c0_i32_0 = arith.constant 0 : i32
    %c0_i32_1 = arith.constant 0 : i32
    return %c0_i32, %c0_i32_0 : i32, i32
  }
  func.func @transform_8(%arg0: i32) -> (i32, i32) {
    %c0_i32 = arith.constant 0 : i32
    %c0_i32_0 = arith.constant 0 : i32
    %c0_i32_1 = arith.constant 0 : i32
    return %c0_i32, %c0_i32_0 : i32, i32
  }
  func.func @transform_9(%arg0: i32) -> (i32, i32) {
    %c0_i32 = arith.constant 0 : i32
    %c0_i32_0 = arith.constant 0 : i32
    %c0_i32_1 = arith.constant 0 : i32
    return %c0_i32, %c0_i32_0 : i32, i32
  }
  func.func @transform_10(%arg0: i32) -> (i32, i32, i32) {
    %c0_i32 = arith.constant 0 : i32
    %c0_i32_0 = arith.constant 0 : i32
    %c0_i32_1 = arith.constant 0 : i32
    %c0_i32_2 = arith.constant 0 : i32
    return %c0_i32, %c0_i32_0, %c0_i32_1 : i32, i32, i32
  }
}

</mosaic_0001>

<bundles_post_ra>
// kernel: sequence_taggle1_forward.1
= control target key start
LH: loop header
LB: loop body
LE: loop exit
PB: predicated region body
PF: predicated region fallthrough
CT: control target
= control target key end

     0   :  { %16 = vsyncpa [#allocation9], 0  ;;  %v4276_v2 = vmov 0   ;;  %s5245_s0 = inlined_call_operand.vmem [shape: s32[64,1], index: 0, kind: input, shape index: {}]   ;;  %s5246_s1 = inlined_call_operand.vmem [shape: f32[128,32], index: 1, kind: input, shape index: {}]   ;;  %s5247_s2 = inlined_call_operand.vmem [shape: f32[32,96], index: 2, kind: input, shape index: {}]   ;;  %s5248_s3 = inlined_call_operand.vmem [shape: f32[32,96], index: 3, kind: input, shape index: {}]   ;;  %s5249_s4 = inlined_call_operand.vmem [shape: f32[64,32], index: 4, kind: input, shape index: {}]   ;;  %s5250_s5 = inlined_call_operand.vmem [shape: f32[32,192], index: 5, kind: input, shape index: {}]   ;;  %s5251_s6 = inlined_call_operand.vmem [shape: f32[64,192], index: 6, kind: input, shape index: {}]   ;;  %s5252_s7 = inlined_call_operand.vmem [shape: f32[64,8], index: 7, kind: input, shape index: {}]   ;;  %s5253_s8 = inlined_call_operand.vmem [shape: f32[11,192], index: 8, kind: input, shape index: {}]   ;;  %s5254_s9 = inlined_call_operand.hbm [shape: f32[64,8], index: 9, kind: output, shape index: {0}]   ;;  %s5255_s10 = inlined_call_operand.hbm [shape: f32[2,8,32], index: 10, kind: output, shape index: {1}]  }
   0x1   :  { %v38_v0 = vld [vmem:[%s5245_s0 + $0x10] sm:$0xff]  ;;  %v36_v1 = vld [vmem:[%s5245_s0] sm:$0xff]  ;;  %4002 = vset.pattern.permute.xlu1 %v4276_v2  ;;  %4001 = vset.pattern.permute.xlu0 %v4276_v2  ;;  %v39_v3 = vld [vmem:[%s5245_s0 + $0x18] sm:$0xff] }
   0x2   :  { %53 = vperm.xlu1 %4002, %v38_v0   ;;  %47 = vperm.xlu0 %4001, %v36_v1   ;;  %v37_v4 = vld [vmem:[%s5245_s0 + $0x8] sm:$0xff]  ;;  %v94_v5 = vld [vmem:[%s5246_s1] sm:$0xff]  ;;  %v96_v7 = vld [vmem:[%s5246_s1 + $0x10] sm:$0xff] }
   0x3   :  { %v95_v6 = vld [vmem:[%s5246_s1 + $0x8] sm:$0xff]  ;;  %v97_v8 = vld [vmem:[%s5246_s1 + $0x18] sm:$0xff]  ;;  %v98_v11 = vld [vmem:[%s5246_s1 + $0x20] sm:$0xff] }
   0x4   :  { %v3729_v9 = vpack.c.bf16 %v95_v6, %v94_v5  ;;  %v3733_v10 = vpack.c.bf16 %v97_v8, %v96_v7  ;;  %v99_v12 = vld [vmem:[%s5246_s1 + $0x28] sm:$0xff]  ;;  %v40_v14 = vld [vmem:[%s5245_s0 + $0x20] sm:$0xff] }
   0x5   :  { %v41_v13 = vld [vmem:[%s5245_s0 + $0x28] sm:$0xff] }
   0x6   :  { %56 = vperm.xlu1 %4002, %v39_v3   ;;  %50 = vperm.xlu0 %4001, %v37_v4  }
   0x7   :  { %3730 = vmatprep.subr.bf16.mxu0 %v3729_v9 }
   0x8   :  { %3732 = vmatpush3.bf16.msra.mxu0 %v3729_v9 }
   0x9   :  { %17 = vsyncpa [#allocation11], 0  ;;  %3734 = vmatprep.subr.bf16.mxu0 %v3733_v10  ;;  %v3737_v15 = vpack.c.bf16 %v99_v12, %v98_v11  ;;  %v100_v16 = vld [vmem:[%s5246_s1 + $0x30] sm:$0xff]  ;;  %v101_v17 = vld [vmem:[%s5246_s1 + $0x38] sm:$0xff]  ;;  %v44_v33 = vlaneseq  ;;  %v4277_v37 = vmov 1.0   ;;  %v4278_v50 = vmov 0.0|0.0  }
   0xa   :  { %62 = vperm.xlu1 %4002, %v41_v13   ;;  %59 = vperm.xlu0 %4001, %v40_v14   ;;  %v43_v18 = vld [vmem:[%s5245_s0 + $0x38] sm:$0xff]  ;;  %v42_v19 = vld [vmem:[%s5245_s0 + $0x30] sm:$0xff]  ;;  %v3741_v20 = vpack.c.bf16 %v101_v17, %v100_v16  ;;  %v102_v21 = vld [vmem:[%s5246_s1 + $0x40] sm:$0xff]  ;;  %vm224_vm8 = vcmask 261120   ;;  %vm4279_vm9 = vmmov 0   ;;  %vm367_vm10 = vcmask 785408  }
   0xb   :  { %v103_v22 = vld [vmem:[%s5246_s1 + $0x48] sm:$0xff]  ;;  %v104_v24 = vld [vmem:[%s5246_s1 + $0x50] sm:$0xff]  ;;  %v105_v25 = vld [vmem:[%s5246_s1 + $0x58] sm:$0xff]  ;;  %v45_v34 = vand.u32 127, %v44_v33  ;;  %s4281_s18 = smov 64   ;;  %s4282_s19 = smov 96  }
   0xc   :  { %3736 = vmatpush3.bf16.msra.mxu0 %v3733_v10  ;;  %v3745_v23 = vpack.c.bf16 %v103_v22, %v102_v21  ;;  %v3749_v26 = vpack.c.bf16 %v105_v25, %v104_v24  ;;  %v106_v27 = vld [vmem:[%s5246_s1 + $0x60] sm:$0xff]  ;;  %v107_v28 = vld [vmem:[%s5246_s1 + $0x68] sm:$0xff]  ;;  %v108_v30 = vld [vmem:[%s5246_s1 + $0x70] sm:$0xff]  ;;  %s4283_s27 = smov 32   ;;  %vm1402_vm11 = vcmask 523264  }
   0xd   :  { %3738 = vmatprep.subr.bf16.mxu0 %v3737_v15  ;;  %v3753_v29 = vpack.c.bf16 %v107_v28, %v106_v27  ;;  %v109_v31 = vld [vmem:[%s5246_s1 + $0x78] sm:$0xff]  ;;  %v233_v44 = vld [vmem:[%s5247_s2] sm:$0xff]  ;;  %v234_v45 = vld [vmem:[%s5247_s2 + $0x8] sm:$0xff] }
   0xe   :  { %68 = vperm.xlu1 %4002, %v43_v18   ;;  %65 = vperm.xlu0 %4001, %v42_v19   ;;  %v3757_v32 = vpack.c.bf16 %v109_v31, %v108_v30  ;;  %v3761_v46 = vpack.c.bf16 %v234_v45, %v233_v44  ;;  %v235_v47 = vld [vmem:[%s5247_s2 + $0x10] sm:$0xff]  ;;  %v236_v48 = vld [vmem:[%s5247_s2 + $0x18] sm:$0xff]  ;;  %v110_v51 = vld [vmem:[%s5253_s8] ss:$0 sm:$0xff] }
   0xf   :  { %v3765_v49 = vpack.c.bf16 %v236_v48, %v235_v47  ;;  %v376_v1 = vld [vmem:[%s5248_s3] sm:$0xff]  ;;  %v377_v2 = vld [vmem:[%s5248_s3 + $0x8] sm:$0xff]  ;;  %v378_v9 = vld [vmem:[%s5248_s3 + $0x10] sm:$0xff] }
  0x10   :  { %3740 = vmatpush3.bf16.msra.mxu0 %v3737_v15  ;;  %3985 = vmatprep.subr.bf16.mxu1 %v3761_v46  ;;  %v4442_v8 = vpack.c.bf16 %v377_v2, %v376_v1  ;;  %v379_v10 = vld [vmem:[%s5248_s3 + $0x18] sm:$0xff]  ;;  %v4280_v15 = vmov 0.0   ;;  %v237_v19 = vld [vmem:[%s5253_s8 + $0x1] ss:$0 sm:$0xff] }
  0x11   :  { %3742 = vmatprep.subr.bf16.mxu0 %v3741_v20  ;;  %3987 = vmatpush3.bf16.msra.mxu1 %v3761_v46  ;;  %v4456_v13 = vpack.c.bf16 %v379_v10, %v378_v9 }
  0x12   :  { %3986 = vmatprep.subr.bf16.mxu1 %v3765_v49 }
  0x14   :  { %3744 = vmatpush3.bf16.msra.mxu0 %v3741_v20 }
  0x15   :  { %3746 = vmatprep.subr.bf16.mxu0 %v3745_v23  ;;  %3988 = vmatpush3.bf16.msra.mxu1 %v3765_v49 }
  0x16   :  { %3769 = vmatprep.subr.bf16.mxu1 %v4278_v50 }
  0x18   :  { %3748 = vmatpush3.bf16.msra.mxu0 %v3745_v23 }
  0x19   :  { %3750 = vmatprep.subr.bf16.mxu0 %v3749_v26 }
  0x1c   :  { %3752 = vmatpush3.bf16.msra.mxu0 %v3749_v26 }
  0x1d   :  { %3754 = vmatprep.subr.bf16.mxu0 %v3753_v29 }
  0x20   :  { %3756 = vmatpush3.bf16.msra.mxu0 %v3753_v29 }
  0x21   :  { %3758 = vmatprep.subr.bf16.mxu0 %v3757_v32 }
  0x24   :  { %3760 = vmatpush3.bf16.msra.mxu0 %v3757_v32 }
  0x25   :  { %3762 = vmatprep.subr.bf16.mxu0 %v3761_v46 }
  0x81   :  { %v54_v35 = vpop.permute.xlu1 %53  ;;  %v48_v36 = vpop.permute.xlu0 %47 }
  0x82   :  { %vm70_vm0 = vcmp.eq.s32.totalorder %v48_v36, %v45_v34  ;;  %vm72_vm1 = vcmp.eq.s32.totalorder %v54_v35, %v45_v34 }
  0x83   :  { %3553 = vmatprep.mubr.msk.f32.mxu0 %vm70_vm0, %v4277_v37 }
  0x85   :  { %v57_v38 = vpop.permute.xlu1 %56  ;;  %v51_v39 = vpop.permute.xlu0 %50 }
  0x86   :  { %vm71_vm2 = vcmp.eq.s32.totalorder %v51_v39, %v45_v34  ;;  %vm73_vm3 = vcmp.eq.s32.totalorder %v57_v38, %v45_v34 }
  0x87   :  { %3554 = vmatmul.mubr.msk.f32.vlgmr.msra.gmra.mrb[0].mxu0 %vm71_vm2, %v4277_v37 }
  0x88   :  { %3556 = vmatprep.mubr.msk.f32.mxu0 %vm72_vm1, %v4277_v37  ;;  %3764 = vmatpush3.bf16.msra.mxu0 %v3761_v46 }
  0x89   :  { %v63_v40 = vpop.permute.xlu1 %62  ;;  %v60_v41 = vpop.permute.xlu0 %59  ;;  %3766 = vmatprep.subr.bf16.mxu0 %v3765_v49 }
  0x8a   :  { %vm74_vm4 = vcmp.eq.s32.totalorder %v60_v41, %v45_v34  ;;  %vm75_vm5 = vcmp.eq.s32.totalorder %v63_v40, %v45_v34 }
  0x8b   :  { %3557 = vmatmul.mubr.msk.f32.gmra.mrb[2].mxu0 %vm73_vm3, %v4277_v37 }
  0x8c   :  { %3559 = vmatprep.mubr.msk.f32.mxu0 %vm74_vm4, %v4277_v37  ;;  %3768 = vmatpush3.bf16.msra.mxu0 %v3765_v49 }
  0x8d   :  { %v66_v42 = vpop.permute.xlu0 %65  ;;  %v69_v43 = vpop.permute.xlu1 %68  ;;  %3787 = vmatprep.subr.bf16.mxu0 %v4278_v50 }
  0x8e   :  { %vm76_vm6 = vcmp.eq.s32.totalorder %v66_v42, %v45_v34  ;;  %vm77_vm7 = vcmp.eq.s32.totalorder %v69_v43, %v45_v34 }
  0x8f   :  { %3560 = vmatmul.mubr.msk.f32.gmra.mrb[4].mxu0 %vm75_vm5, %v4277_v37 }
  0x90   :  { %3562 = vmatprep.mubr.msk.f32.mxu0 %vm76_vm6, %v4277_v37 }
  0x93   :  { %3563 = vmatmul.mubr.msk.f32.gmra.mrb[6].mxu0 %vm77_vm7, %v4277_v37  ;;  %v4496_v37 = vld [vmem:[%s5253_s8 + $0x2] ss:$0 sm:$0xff] }
 0x15a   :  { %v3555_v52 = vpop.f32.mrb[0].mxu0 }
 0x15b   :  { %v183_v53 = vadd.f32 %v3555_v52, %v110_v51  ;;  %v177_v54 = vpop.f32.mrb[1].mxu0 }
 0x15c   :  { %v178_v55 = vadd.f32 %v177_v54, %v110_v51 }
 0x15d   :  { %4003 = vtanh.f32 %v183_v53 }
 0x15e   :  { %4005 = vtanh.f32 %v178_v55  ;;  %v3558_v56 = vpop.f32.mrb[2].mxu0 }
 0x15f   :  { %v193_v57 = vadd.f32 %v3558_v56, %v110_v51  ;;  %v187_v58 = vpop.f32.mrb[3].mxu0 }
 0x160   :  { %v188_v59 = vadd.f32 %v187_v58, %v110_v51 }
 0x161   :  { %4007 = vtanh.f32 %v193_v57 }
 0x162   :  { %4009 = vtanh.f32 %v188_v59  ;;  %v3561_v60 = vpop.f32.mrb[4].mxu0 }
 0x163   :  { %v203_v61 = vadd.f32 %v3561_v60, %v110_v51  ;;  %v197_v62 = vpop.f32.mrb[5].mxu0 }
 0x164   :  { %v198_v63 = vadd.f32 %v197_v62, %v110_v51 }
 0x165   :  { %4011 = vtanh.f32 %v203_v61 }
 0x166   :  { %4013 = vtanh.f32 %v198_v63  ;;  %v3564_v0 = vpop.f32.mrb[6].mxu0 }
 0x167   :  { %v4004_v3 = vpop.eup %4003  ;;  %v213_v4 = vadd.f32 %v3564_v0, %v110_v51  ;;  %v207_v5 = vpop.f32.mrb[7].mxu0 }
 0x168   :  { %v4006_v6 = vpop.eup %4005  ;;  %226 = vst.msk [vmem:[#allocation2 + $0x8] sm:$0xff] %vm224_vm8, %v4004_v3  ;;  %v208_v7 = vadd.f32 %v207_v5, %v110_v51 }
 0x169   :  { %225 = vst.msk [vmem:[#allocation2] sm:$0xff] %vm224_vm8, %v4006_v6  ;;  %4015 = vtanh.f32 %v213_v4  ;;  %3573 = vmatprep.mubr.msk.f32.mxu0 %vm224_vm8, %v4006_v6 }
 0x16a   :  { %4017 = vtanh.f32 %v208_v7  ;;  %3574 = vmatmul.mubr.msk.f32.vlgmr.msra.gmra.mrb[8].mxu0 %vm224_vm8, %v4004_v3 }
 0x16b   :  { %v4008_v11 = vpop.eup %4007  ;;  %3789 = vmatpush3.bf16.msra.mxu0 %v4442_v8 }
 0x16c   :  { %v4010_v12 = vpop.eup %4009  ;;  %228 = vst.msk [vmem:[#allocation2 + $0x18] sm:$0xff] %vm224_vm8, %v4008_v11  ;;  %3790 = vmatprep.subr.bf16.mxu0 %v4278_v50 }
 0x16d   :  { %227 = vst.msk [vmem:[#allocation2 + $0x10] sm:$0xff] %vm224_vm8, %v4010_v12  ;;  %3576 = vmatprep.mubr.msk.f32.mxu0 %vm224_vm8, %v4010_v12 }
 0x16e   :  { %3577 = vmatmul.mubr.msk.f32.gmra.mrb[10].mxu0 %vm224_vm8, %v4008_v11 }
 0x16f   :  { %v4012_v14 = vpop.eup %4011  ;;  %3792 = vmatpush3.bf16.msra.mxu0 %v4456_v13  ;;  %3626 = vmatprep.mubr.msk.f32.mxu0 %vm4279_vm9, %v4280_v15 }
 0x170   :  { %v4014_v16 = vpop.eup %4013  ;;  %230 = vst.msk [vmem:[#allocation2 + $0x28] sm:$0xff] %vm224_vm8, %v4012_v14  ;;  %3799 = vmatprep.subr.bf16.mxu0 %v4278_v50 }
 0x171   :  { %229 = vst.msk [vmem:[#allocation2 + $0x20] sm:$0xff] %vm224_vm8, %v4014_v16  ;;  %3579 = vmatprep.mubr.msk.f32.mxu1 %vm224_vm8, %v4014_v16 }
 0x172   :  { %3580 = vmatmul.mubr.msk.f32.vlgmr.msra.gmra.mrb[0].mxu1 %vm224_vm8, %v4012_v14 }
 0x173   :  { %v4016_v17 = vpop.eup %4015  ;;  %3771 = vmatpush3.bf16.msra.mxu1 %v4442_v8 }
 0x174   :  { %v4018_v18 = vpop.eup %4017  ;;  %232 = vst.msk [vmem:[#allocation2 + $0x38] sm:$0xff] %vm224_vm8, %v4016_v17  ;;  %3772 = vmatprep.subr.bf16.mxu1 %v4278_v50 }
 0x175   :  { %231 = vst.msk [vmem:[#allocation2 + $0x30] sm:$0xff] %vm224_vm8, %v4018_v18  ;;  %3582 = vmatprep.mubr.msk.f32.mxu1 %vm224_vm8, %v4018_v18 }
 0x176   :  { %3583 = vmatmul.mubr.msk.f32.gmra.mrb[2].mxu1 %vm224_vm8, %v4016_v17 }
 0x177   :  { %3774 = vmatpush3.bf16.msra.mxu1 %v4456_v13  ;;  %3593 = vmatprep.mubr.msk.f32.mxu1 %vm4279_vm9, %v4280_v15 }
 0x178   :  { %3775 = vmatprep.subr.bf16.mxu1 %v4278_v50 }
 0x17a   :  { %3594 = vmatmul.mubr.f32.vlgmr.msra.gmra.mrb[4].mxu1 %v4280_v15 }
 0x17b   :  { %3777 = vmatpush3.bf16.msra.mxu1 %v4442_v8  ;;  %3604 = vmatprep.mubr.msk.f32.mxu1 %vm4279_vm9, %v4280_v15 }
 0x17c   :  { %3778 = vmatprep.subr.bf16.mxu1 %v4278_v50 }
 0x17f   :  { %3780 = vmatpush3.bf16.msra.mxu1 %v4456_v13 }
 0x180   :  { %3781 = vmatprep.subr.bf16.mxu1 %v4278_v50 }
 0x23d   :  { %v3575_v20 = vpop.f32.mrb[8].mxu0 }
 0x23e   :  { %v334_v21 = vadd.f32 %v3575_v20, %v237_v19  ;;  %v328_v22 = vpop.f32.mrb[9].mxu0 }
 0x23f   :  { %v329_v23 = vadd.f32 %v328_v22, %v237_v19 }
 0x240   :  { %369 = vst.msk [vmem:[#allocation3 + $0x8] sm:$0xff] %vm367_vm10, %v334_v21 }
 0x241   :  { %368 = vst.msk [vmem:[#allocation3] sm:$0xff] %vm367_vm10, %v329_v23  ;;  %v3578_v24 = vpop.f32.mrb[10].mxu0 }
 0x242   :  { %v344_v25 = vadd.f32 %v3578_v24, %v237_v19  ;;  %v338_v26 = vpop.f32.mrb[11].mxu0 }
 0x243   :  { %v339_v27 = vadd.f32 %v338_v26, %v237_v19 }
 0x244   :  { %371 = vst.msk [vmem:[#allocation3 + $0x18] sm:$0xff] %vm367_vm10, %v344_v25 }
 0x245   :  { %370 = vst.msk [vmem:[#allocation3 + $0x10] sm:$0xff] %vm367_vm10, %v339_v27  ;;  %v3581_v28 = vpop.f32.mrb[0].mxu1 }
 0x246   :  { %v354_v29 = vadd.f32 %v3581_v28, %v237_v19  ;;  %v348_v30 = vpop.f32.mrb[1].mxu1 }
 0x247   :  { %v349_v31 = vadd.f32 %v348_v30, %v237_v19  ;;  %v558_v62 = vld [vmem:[#allocation3 + $0x8] sm:$0xff] }
 0x248   :  { %373 = vst.msk [vmem:[#allocation3 + $0x28] sm:$0xff] %vm367_vm10, %v354_v29  ;;  %v454_v41 = vld [vmem:[#allocation3] sm:$0xff] }
 0x249   :  { %372 = vst.msk [vmem:[#allocation3 + $0x20] sm:$0xff] %vm367_vm10, %v349_v31  ;;  %v3584_v32 = vpop.f32.mrb[2].mxu1 }
 0x24a   :  { %v364_v34 = vadd.f32 %v3584_v32, %v237_v19  ;;  %v358_v35 = vpop.f32.mrb[3].mxu1 }
 0x24b   :  { %v359_v36 = vadd.f32 %v358_v35, %v237_v19 }
 0x24c   :  { %375 = vst.msk [vmem:[#allocation3 + $0x38] sm:$0xff] %vm367_vm10, %v364_v34  ;;  %v662_v21 = vld [vmem:[#allocation3 + $0x10] sm:$0xff] }
 0x24d   :  { %374 = vst.msk [vmem:[#allocation3 + $0x30] sm:$0xff] %vm367_vm10, %v359_v36  ;;  %v450_v38 = vpop.f32.mrb[4].mxu1 }
 0x24e   :  { %v451_v39 = vadd.f32 %v450_v38, %v4496_v37  ;;  %v3595_v40 = vpop.f32.mrb[5].mxu1 }
 0x250   :  { %463 = vrot.lane.b32.xlu0 %v451_v39, %s4281_s18  ;;  %v455_v42 = vadd.f32 %v454_v41, %v451_v39 }
 0x252   :  { %v3341_v43 = vmul.f32 -1.442695, %v455_v42 }
 0x254   :  { %4019 = vpow2.f32 %v3341_v43  ;;  %v766_v43 = vld [vmem:[#allocation3 + $0x18] sm:$0xff] }
 0x25e   :  { %v4020_v44 = vpop.eup %4019 }
 0x25f   :  { %v459_v45 = vadd.f32 1.0, %v4020_v44 }
 0x261   :  { %4021 = vrcp.f32 %v459_v45 }
 0x26b   :  { %v4022_v46 = vpop.eup %4021 }
 0x26c   :  { %v473_v53 = vsub.f32 1.0, %v4022_v46  ;;  %v479_v55 = vmul.f32 0.0, %v4022_v46 }
 0x2c2   :  { %v464_v47 = vpop.permute.xlu0 %463 }
 0x2c3   :  { %v466_v48 = vmul.f32 %v4022_v46, %v464_v47 }
 0x2c5   :  { %468 = vrot.lane.b32.xlu1 %v466_v48, %s4281_s18 }
 0x337   :  { %v469_v49 = vpop.permute.xlu1 %468 }
 0x338   :  { %v471_v51 = vadd.f32 %v469_v49, %v454_v41 }
 0x33a   :  { %4023 = vtanh.f32 %v471_v51 }
 0x344   :  { %v4024_v52 = vpop.eup %4023 }
 0x345   :  { %475 = vrot.lane.b32.xlu0 %v4024_v52, %s4282_s19 }
 0x3b7   :  { %v476_v54 = vpop.permute.xlu0 %475 }
 0x3b8   :  { %v478_v56 = vmul.f32 %v476_v54, %v473_v53 }
 0x3ba   :  { %v480_v57 = vadd.f32 %v479_v55, %v478_v56 }
 0x3bc   :  { %482 = vrot.lane.b32.xlu1 %v480_v57, %s4282_s19 }
 0x42e   :  { %v483_v58 = vpop.permute.xlu1 %482 }
 0x42f   :  { %485 = vst.msk [vmem:[#allocation4] sm:$0xff] %vm224_vm8, %v483_v58  ;;  %3605 = vmatmul.mubr.msk.f32.vlgmr.msra.gmra.mrb[6].mxu1 %vm224_vm8, %v483_v58 }
 0x430   :  { %3783 = vmatpush3.bf16.msra.mxu1 %v4442_v8  ;;  %3615 = vmatprep.mubr.msk.f32.mxu1 %vm4279_vm9, %v4280_v15 }
 0x431   :  { %3784 = vmatprep.subr.bf16.mxu1 %v4278_v50 }
 0x434   :  { %3786 = vmatpush3.bf16.msra.mxu1 %v4456_v13 }
 0x435   :  { %3793 = vmatprep.subr.bf16.mxu1 %v4278_v50 }
 0x502   :  { %v554_v59 = vpop.f32.mrb[6].mxu1 }
 0x503   :  { %v555_v60 = vadd.f32 %v554_v59, %v4496_v37  ;;  %v3606_v61 = vpop.f32.mrb[7].mxu1 }
 0x505   :  { %567 = vrot.lane.b32.xlu0 %v555_v60, %s4281_s18  ;;  %v559_v63 = vadd.f32 %v558_v62, %v555_v60 }
 0x507   :  { %v3343_v0 = vmul.f32 -1.442695, %v559_v63 }
 0x509   :  { %4025 = vpow2.f32 %v3343_v0  ;;  %v870_v0 = vld [vmem:[#allocation3 + $0x20] sm:$0xff] }
 0x513   :  { %v4026_v1 = vpop.eup %4025 }
 0x514   :  { %v563_v2 = vadd.f32 1.0, %v4026_v1 }
 0x516   :  { %4027 = vrcp.f32 %v563_v2 }
 0x520   :  { %v4028_v3 = vpop.eup %4027 }
 0x521   :  { %v577_v10 = vsub.f32 1.0, %v4028_v3  ;;  %v583_v12 = vmul.f32 %v4028_v3, %v480_v57 }
 0x577   :  { %v568_v4 = vpop.permute.xlu0 %567 }
 0x578   :  { %v570_v5 = vmul.f32 %v4028_v3, %v568_v4 }
 0x57a   :  { %572 = vrot.lane.b32.xlu1 %v570_v5, %s4281_s18 }
 0x5ec   :  { %v573_v6 = vpop.permute.xlu1 %572 }
 0x5ed   :  { %v575_v7 = vadd.f32 %v573_v6, %v558_v62 }
 0x5ef   :  { %4029 = vtanh.f32 %v575_v7 }
 0x5f9   :  { %v4030_v9 = vpop.eup %4029 }
 0x5fa   :  { %579 = vrot.lane.b32.xlu0 %v4030_v9, %s4282_s19 }
 0x66c   :  { %v580_v11 = vpop.permute.xlu0 %579 }
 0x66d   :  { %v582_v14 = vmul.f32 %v580_v11, %v577_v10 }
 0x66f   :  { %v584_v16 = vadd.f32 %v583_v12, %v582_v14 }
 0x671   :  { %586 = vrot.lane.b32.xlu1 %v584_v16, %s4282_s19 }
 0x6e3   :  { %v587_v17 = vpop.permute.xlu1 %586 }
 0x6e4   :  { %589 = vst.msk [vmem:[#allocation4 + $0x8] sm:$0xff] %vm224_vm8, %v587_v17  ;;  %3616 = vmatmul.mubr.msk.f32.vlgmr.msra.gmra.mrb[8].mxu1 %vm224_vm8, %v587_v17 }
 0x6e5   :  { %3795 = vmatpush3.bf16.msra.mxu1 %v4442_v8  ;;  %3637 = vmatprep.mubr.msk.f32.mxu1 %vm4279_vm9, %v4280_v15 }
 0x6e6   :  { %3796 = vmatprep.subr.bf16.mxu1 %v4278_v50 }
 0x6e9   :  { %3798 = vmatpush3.bf16.msra.mxu1 %v4456_v13 }
 0x6ea   :  { %3805 = vmatprep.subr.bf16.mxu1 %v4278_v50 }
 0x7b7   :  { %v658_v18 = vpop.f32.mrb[8].mxu1 }
 0x7b8   :  { %v659_v19 = vadd.f32 %v658_v18, %v4496_v37  ;;  %v3617_v20 = vpop.f32.mrb[9].mxu1 }
 0x7ba   :  { %671 = vrot.lane.b32.xlu0 %v659_v19, %s4281_s18  ;;  %v663_v22 = vadd.f32 %v662_v21, %v659_v19 }
 0x7bc   :  { %v3345_v23 = vmul.f32 -1.442695, %v663_v22 }
 0x7be   :  { %4031 = vpow2.f32 %v3345_v23  ;;  %v974_v23 = vld [vmem:[#allocation3 + $0x28] sm:$0xff] }
 0x7c8   :  { %v4032_v24 = vpop.eup %4031 }
 0x7c9   :  { %v667_v25 = vadd.f32 1.0, %v4032_v24 }
 0x7cb   :  { %4033 = vrcp.f32 %v667_v25 }
 0x7d5   :  { %v4034_v26 = vpop.eup %4033 }
 0x7d6   :  { %v681_v32 = vsub.f32 1.0, %v4034_v26  ;;  %v687_v35 = vmul.f32 %v4034_v26, %v584_v16 }
 0x82c   :  { %v672_v27 = vpop.permute.xlu0 %671 }
 0x82d   :  { %v674_v28 = vmul.f32 %v4034_v26, %v672_v27 }
 0x82f   :  { %676 = vrot.lane.b32.xlu1 %v674_v28, %s4281_s18 }
 0x8a1   :  { %v677_v29 = vpop.permute.xlu1 %676 }
 0x8a2   :  { %v679_v30 = vadd.f32 %v677_v29, %v662_v21 }
 0x8a4   :  { %4035 = vtanh.f32 %v679_v30 }
 0x8ae   :  { %v4036_v31 = vpop.eup %4035 }
 0x8af   :  { %683 = vrot.lane.b32.xlu0 %v4036_v31, %s4282_s19 }
 0x921   :  { %v684_v34 = vpop.permute.xlu0 %683 }
 0x922   :  { %v686_v36 = vmul.f32 %v684_v34, %v681_v32 }
 0x924   :  { %v688_v38 = vadd.f32 %v687_v35, %v686_v36 }
 0x926   :  { %690 = vrot.lane.b32.xlu1 %v688_v38, %s4282_s19 }
 0x998   :  { %v691_v39 = vpop.permute.xlu1 %690 }
 0x999   :  { %693 = vst.msk [vmem:[#allocation4 + $0x10] sm:$0xff] %vm224_vm8, %v691_v39  ;;  %3627 = vmatmul.mubr.msk.f32.vlgmr.msra.gmra.mrb[12].mxu0 %vm224_vm8, %v691_v39 }
 0x99a   :  { %3801 = vmatpush3.bf16.msra.mxu0 %v4442_v8  ;;  %3648 = vmatprep.mubr.msk.f32.mxu0 %vm4279_vm9, %v4280_v15 }
 0x99b   :  { %3802 = vmatprep.subr.bf16.mxu0 %v4278_v50 }
 0x99e   :  { %3804 = vmatpush3.bf16.msra.mxu0 %v4456_v13 }
 0x99f   :  { %3811 = vmatprep.subr.bf16.mxu0 %v4278_v50 }
 0xa6c   :  { %v762_v40 = vpop.f32.mrb[12].mxu0 }
 0xa6d   :  { %v763_v41 = vadd.f32 %v762_v40, %v4496_v37  ;;  %v3628_v42 = vpop.f32.mrb[13].mxu0 }
 0xa6e   :  { %v1078_v42 = vld [vmem:[#allocation3 + $0x30] sm:$0xff] }
 0xa6f   :  { %775 = vrot.lane.b32.xlu0 %v763_v41, %s4281_s18  ;;  %v767_v44 = vadd.f32 %v766_v43, %v763_v41 }
 0xa71   :  { %v3347_v45 = vmul.f32 -1.442695, %v767_v44 }
 0xa73   :  { %4037 = vpow2.f32 %v3347_v45 }
 0xa7d   :  { %v4038_v46 = vpop.eup %4037 }
 0xa7e   :  { %v771_v47 = vadd.f32 1.0, %v4038_v46 }
 0xa80   :  { %4039 = vrcp.f32 %v771_v47 }
 0xa8a   :  { %v4040_v48 = vpop.eup %4039 }
 0xa8b   :  { %v785_v55 = vsub.f32 1.0, %v4040_v48  ;;  %v791_v57 = vmul.f32 %v4040_v48, %v688_v38 }
 0xae1   :  { %v776_v49 = vpop.permute.xlu0 %775 }
 0xae2   :  { %v778_v51 = vmul.f32 %v4040_v48, %v776_v49 }
 0xae4   :  { %780 = vrot.lane.b32.xlu1 %v778_v51, %s4281_s18 }
 0xb56   :  { %v781_v52 = vpop.permute.xlu1 %780 }
 0xb57   :  { %v783_v53 = vadd.f32 %v781_v52, %v766_v43 }
 0xb59   :  { %4041 = vtanh.f32 %v783_v53 }
 0xb63   :  { %v4042_v54 = vpop.eup %4041 }
 0xb64   :  { %787 = vrot.lane.b32.xlu0 %v4042_v54, %s4282_s19 }
 0xbd6   :  { %v788_v56 = vpop.permute.xlu0 %787 }
 0xbd7   :  { %v790_v58 = vmul.f32 %v788_v56, %v785_v55 }
 0xbd9   :  { %v792_v59 = vadd.f32 %v791_v57, %v790_v58 }
 0xbdb   :  { %794 = vrot.lane.b32.xlu1 %v792_v59, %s4282_s19 }
 0xc4d   :  { %v795_v60 = vpop.permute.xlu1 %794 }
 0xc4e   :  { %797 = vst.msk [vmem:[#allocation4 + $0x18] sm:$0xff] %vm224_vm8, %v795_v60  ;;  %3638 = vmatmul.mubr.msk.f32.vlgmr.msra.gmra.mrb[10].mxu1 %vm224_vm8, %v795_v60 }
 0xc4f   :  { %3807 = vmatpush3.bf16.msra.mxu1 %v4442_v8  ;;  %3659 = vmatprep.mubr.msk.f32.mxu1 %vm4279_vm9, %v4280_v15 }
 0xc50   :  { %3808 = vmatprep.subr.bf16.mxu1 %v4278_v50 }
 0xc53   :  { %3810 = vmatpush3.bf16.msra.mxu1 %v4456_v13 }
 0xd21   :  { %v866_v61 = vpop.f32.mrb[10].mxu1 }
 0xd22   :  { %v867_v62 = vadd.f32 %v866_v61, %v4496_v37  ;;  %v3639_v63 = vpop.f32.mrb[11].mxu1 }
 0xd23   :  { %v1182_v63 = vld [vmem:[#allocation3 + $0x38] sm:$0xff] }
 0xd24   :  { %879 = vrot.lane.b32.xlu0 %v867_v62, %s4281_s18  ;;  %v871_v1 = vadd.f32 %v870_v0, %v867_v62 }
 0xd26   :  { %v3349_v2 = vmul.f32 -1.442695, %v871_v1 }
 0xd28   :  { %4043 = vpow2.f32 %v3349_v2 }
 0xd32   :  { %v4044_v3 = vpop.eup %4043 }
 0xd33   :  { %v875_v4 = vadd.f32 1.0, %v4044_v3 }
 0xd35   :  { %4045 = vrcp.f32 %v875_v4 }
 0xd3f   :  { %v4046_v5 = vpop.eup %4045 }
 0xd40   :  { %v889_v12 = vsub.f32 1.0, %v4046_v5  ;;  %v895_v16 = vmul.f32 %v4046_v5, %v792_v59 }
 0xd96   :  { %v880_v6 = vpop.permute.xlu0 %879 }
 0xd97   :  { %v882_v7 = vmul.f32 %v4046_v5, %v880_v6 }
 0xd99   :  { %884 = vrot.lane.b32.xlu1 %v882_v7, %s4281_s18 }
 0xe0b   :  { %v885_v9 = vpop.permute.xlu1 %884 }
 0xe0c   :  { %v887_v10 = vadd.f32 %v885_v9, %v870_v0 }
 0xe0e   :  { %4047 = vtanh.f32 %v887_v10 }
 0xe18   :  { %v4048_v11 = vpop.eup %4047 }
 0xe19   :  { %891 = vrot.lane.b32.xlu0 %v4048_v11, %s4282_s19 }
 0xe8b   :  { %v892_v14 = vpop.permute.xlu0 %891 }
 0xe8c   :  { %v894_v17 = vmul.f32 %v892_v14, %v889_v12  ;;  %v1216_v12 = vld [vmem:[#allocation4 + $0x10] sm:$0xff] }
 0xe8d   :  { %v1228_v14 = vsel %vm224_vm8, %v1216_v12, 0.0 }
 0xe8e   :  { %v896_v18 = vadd.f32 %v895_v16, %v894_v17  ;;  %v1217_v16 = vld [vmem:[#allocation4 + $0x18] sm:$0xff] }
 0xe8f   :  { %v1231_v17 = vsel %vm224_vm8, %v1217_v16, 0.0 }
 0xe90   :  { %898 = vrot.lane.b32.xlu1 %v896_v18, %s4282_s19 }
 0xf02   :  { %v899_v19 = vpop.permute.xlu1 %898 }
 0xf03   :  { %901 = vst.msk [vmem:[#allocation4 + $0x20] sm:$0xff] %vm224_vm8, %v899_v19  ;;  %3649 = vmatmul.mubr.msk.f32.vlgmr.msra.gmra.mrb[14].mxu0 %vm224_vm8, %v899_v19 }
 0xf04   :  { %3813 = vmatpush3.bf16.msra.mxu0 %v4442_v8  ;;  %3670 = vmatprep.mubr.msk.f32.mxu0 %vm4279_vm9, %v4280_v15 }
 0xf05   :  { %3814 = vmatprep.subr.bf16.mxu0 %v4278_v50 }
 0xf08   :  { %3816 = vmatpush3.bf16.msra.mxu0 %v4456_v13 }
 0xfd6   :  { %v970_v20 = vpop.f32.mrb[14].mxu0 }
 0xfd7   :  { %v971_v21 = vadd.f32 %v970_v20, %v4496_v37  ;;  %v3650_v22 = vpop.f32.mrb[15].mxu0 }
 0xfd9   :  { %983 = vrot.lane.b32.xlu0 %v971_v21, %s4281_s18  ;;  %v975_v24 = vadd.f32 %v974_v23, %v971_v21 }
 0xfdb   :  { %v3351_v25 = vmul.f32 -1.442695, %v975_v24 }
 0xfdd   :  { %4049 = vpow2.f32 %v3351_v25  ;;  %v1215_v25 = vld [vmem:[#allocation4 + $0x8] sm:$0xff] }
 0xfe7   :  { %v4050_v26 = vpop.eup %4049 }
 0xfe8   :  { %v979_v27 = vadd.f32 1.0, %v4050_v26  ;;  %v1225_v26 = vsel %vm224_vm8, %v1215_v25, 0.0 }
 0xfea   :  { %4051 = vrcp.f32 %v979_v27  ;;  %v1218_v27 = vld [vmem:[#allocation4 + $0x20] sm:$0xff] }
 0xff4   :  { %v4052_v8 = vpop.eup %4051 }
 0xff5   :  { %v993_v31 = vsub.f32 1.0, %v4052_v8  ;;  %v999_v34 = vmul.f32 %v4052_v8, %v896_v18 }
0x104b   :  { %v984_v28 = vpop.permute.xlu0 %983 }
0x104c   :  { %v986_v29 = vmul.f32 %v4052_v8, %v984_v28  ;;  %v1234_v8 = vsel %vm224_vm8, %v1218_v27, 0.0 }
0x104e   :  { %988 = vrot.lane.b32.xlu1 %v986_v29, %s4281_s18 }
0x10c0   :  { %v989_v50 = vpop.permute.xlu1 %988 }
0x10c1   :  { %v991_v13 = vadd.f32 %v989_v50, %v974_v23 }
0x10c3   :  { %4053 = vtanh.f32 %v991_v13 }
0x10cd   :  { %v4054_v30 = vpop.eup %4053 }
0x10ce   :  { %995 = vrot.lane.b32.xlu0 %v4054_v30, %s4282_s19 }
0x1140   :  { %v996_v32 = vpop.permute.xlu0 %995 }
0x1141   :  { %v998_v35 = vmul.f32 %v996_v32, %v993_v31 }
0x1143   :  { %v1000_v36 = vadd.f32 %v999_v34, %v998_v35 }
0x1145   :  { %1002 = vrot.lane.b32.xlu1 %v1000_v36, %s4282_s19 }
0x11b7   :  { %v1003_v38 = vpop.permute.xlu1 %1002 }
0x11b8   :  { %1005 = vst.msk [vmem:[#allocation4 + $0x28] sm:$0xff] %vm224_vm8, %v1003_v38  ;;  %3660 = vmatmul.mubr.msk.f32.vlgmr.msra.gmra.mrb[12].mxu1 %vm224_vm8, %v1003_v38 }
0x11bf   :  { %v1219_v18 = vld [vmem:[#allocation4 + $0x28] sm:$0xff] }
0x11c0   :  { %v1237_v19 = vsel %vm224_vm8, %v1219_v18, 0.0 }
0x128b   :  { %v1074_v39 = vpop.f32.mrb[12].mxu1 }
0x128c   :  { %v1075_v40 = vadd.f32 %v1074_v39, %v4496_v37  ;;  %v3661_v41 = vpop.f32.mrb[13].mxu1 }
0x128e   :  { %1087 = vrot.lane.b32.xlu0 %v1075_v40, %s4281_s18  ;;  %v1079_v43 = vadd.f32 %v1078_v42, %v1075_v40 }
0x1290   :  { %v3353_v44 = vmul.f32 -1.442695, %v1079_v43 }
0x1292   :  { %4055 = vpow2.f32 %v3353_v44 }
0x129c   :  { %v4056_v45 = vpop.eup %4055 }
0x129d   :  { %v1083_v46 = vadd.f32 1.0, %v4056_v45 }
0x129f   :  { %4057 = vrcp.f32 %v1083_v46 }
0x12a9   :  { %v4058_v47 = vpop.eup %4057 }
0x12aa   :  { %v1097_v54 = vsub.f32 1.0, %v4058_v47  ;;  %v1103_v56 = vmul.f32 %v4058_v47, %v1000_v36 }
0x1300   :  { %v1088_v48 = vpop.permute.xlu0 %1087 }
0x1301   :  { %v1090_v49 = vmul.f32 %v4058_v47, %v1088_v48 }
0x1303   :  { %1092 = vrot.lane.b32.xlu1 %v1090_v49, %s4281_s18 }
0x1375   :  { %v1093_v51 = vpop.permute.xlu1 %1092 }
0x1376   :  { %v1095_v52 = vadd.f32 %v1093_v51, %v1078_v42 }
0x1378   :  { %4059 = vtanh.f32 %v1095_v52 }
0x1382   :  { %v4060_v53 = vpop.eup %4059 }
0x1383   :  { %1099 = vrot.lane.b32.xlu0 %v4060_v53, %s4282_s19 }
0x13f5   :  { %v1100_v55 = vpop.permute.xlu0 %1099 }
0x13f6   :  { %v1102_v57 = vmul.f32 %v1100_v55, %v1097_v54 }
0x13f8   :  { %v1104_v58 = vadd.f32 %v1103_v56, %v1102_v57 }
0x13fa   :  { %1106 = vrot.lane.b32.xlu1 %v1104_v58, %s4282_s19 }
0x146c   :  { %v1107_v59 = vpop.permute.xlu1 %1106 }
0x146d   :  { %1109 = vst.msk [vmem:[#allocation4 + $0x30] sm:$0xff] %vm224_vm8, %v1107_v59  ;;  %3671 = vmatmul.mubr.msk.f32.vlgmr.msra.gmra.mrb[16].mxu0 %vm224_vm8, %v1107_v59 }
0x146e   :  { %1641 = vmatprep.mubr.f32.mxu0 %v4280_v15 }
0x1474   :  { %v1220_v28 = vld [vmem:[#allocation4 + $0x30] sm:$0xff] }
0x1475   :  { %v1240_v29 = vsel %vm224_vm8, %v1220_v28, 0.0 }
0x1540   :  { %v1178_v60 = vpop.f32.mrb[16].mxu0 }
0x1541   :  { %v1179_v61 = vadd.f32 %v1178_v60, %v4496_v37  ;;  %v3672_v62 = vpop.f32.mrb[17].mxu0  ;;  %v1214_v37 = vld [vmem:[#allocation4] sm:$0xff] }
0x1542   :  { %v1222_v11 = vsel %vm224_vm8, %v1214_v37, 0.0 }
0x1543   :  { %1191 = vrot.lane.b32.xlu0 %v1179_v61, %s4281_s18  ;;  %v1183_v0 = vadd.f32 %v1182_v63, %v1179_v61 }
0x1545   :  { %v3355_v1 = vmul.f32 -1.442695, %v1183_v0 }
0x1547   :  { %4061 = vpow2.f32 %v3355_v1 }
0x1551   :  { %v4062_v2 = vpop.eup %4061 }
0x1552   :  { %v1187_v3 = vadd.f32 1.0, %v4062_v2 }
0x1554   :  { %4063 = vrcp.f32 %v1187_v3 }
0x155e   :  { %v4064_v4 = vpop.eup %4063 }
0x155f   :  { %v1201_v20 = vsub.f32 1.0, %v4064_v4  ;;  %v1207_v22 = vmul.f32 %v4064_v4, %v1104_v58 }
0x15b5   :  { %v1192_v5 = vpop.permute.xlu0 %1191 }
0x15b6   :  { %v1194_v6 = vmul.f32 %v4064_v4, %v1192_v5  ;;  %v1393_v5 = vld [vmem:[%s5249_s4] sm:$0xff] }
0x15b8   :  { %1196 = vrot.lane.b32.xlu1 %v1194_v6, %s4281_s18  ;;  %v1394_v6 = vld [vmem:[%s5249_s4 + $0x8] sm:$0xff] }
0x162a   :  { %v1197_v7 = vpop.permute.xlu1 %1196 }
0x162b   :  { %v1199_v9 = vadd.f32 %v1197_v7, %v1182_v63  ;;  %v3817_v7 = vpack.c.bf16 %v1394_v6, %v1393_v5 }
0x162d   :  { %4065 = vtanh.f32 %v1199_v9  ;;  %3818 = vmatprep.subr.bf16.mxu1 %v3817_v7  ;;  %v1395_v9 = vld [vmem:[%s5249_s4 + $0x10] sm:$0xff] }
0x162e   :  { %3820 = vmatpush3.bf16.msra.mxu1 %v3817_v7 }
0x1637   :  { %v4066_v10 = vpop.eup %4065 }
0x1638   :  { %1203 = vrot.lane.b32.xlu0 %v4066_v10, %s4282_s19  ;;  %v1396_v10 = vld [vmem:[%s5249_s4 + $0x18] sm:$0xff] }
0x1657   :  { %1223 = vadd.xlane.f32.xlu0 %v1222_v11  ;;  %v1345_v11 = vld [vmem:[#allocation2] sm:$0xff] }
0x165b   :  { %1229 = vadd.xlane.f32.xlu0 %v1228_v14  ;;  %v1398_v14 = vld [vmem:[%s5249_s4 + $0x28] sm:$0xff] }
0x165f   :  { %1232 = vadd.xlane.f32.xlu0 %v1231_v17  ;;  %v1347_v17 = vld [vmem:[#allocation2 + $0x10] sm:$0xff] }
0x1663   :  { %1238 = vadd.xlane.f32.xlu0 %v1237_v19  ;;  %v1399_v19 = vld [vmem:[%s5249_s4 + $0x30] sm:$0xff] }
0x16aa   :  { %v1204_v21 = vpop.permute.xlu0 %1203 }
0x16ab   :  { %v1206_v23 = vmul.f32 %v1204_v21, %v1201_v20  ;;  %v1400_v20 = vld [vmem:[%s5249_s4 + $0x38] sm:$0xff] }
0x16ac   :  { %v3829_v21 = vpack.c.bf16 %v1400_v20, %v1399_v19 }
0x16ad   :  { %v1208_v24 = vadd.f32 %v1207_v22, %v1206_v23  ;;  %v1348_v22 = vld [vmem:[#allocation2 + $0x18] sm:$0xff]  ;;  %v1350_v23 = vld [vmem:[#allocation2 + $0x28] sm:$0xff] }
0x16af   :  { %1210 = vrot.lane.b32.xlu1 %v1208_v24, %s4282_s19  ;;  %v1352_v24 = vld [vmem:[#allocation2 + $0x38] sm:$0xff] }
0x16d3   :  { %1226 = vadd.xlane.f32.xlu1 %v1225_v26 }
0x16d7   :  { %1235 = vadd.xlane.f32.xlu1 %v1234_v8 }
0x16db   :  { %1241 = vadd.xlane.f32.xlu1 %v1240_v29  ;;  %v1349_v29 = vld [vmem:[#allocation2 + $0x20] sm:$0xff] }
0x16e4   :  { %v1224_v50 = vpop.xlane.xlu0 %1223 }
0x16e5   :  { %v1247_v13 = vmul.f32 0.03125, %v1224_v50  ;;  %v1351_v50 = vld [vmem:[#allocation2 + $0x30] sm:$0xff] }
0x16e7   :  { %v4590_v30 = vsub.f32 %v1214_v37, %v1247_v13  ;;  %v3821_v37 = vpack.c.bf16 %v1396_v10, %v1395_v9 }
0x16e8   :  { %v1230_v31 = vpop.xlane.xlu0 %1229 }
0x16e9   :  { %v1249_v32 = vmul.f32 0.03125, %v1230_v31  ;;  %v1263_v34 = vmul.f32 %v4590_v30, %v4590_v30  ;;  %3822 = vmatprep.subr.bf16.mxu1 %v3821_v37 }
0x16ea   :  { %3824 = vmatpush3.bf16.msra.mxu1 %v3821_v37 }
0x16eb   :  { %v4594_v35 = vsub.f32 %v1216_v12, %v1249_v32  ;;  %v1271_v36 = vsel %vm224_vm8, %v1263_v34, 0.0  ;;  %v1397_v12 = vld [vmem:[%s5249_s4 + $0x20] sm:$0xff]  ;;  %v1707_v32 = vld [vmem:[%s5251_s6 + $0x8] sm:$0xff]  ;;  %v1709_v34 = vld [vmem:[%s5251_s6 + $0x18] sm:$0xff] }
0x16ec   :  { %1272 = vadd.xlane.f32.xlu1 %v1271_v36  ;;  %v1233_v43 = vpop.xlane.xlu0 %1232  ;;  %v4674_v36 = vpack.c.bf16 %v1709_v34, %v1707_v32  ;;  %v1714_v34 = vld [vmem:[%s5251_s6 + $0x40] sm:$0xff] }
0x16ed   :  { %v1265_v38 = vmul.f32 %v4594_v35, %v4594_v35  ;;  %v1250_v44 = vmul.f32 0.03125, %v1233_v43  ;;  %v1532_v43 = vld [vmem:[%s5250_s5] sm:$0xff] }
0x16ef   :  { %v1277_v39 = vsel %vm224_vm8, %v1265_v38, 0.0  ;;  %v4605_v48 = vsub.f32 %v1217_v16, %v1250_v44  ;;  %v3825_v16 = vpack.c.bf16 %v1398_v14, %v1397_v12  ;;  %v1534_v44 = vld [vmem:[%s5250_s5 + $0x10] sm:$0xff] }
0x16f0   :  { %1278 = vadd.xlane.f32.xlu1 %v1277_v39  ;;  %v1239_v45 = vpop.xlane.xlu0 %1238  ;;  %v1533_v39 = vld [vmem:[%s5250_s5 + $0x8] sm:$0xff]  ;;  %v1708_v12 = vld [vmem:[%s5251_s6 + $0x10] sm:$0xff] }
0x16f1   :  { %v1252_v49 = vmul.f32 0.03125, %v1239_v45  ;;  %v1266_v58 = vmul.f32 %v4605_v48, %v4605_v48  ;;  %3826 = vmatprep.subr.bf16.mxu1 %v3825_v16  ;;  %v3835_v45 = vpack.c.bf16 %v1534_v44, %v1532_v43  ;;  %v1718_v44 = vld [vmem:[%s5251_s6 + $0x60] sm:$0xff] }
0x16f2   :  { %3828 = vmatpush3.bf16.msra.mxu1 %v3825_v16 }
0x16f3   :  { %v4611_v55 = vsub.f32 %v1219_v18, %v1252_v49  ;;  %v1280_v63 = vsel %vm224_vm8, %v1266_v58, 0.0  ;;  %v1346_v18 = vld [vmem:[#allocation2 + $0x8] sm:$0xff]  ;;  %3830 = vmatprep.subr.bf16.mxu1 %v3829_v21 }
0x16f5   :  { %v1268_v1 = vmul.f32 %v4611_v55, %v4611_v55 }
0x16f6   :  { %3832 = vmatpush3.bf16.msra.mxu1 %v3829_v21 }
0x16f7   :  { %v1286_v3 = vsel %vm224_vm8, %v1268_v1, 0.0  ;;  %3842 = vmatprep.subr.bf16.mxu1 %v4674_v36 }
0x1721   :  { %v1211_v40 = vpop.permute.xlu1 %1210 }
0x1722   :  { %1213 = vst.msk [vmem:[#allocation4 + $0x38] sm:$0xff] %vm224_vm8, %v1211_v40  ;;  %v1535_v40 = vld [vmem:[%s5250_s5 + $0x18] sm:$0xff] }
0x1729   :  { %v4601_v41 = vld [vmem:[#allocation4 + $0x38] sm:$0xff] }
0x172a   :  { %v1243_v42 = vsel %vm224_vm8, %v4601_v41, 0.0 }
0x172b   :  { %1244 = vadd.xlane.f32.xlu0 %v1243_v42  ;;  %v3833_v42 = vpack.c.bf16 %v1535_v40, %v1533_v39  ;;  %v1719_v40 = vld [vmem:[%s5251_s6 + $0x68] sm:$0xff] }
0x172d   :  { %3834 = vmatprep.subr.bf16.mxu0 %v3833_v42 }
0x172e   :  { %3836 = vmatpush1.bf16.msra.mxu0 %v3835_v45  ;;  %v1720_v45 = vld [vmem:[%s5251_s6 + $0x70] sm:$0xff] }
0x1760   :  { %v1227_v46 = vpop.xlane.xlu1 %1226 }
0x1761   :  { %v1248_v47 = vmul.f32 0.03125, %v1227_v46 }
0x1763   :  { %v4607_v51 = vsub.f32 %v1215_v25, %v1248_v47 }
0x1764   :  { %v1236_v52 = vpop.xlane.xlu1 %1235 }
0x1765   :  { %v1251_v53 = vmul.f32 0.03125, %v1236_v52  ;;  %v1264_v54 = vmul.f32 %v4607_v51, %v4607_v51 }
0x1767   :  { %v4613_v56 = vsub.f32 %v1218_v27, %v1251_v53  ;;  %v1274_v57 = vsel %vm224_vm8, %v1264_v54, 0.0 }
0x1768   :  { %1275 = vadd.xlane.f32.xlu0 %v1274_v57  ;;  %v1242_v59 = vpop.xlane.xlu1 %1241 }
0x1769   :  { %v1253_v60 = vmul.f32 0.03125, %v1242_v59  ;;  %v1267_v61 = vmul.f32 %v4613_v56, %v4613_v56 }
0x176b   :  { %v4620_v62 = vsub.f32 %v1220_v28, %v1253_v60  ;;  %v1283_v0 = vsel %vm224_vm8, %v1267_v61, 0.0  ;;  %v4695_v60 = vld [vmem:[%s5253_s8 + $0x3] ss:$0 sm:$0xff] }
0x176c   :  { %1281 = vadd.xlane.f32.xlu0 %v1280_v63  ;;  %1284 = vadd.xlane.f32.xlu1 %v1283_v0 }
0x176d   :  { %v1269_v2 = vmul.f32 %v4620_v62, %v4620_v62 }
0x176f   :  { %v1289_v4 = vsel %vm224_vm8, %v1269_v2, 0.0  ;;  %v4701_v2 = vld [vmem:[%s5253_s8 + $0x4] ss:$0 sm:$0xff] }
0x1770   :  { %1287 = vadd.xlane.f32.xlu0 %v1286_v3  ;;  %1290 = vadd.xlane.f32.xlu1 %v1289_v4 }
0x1779   :  { %v1273_v13 = vpop.xlane.xlu1 %1272 }
0x177a   :  { %v1295_v31 = vmul.f32 0.03125, %v1273_v13 }
0x177c   :  { %v1303_v38 = vadd.f32 1e-05, %v1295_v31 }
0x177e   :  { %4067 = vrsqrt.f32 %v1303_v38  ;;  %v1716_v38 = vld [vmem:[%s5251_s6 + $0x50] sm:$0xff] }
0x177f   :  { %v4768_v42 = vpack.c.bf16 %v1716_v38, %v1714_v34 }
0x1781   :  { %1361 = vrot.lane.b32.xlu1 %v1345_v11, %s4283_s27  ;;  %v1706_v11 = vld [vmem:[%s5251_s6] sm:$0xff] }
0x1782   :  { %v4724_v20 = vpack.c.bf16 %v1708_v12, %v1706_v11 }
0x1785   :  { %1365 = vrot.lane.b32.xlu1 %v1347_v17, %s4283_s27 }
0x1786   :  { %1363 = vrot.lane.b32.xlu0 %v1346_v18, %s4283_s27 }
0x1788   :  { %v4068_v49 = vpop.eup %4067 }
0x1789   :  { %1367 = vrot.lane.b32.xlu1 %v1348_v22, %s4283_s27  ;;  %v1319_v57 = vmul.f32 %v4068_v49, %v4590_v30 }
0x178b   :  { %v1328_v0 = vmul.f32 %v4695_v60, %v1319_v57 }
0x178d   :  { %1371 = vrot.lane.b32.xlu1 %v1350_v23, %s4283_s27  ;;  %v1337_v3 = vadd.f32 %v4701_v2, %v1328_v0 }
0x1791   :  { %1375 = vrot.lane.b32.xlu1 %v1352_v24, %s4283_s27  ;;  %v1710_v24 = vld [vmem:[%s5251_s6 + $0x20] sm:$0xff] }
0x17b8   :  { %v1245_v25 = vpop.xlane.xlu0 %1244 }
0x17b9   :  { %v1254_v26 = vmul.f32 0.03125, %v1245_v25  ;;  %v1712_v25 = vld [vmem:[%s5251_s6 + $0x30] sm:$0xff] }
0x17ba   :  { %v4748_v13 = vpack.c.bf16 %v1712_v25, %v1710_v24 }
0x17bb   :  { %v4661_v27 = vsub.f32 %v4601_v41, %v1254_v26  ;;  %v1279_v41 = vpop.xlane.xlu1 %1278 }
0x17bc   :  { %v1297_v46 = vmul.f32 0.03125, %v1279_v41  ;;  %v1721_v41 = vld [vmem:[%s5251_s6 + $0x78] sm:$0xff] }
0x17bd   :  { %v1270_v8 = vmul.f32 %v4661_v27, %v4661_v27  ;;  %v4771_v43 = vpack.c.bf16 %v1721_v41, %v1719_v40 }
0x17be   :  { %v1305_v47 = vadd.f32 1e-05, %v1297_v46  ;;  %v4780_v46 = vpack.c.bf16 %v1720_v45, %v1718_v44  ;;  %v1544_v44 = vshrl.u32 %v44_v33, 7 }
0x17bf   :  { %v1292_v28 = vsel %vm224_vm8, %v1270_v8, 0.0 }
0x17c0   :  { %1293 = vadd.xlane.f32.xlu0 %v1292_v28  ;;  %4069 = vrsqrt.f32 %v1305_v47  ;;  %v1717_v28 = vld [vmem:[%s5251_s6 + $0x58] sm:$0xff]  ;;  %v1545_v45 = vsub.s32 0, %v1544_v44 }
0x17ca   :  { %v4070_v30 = vpop.eup %4069 }
0x17cb   :  { %v1321_v6 = vmul.f32 %v4070_v30, %v4594_v35  ;;  %v1711_v35 = vld [vmem:[%s5251_s6 + $0x28] sm:$0xff] }
0x17cd   :  { %v1330_v37 = vmul.f32 %v4695_v60, %v1321_v6 }
0x17cf   :  { %v1339_v22 = vadd.f32 %v4701_v2, %v1330_v37 }
0x17d6   :  { %1369 = vrot.lane.b32.xlu0 %v1349_v29, %s4283_s27 }
0x17da   :  { %1373 = vrot.lane.b32.xlu0 %v1351_v50, %s4283_s27 }
0x17f5   :  { %v1276_v52 = vpop.xlane.xlu0 %1275 }
0x17f6   :  { %v1296_v53 = vmul.f32 0.03125, %v1276_v52 }
0x17f8   :  { %v1304_v54 = vadd.f32 1e-05, %v1296_v53 }
0x17f9   :  { %v1282_v58 = vpop.xlane.xlu0 %1281  ;;  %v4690_v59 = vpop.xlane.xlu1 %1284 }
0x17fa   :  { %4071 = vrsqrt.f32 %v1304_v54  ;;  %v1298_v61 = vmul.f32 0.03125, %v1282_v58  ;;  %v1299_v49 = vmul.f32 0.03125, %v4690_v59 }
0x17fc   :  { %v1306_v63 = vadd.f32 1e-05, %v1298_v61  ;;  %v1307_v53 = vadd.f32 1e-05, %v1299_v49 }
0x17fd   :  { %v1291_v1 = vpop.xlane.xlu1 %1290  ;;  %v1288_v9 = vpop.xlane.xlu0 %1287 }
0x17fe   :  { %4073 = vrsqrt.f32 %v1306_v63  ;;  %v1300_v47 = vmul.f32 0.03125, %v1288_v9  ;;  %v1301_v54 = vmul.f32 0.03125, %v1291_v1 }
0x1800   :  { %v1308_v52 = vadd.f32 1e-05, %v1300_v47  ;;  %v1309_v57 = vadd.f32 1e-05, %v1301_v54  ;;  %v1549_v54 = vsub.s32 1, %v1544_v44 }
0x1801   :  { %v1362_v4 = vpop.permute.xlu1 %1361  ;;  %v1364_v21 = vpop.permute.xlu0 %1363  ;;  %v3373_v47 = vld [vmem:[%s5253_s8 + $0x7] ss:$8 sm:$0x3] }
0x1802   :  { %v1385_v5 = vsel %vm224_vm8, %v1337_v3, %v1362_v4  ;;  %4075 = vrsqrt.f32 %v1308_v52 }
0x1803   :  { %3689 = vmatprep.mubr.msk.f32.mxu1 %vm1402_vm11, %v1385_v5  ;;  %4077 = vrsqrt.f32 %v1307_v53  ;;  %v4857_v53 = vrot.slane %v3373_v47, %v1545_v45 }
0x1804   :  { %v4072_v7 = vpop.eup %4071  ;;  %4079 = vrsqrt.f32 %v1309_v57 }
0x1805   :  { %v1320_v10 = vmul.f32 %v4072_v7, %v4607_v51  ;;  %v1713_v51 = vld [vmem:[%s5251_s6 + $0x38] sm:$0xff]  ;;  %v1366_v17 = vpop.permute.xlu1 %1365 }
0x1806   :  { %v4727_v23 = vpack.c.bf16 %v1713_v51, %v1711_v35  ;;  %v1387_v29 = vsel %vm224_vm8, %v1339_v22, %v1366_v17  ;;  %v1539_v17 = vld [vmem:[%s5250_s5 + $0x38] sm:$0xff] }
0x1807   :  { %v1329_v14 = vmul.f32 %v4695_v60, %v1320_v10 }
0x1808   :  { %v4074_v16 = vpop.eup %4073 }
0x1809   :  { %v1338_v18 = vadd.f32 %v4701_v2, %v1329_v14  ;;  %v1322_v19 = vmul.f32 %v4074_v16, %v4605_v48  ;;  %v1715_v48 = vld [vmem:[%s5251_s6 + $0x48] sm:$0xff]  ;;  %v1368_v31 = vpop.permute.xlu1 %1367 }
0x180a   :  { %v4751_v32 = vpack.c.bf16 %v1717_v28, %v1715_v48  ;;  %v1537_v16 = vld [vmem:[%s5250_s5 + $0x28] sm:$0xff] }
0x180b   :  { %v1386_v26 = vsel %vm224_vm8, %v1338_v18, %v1364_v21  ;;  %v1331_v8 = vmul.f32 %v4695_v60, %v1322_v19  ;;  %v3837_v18 = vpack.c.bf16 %v1539_v17, %v1537_v16  ;;  %v1536_v19 = vld [vmem:[%s5250_s5 + $0x20] sm:$0xff]  ;;  %v1538_v21 = vld [vmem:[%s5250_s5 + $0x30] sm:$0xff] }
0x180c   :  { %3690 = vmatmul.mubr.msk.f32.vlgmr.msra.gmra.mrb[14].mxu1 %vm1402_vm11, %v1386_v26  ;;  %v4076_v58 = vpop.eup %4075 }
0x180d   :  { %v1340_v50 = vadd.f32 %v4701_v2, %v1331_v8  ;;  %3692 = vmatprep.mubr.msk.f32.mxu1 %vm1402_vm11, %v1387_v29  ;;  %3844 = vmatpush1.bf16.msra.mxu1 %v4724_v20  ;;  %v4078_v61 = vpop.eup %4077  ;;  %v1324_v63 = vmul.f32 %v4076_v58, %v4611_v55  ;;  %v1372_v55 = vpop.permute.xlu1 %1371  ;;  %v4859_v58 = vrot.slane %v3373_v47, %v1549_v54 }
0x180e   :  { %3846 = vmatprep.subr.bf16.mxu1 %v4727_v23  ;;  %v1323_v0 = vmul.f32 %v4078_v61, %v4613_v56  ;;  %v4080_v30 = vpop.eup %4079  ;;  %3838 = vmatprep.subr.bf16.mxu0 %v3837_v18 }
0x180f   :  { %v1388_v39 = vsel %vm224_vm8, %v1340_v50, %v1368_v31  ;;  %v1333_v3 = vmul.f32 %v4695_v60, %v1324_v63  ;;  %v1325_v59 = vmul.f32 %v4080_v30, %v4620_v62 }
0x1810   :  { %3693 = vmatmul.mubr.msk.f32.gmra.mrb[16].mxu1 %vm1402_vm11, %v1388_v39  ;;  %v1332_v4 = vmul.f32 %v4695_v60, %v1323_v0 }
0x1811   :  { %3848 = vmatpush1.bf16.msra.mxu1 %v4748_v13  ;;  %v1342_v1 = vadd.f32 %v4701_v2, %v1333_v3  ;;  %v1334_v10 = vmul.f32 %v4695_v60, %v1325_v59  ;;  %v1376_v25 = vpop.permute.xlu1 %1375  ;;  %v3364_v3 = vld [vmem:[%s5253_s8 + $0x6] ss:$8 sm:$0x3] }
0x1812   :  { %3850 = vmatprep.subr.bf16.mxu1 %v4751_v32  ;;  %v1341_v9 = vadd.f32 %v4701_v2, %v1332_v4  ;;  %v1546_v4 = vrot.slane %v3364_v3, %v1545_v45  ;;  %v1550_v59 = vrot.slane %v3364_v3, %v1549_v54 }
0x1813   :  { %v1390_v11 = vsel %vm224_vm8, %v1342_v1, %v1372_v55  ;;  %v1343_v62 = vadd.f32 %v4701_v2, %v1334_v10 }
0x1815   :  { %3852 = vmatpush1.bf16.msra.mxu1 %v4768_v42 }
0x1816   :  { %3854 = vmatprep.subr.bf16.mxu1 %v4771_v43 }
0x1819   :  { %3856 = vmatpush1.bf16.msra.mxu1 %v4780_v46 }
0x181a   :  { %3874 = vmatprep.subr.bf16.mxu1 %v4674_v36 }
0x184d   :  { %v1294_v5 = vpop.xlane.xlu0 %1293 }
0x184e   :  { %v1302_v6 = vmul.f32 0.03125, %v1294_v5 }
0x1850   :  { %v1310_v7 = vadd.f32 1e-05, %v1302_v6 }
0x1851   :  { %v1370_v37 = vpop.permute.xlu0 %1369 }
0x1852   :  { %4081 = vrsqrt.f32 %v1310_v7  ;;  %v1389_v56 = vsel %vm224_vm8, %v1341_v9, %v1370_v37 }
0x1853   :  { %3695 = vmatprep.mubr.msk.f32.mxu1 %vm1402_vm11, %v1389_v56 }
0x1854   :  { %3696 = vmatmul.mubr.msk.f32.gmra.mrb[18].mxu1 %vm1402_vm11, %v1390_v11 }
0x1855   :  { %v1374_v12 = vpop.permute.xlu0 %1373 }
0x1856   :  { %v1391_v14 = vsel %vm224_vm8, %v1343_v62, %v1374_v12 }
0x1857   :  { %3698 = vmatprep.mubr.msk.f32.mxu1 %vm1402_vm11, %v1391_v14 }
0x185c   :  { %v4082_v35 = vpop.eup %4081 }
0x185d   :  { %v1326_v51 = vmul.f32 %v4082_v35, %v4661_v27  ;;  %v3839_v27 = vpack.c.bf16 %v1538_v21, %v1536_v19 }
0x185f   :  { %v1335_v22 = vmul.f32 %v4695_v60, %v1326_v51  ;;  %3840 = vmatpush1.bf16.msra.mxu0 %v3839_v27  ;;  %v1401_v60 = vld [vmem:[%s5253_s8 + $0x5] ss:$0 sm:$0xff] }
0x1860   :  { %3858 = vmatprep.subr.bf16.mxu0 %v4674_v36 }
0x1861   :  { %v1344_v24 = vadd.f32 %v4701_v2, %v1335_v22 }
0x1863   :  { %v1392_v26 = vsel %vm224_vm8, %v1344_v24, %v1376_v25 }
0x1864   :  { %3699 = vmatmul.mubr.msk.f32.gmra.mrb[20].mxu1 %vm1402_vm11, %v1392_v26 }
0x1865   :  { %1801 = vmatprep.mubr.f32.mxu1 %v4280_v15 }
0x1868   :  { %1802 = vmatmul.mubr.f32.vlgmr.msra.gmra.mrb[22].mxu1 %v4280_v15 }
0x1869   :  { %3876 = vmatpush1.bf16.msra.mxu1 %v4724_v20  ;;  %2101 = vmatprep.mubr.f32.mxu1 %v4280_v15 }
0x186a   :  { %3878 = vmatprep.subr.bf16.mxu1 %v4727_v23 }
0x186d   :  { %3880 = vmatpush1.bf16.msra.mxu1 %v4748_v13 }
0x186e   :  { %3882 = vmatprep.subr.bf16.mxu1 %v4751_v32 }
0x1871   :  { %3884 = vmatpush1.bf16.msra.mxu1 %v4768_v42 }
0x1872   :  { %3886 = vmatprep.subr.bf16.mxu1 %v4771_v43 }
0x1875   :  { %3888 = vmatpush1.bf16.msra.mxu1 %v4780_v46 }
0x1876   :  { %3906 = vmatprep.subr.bf16.mxu1 %v4674_v36 }
0x18df   :  { %v3691_v2 = vpop.f32.mrb[14].mxu1 }
0x18e0   :  { %v1493_v8 = vpop.f32.mrb[15].mxu1  ;;  %v1499_v50 = vadd.f32 %v3691_v2, %v1401_v60 }
0x18e1   :  { %v1494_v48 = vadd.f32 %v1493_v8, %v1401_v60 }
0x18e3   :  { %v3694_v28 = vpop.f32.mrb[16].mxu1  ;;  %3365 = vmatmul.mubr.msk.f32.vlgmr.msra.gmra.mrb[18].mxu0 %vm224_vm8, %v1494_v48 }
0x18e4   :  { %v1503_v29 = vpop.f32.mrb[17].mxu1  ;;  %1647 = vmatprep.mubr.f32.mxu0 %v4280_v15  ;;  %3860 = vmatpush1.bf16.msra.mxu0 %v4724_v20  ;;  %v1509_v34 = vadd.f32 %v3694_v28, %v1401_v60 }
0x18e5   :  { %3862 = vmatprep.subr.bf16.mxu0 %v4727_v23  ;;  %v1504_v31 = vadd.f32 %v1503_v29, %v1401_v60 }
0x18e7   :  { %3366 = vmatmul.mubr.msk.f32.gmra.mrb[20].mxu0 %vm224_vm8, %v1499_v50 }
0x18e8   :  { %1653 = vmatprep.mubr.f32.mxu0 %v4280_v15  ;;  %3864 = vmatpush1.bf16.msra.mxu0 %v4748_v13 }
0x18e9   :  { %3866 = vmatprep.subr.bf16.mxu0 %v4751_v32 }
0x18eb   :  { %3367 = vmatmul.mubr.msk.f32.gmra.mrb[22].mxu0 %vm224_vm8, %v1504_v31 }
0x18ec   :  { %1659 = vmatprep.mubr.f32.mxu0 %v4280_v15  ;;  %3868 = vmatpush1.bf16.msra.mxu0 %v4768_v42 }
0x18ed   :  { %3870 = vmatprep.subr.bf16.mxu0 %v4771_v43 }
0x18ef   :  { %3368 = vmatmul.mubr.msk.f32.gmra.mrb[24].mxu0 %vm224_vm8, %v1509_v34 }
0x18f0   :  { %1665 = vmatprep.mubr.f32.mxu0 %v4280_v15  ;;  %3872 = vmatpush1.bf16.msra.mxu0 %v4780_v46 }
0x18f1   :  { %3890 = vmatprep.subr.bf16.mxu0 %v4674_v36 }
0x1927   :  { %v3697_v38 = vpop.f32.mrb[18].mxu1 }
0x1928   :  { %v1513_v39 = vpop.f32.mrb[19].mxu1  ;;  %v1519_v41 = vadd.f32 %v3697_v38, %v1401_v60 }
0x1929   :  { %v1514_v40 = vadd.f32 %v1513_v39, %v1401_v60 }
0x192b   :  { %3369 = vmatmul.mubr.msk.f32.gmra.mrb[26].mxu0 %vm224_vm8, %v1514_v40 }
0x192c   :  { %1671 = vmatprep.mubr.f32.mxu0 %v4280_v15 }
0x192f   :  { %3370 = vmatmul.mubr.msk.f32.gmra.mrb[28].mxu0 %vm224_vm8, %v1519_v41 }
0x1930   :  { %1677 = vmatprep.mubr.f32.mxu0 %v4280_v15 }
0x1937   :  { %v3700_v49 = vpop.f32.mrb[20].mxu1 }
0x1938   :  { %v1523_v52 = vpop.f32.mrb[21].mxu1  ;;  %v1529_v0 = vadd.f32 %v3700_v49, %v1401_v60 }
0x1939   :  { %v1524_v57 = vadd.f32 %v1523_v52, %v1401_v60 }
0x193b   :  { %3371 = vmatmul.mubr.msk.f32.gmra.mrb[30].mxu0 %vm224_vm8, %v1524_v57  ;;  %v1803_v61 = vpop.f32.mrb[22].mxu1 }
0x193c   :  { %1683 = vmatprep.mubr.f32.mxu0 %v4280_v15  ;;  %v1804_v33 = vadd.f32 %v1803_v61, %v4857_v53  ;;  %v1805_v63 = vpop.f32.mrb[23].mxu1 }
0x193d   :  { %v4865_v30 = vadd.f32 %v1805_v63, %v4859_v58 }
0x193e   :  { %1817 = vrot.lane.b32.xlu0 %v1804_v33, %s4281_s18 }
0x193f   :  { %3372 = vmatmul.mubr.msk.f32.gmra.mrb[32].mxu0 %vm224_vm8, %v1529_v0  ;;  %1852 = vrot.lane.b32.xlu1 %v4865_v30, %s4281_s18 }
0x1940   :  { %1948 = vmatprep.mubr.f32.mxu0 %v4280_v15 }
0x19b0   :  { %v1818_v22 = vpop.permute.xlu0 %1817 }
0x19b1   :  { %v1853_v54 = vpop.permute.xlu1 %1852 }
0x19b6   :  { %v1643_v5 = vpop.f32.mrb[18].mxu0 }
0x19b7   :  { %v1644_v6 = vadd.f32 %v1643_v5, %v1546_v4  ;;  %v1645_v1 = vpop.f32.mrb[19].mxu0 }
0x19b8   :  { %v1646_v7 = vadd.f32 %v1645_v1, %v1550_v59 }
0x19b9   :  { %1690 = vst [vmem:[#allocation5] sm:$0xff] %v1644_v6  ;;  %v1809_v9 = vadd.f32 %v1804_v33, %v1644_v6 }
0x19ba   :  { %1691 = vst.msk [vmem:[#allocation5 + $0x8] sm:$0xff] %vm1402_vm11, %v1646_v7  ;;  %v1649_v10 = vpop.f32.mrb[20].mxu0 }
0x19bb   :  { %v4876_v37 = vadd.f32 %v1649_v10, %v1546_v4  ;;  %v1651_v55 = vpop.f32.mrb[21].mxu0  ;;  %v3374_v56 = vmul.f32 -1.442695, %v1809_v9 }
0x19bc   :  { %v1652_v11 = vadd.f32 %v1651_v55, %v1550_v59 }
0x19bd   :  { %4083 = vpow2.f32 %v3374_v56 }
0x19be   :  { %1693 = vst.msk [vmem:[#allocation5 + $0x18] sm:$0xff] %vm1402_vm11, %v1652_v11  ;;  %v1655_v62 = vpop.f32.mrb[22].mxu0 }
0x19bf   :  { %v4879_v12 = vadd.f32 %v1655_v62, %v1546_v4  ;;  %v1657_v14 = vpop.f32.mrb[23].mxu0 }
0x19c0   :  { %v1658_v35 = vadd.f32 %v1657_v14, %v1550_v59 }
0x19c2   :  { %1695 = vst.msk [vmem:[#allocation5 + $0x28] sm:$0xff] %vm1402_vm11, %v1658_v35  ;;  %v1661_v51 = vpop.f32.mrb[24].mxu0 }
0x19c3   :  { %v4882_v16 = vadd.f32 %v1661_v51, %v1546_v4  ;;  %v1663_v17 = vpop.f32.mrb[25].mxu0 }
0x19c4   :  { %v1664_v18 = vadd.f32 %v1663_v17, %v1550_v59 }
0x19c6   :  { %1697 = vst.msk [vmem:[#allocation5 + $0x38] sm:$0xff] %vm1402_vm11, %v1664_v18 }
0x19c7   :  { %v4084_v19 = vpop.eup %4083 }
0x19c8   :  { %v1813_v21 = vadd.f32 1.0, %v4084_v19 }
0x19ca   :  { %4085 = vrcp.f32 %v1813_v21 }
0x19d4   :  { %v4086_v27 = vpop.eup %4085 }
0x19d5   :  { %v1820_v24 = vmul.f32 %v4086_v27, %v1818_v22  ;;  %v1827_v1 = vsub.f32 1.0, %v4086_v27  ;;  %v1833_v9 = vmul.f32 0.0, %v4086_v27 }
0x19d7   :  { %1822 = vrot.lane.b32.xlu0 %v1820_v24, %s4281_s18 }
0x19fe   :  { %v1667_v25 = vpop.f32.mrb[26].mxu0 }
0x19ff   :  { %v4886_v26 = vadd.f32 %v1667_v25, %v1546_v4  ;;  %v1669_v60 = vpop.f32.mrb[27].mxu0 }
0x1a00   :  { %v1670_v2 = vadd.f32 %v1669_v60, %v1550_v59 }
0x1a02   :  { %1699 = vst.msk [vmem:[#allocation5 + $0x48] sm:$0xff] %vm1402_vm11, %v1670_v2  ;;  %v1673_v8 = vpop.f32.mrb[28].mxu0 }
0x1a03   :  { %v4889_v48 = vadd.f32 %v1673_v8, %v1546_v4  ;;  %v1675_v28 = vpop.f32.mrb[29].mxu0 }
0x1a04   :  { %v1676_v29 = vadd.f32 %v1675_v28, %v1550_v59 }
0x1a06   :  { %1701 = vst.msk [vmem:[#allocation5 + $0x58] sm:$0xff] %vm1402_vm11, %v1676_v29 }
0x1a0e   :  { %v1679_v50 = vpop.f32.mrb[30].mxu0 }
0x1a0f   :  { %v4892_v31 = vadd.f32 %v1679_v50, %v1546_v4  ;;  %v1681_v34 = vpop.f32.mrb[31].mxu0 }
0x1a10   :  { %v1682_v38 = vadd.f32 %v1681_v34, %v1550_v59 }
0x1a12   :  { %1703 = vst.msk [vmem:[#allocation5 + $0x68] sm:$0xff] %vm1402_vm11, %v1682_v38  ;;  %v1685_v39 = vpop.f32.mrb[32].mxu0 }
0x1a13   :  { %v4895_v40 = vadd.f32 %v1685_v39, %v1546_v4  ;;  %v1687_v41 = vpop.f32.mrb[33].mxu0 }
0x1a14   :  { %v1688_v44 = vadd.f32 %v1687_v41, %v1550_v59 }
0x1a15   :  { %1704 = vst [vmem:[#allocation5 + $0x70] sm:$0xff] %v4895_v40  ;;  %v1837_v45 = vadd.f32 %v1804_v33, %v4895_v40 }
0x1a16   :  { %1705 = vst.msk [vmem:[#allocation5 + $0x78] sm:$0xff] %vm1402_vm11, %v1688_v44 }
0x1a17   :  { %v3375_v47 = vmul.f32 -1.442695, %v1837_v45 }
0x1a19   :  { %4087 = vpow2.f32 %v3375_v47 }
0x1a1d   :  { %v1836_v4 = vld [vmem:[#allocation5 + $0x78] sm:$0xff] }
0x1a23   :  { %v4088_v49 = vpop.eup %4087 }
0x1a24   :  { %v1841_v52 = vadd.f32 1.0, %v4088_v49 }
0x1a26   :  { %4089 = vrcp.f32 %v1841_v52 }
0x1a30   :  { %v4090_v57 = vpop.eup %4089 }
0x1a31   :  { %v1855_v61 = vmul.f32 %v4090_v57, %v1853_v54 }
0x1a33   :  { %1857 = vrot.lane.b32.xlu1 %v1855_v61, %s4281_s18 }
0x1a49   :  { %v1823_v63 = vpop.permute.xlu0 %1822 }
0x1a4a   :  { %v1825_v0 = vadd.f32 %v1823_v63, %v1644_v6  ;;  %v1844_v6 = vadd.f32 %v1836_v4, %v4865_v30  ;;  %v1986_v63 = vld [vmem:[#allocation5 + $0x68] sm:$0xff] }
0x1a4c   :  { %4091 = vtanh.f32 %v1825_v0  ;;  %v3376_v56 = vmul.f32 -1.442695, %v1844_v6 }
0x1a56   :  { %v4092_v3 = vpop.eup %4091 }
0x1a57   :  { %1829 = vrot.lane.b32.xlu0 %v4092_v3, %s4282_s19 }
0x1aa5   :  { %v1858_v33 = vpop.permute.xlu1 %1857 }
0x1aa6   :  { %v1860_v59 = vadd.f32 %v1858_v33, %v1836_v4 }
0x1aa8   :  { %4093 = vtanh.f32 %v1860_v59 }
0x1aa9   :  { %4095 = vpow2.f32 %v3376_v56 }
0x1ab2   :  { %v4094_v5 = vpop.eup %4093 }
0x1ab3   :  { %1864 = vrot.lane.b32.xlu1 %v4094_v5, %s4282_s19  ;;  %v4096_v11 = vpop.eup %4095 }
0x1ab4   :  { %v1848_v62 = vadd.f32 1.0, %v4096_v11 }
0x1ab6   :  { %4097 = vrcp.f32 %v1848_v62 }
0x1ac0   :  { %v4098_v14 = vpop.eup %4097 }
0x1ac1   :  { %v1862_v35 = vsub.f32 1.0, %v4098_v14  ;;  %v1868_v17 = vmul.f32 0.0, %v4098_v14 }
0x1ac9   :  { %v1830_v7 = vpop.permute.xlu0 %1829 }
0x1aca   :  { %v1832_v10 = vmul.f32 %v1830_v7, %v1827_v1 }
0x1acc   :  { %v1834_v55 = vadd.f32 %v1833_v9, %v1832_v10 }
0x1ace   :  { %1871 = vrot.lane.b32.xlu0 %v1834_v55, %s4282_s19 }
0x1b25   :  { %v1865_v51 = vpop.permute.xlu1 %1864 }
0x1b26   :  { %v1867_v18 = vmul.f32 %v1865_v51, %v1862_v35 }
0x1b28   :  { %v1869_v19 = vadd.f32 %v1868_v17, %v1867_v18 }
0x1b2a   :  { %1875 = vst.msk [vmem:[#allocation7 + $0x38] sm:$0xff] %vm224_vm8, %v1869_v19  ;;  %1877 = vrot.lane.b32.xlu1 %v1869_v19, %s4283_s27 }
0x1b40   :  { %v1872_v21 = vpop.permute.xlu0 %1871 }
0x1b41   :  { %1874 = vst.msk [vmem:[#allocation6] sm:$0xff] %vm224_vm8, %v1872_v21 }
0x1b9c   :  { %v1878_v22 = vpop.permute.xlu1 %1877 }
0x1b9d   :  { %v1880_v30 = vsel %vm224_vm8, %v1872_v21, %v1878_v22 }
0x1b9e   :  { %3377 = vmatmul.mubr.msk.f32.vlgmr.msra.gmra.mrb[34].mxu0 %vm1402_vm11, %v1880_v30 }
0x1b9f   :  { %3892 = vmatpush1.bf16.msra.mxu0 %v4724_v20  ;;  %2254 = vmatprep.mubr.f32.mxu0 %v4280_v15 }
0x1ba0   :  { %3894 = vmatprep.subr.bf16.mxu0 %v4727_v23 }
0x1ba3   :  { %3896 = vmatpush1.bf16.msra.mxu0 %v4748_v13 }
0x1ba4   :  { %3898 = vmatprep.subr.bf16.mxu0 %v4751_v32 }
0x1ba7   :  { %3900 = vmatpush1.bf16.msra.mxu0 %v4768_v42 }
0x1ba8   :  { %3902 = vmatprep.subr.bf16.mxu0 %v4771_v43 }
0x1bab   :  { %3904 = vmatpush1.bf16.msra.mxu0 %v4780_v46 }
0x1bac   :  { %3922 = vmatprep.subr.bf16.mxu0 %v4674_v36 }
0x1c71   :  { %v1950_v27 = vpop.f32.mrb[34].mxu0 }
0x1c72   :  { %v1951_v24 = vadd.f32 %v1950_v27, %v4857_v53  ;;  %v1952_v25 = vpop.f32.mrb[35].mxu0 }
0x1c73   :  { %v1953_v60 = vadd.f32 %v1952_v25, %v4859_v58 }
0x1c74   :  { %1964 = vrot.lane.b32.xlu0 %v1951_v24, %s4281_s18  ;;  %v1956_v2 = vadd.f32 %v1951_v24, %v4876_v37  ;;  %v1987_v8 = vadd.f32 %v1951_v24, %v4892_v31 }
0x1c75   :  { %2002 = vrot.lane.b32.xlu1 %v1953_v60, %s4281_s18  ;;  %v1994_v33 = vadd.f32 %v1986_v63, %v1953_v60 }
0x1c76   :  { %v3378_v28 = vmul.f32 -1.442695, %v1956_v2  ;;  %v3379_v29 = vmul.f32 -1.442695, %v1987_v8 }
0x1c77   :  { %v3380_v59 = vmul.f32 -1.442695, %v1994_v33 }
0x1c78   :  { %4099 = vpow2.f32 %v3378_v28 }
0x1c79   :  { %4101 = vpow2.f32 %v3379_v29 }
0x1c82   :  { %v4100_v50 = vpop.eup %4099 }
0x1c83   :  { %v4102_v34 = vpop.eup %4101  ;;  %v1960_v38 = vadd.f32 1.0, %v4100_v50 }
0x1c84   :  { %v1991_v39 = vadd.f32 1.0, %v4102_v34 }
0x1c85   :  { %4103 = vrcp.f32 %v1960_v38 }
0x1c86   :  { %4105 = vrcp.f32 %v1991_v39 }
0x1c8f   :  { %v4104_v41 = vpop.eup %4103 }
0x1c90   :  { %v4106_v45 = vpop.eup %4105  ;;  %v1974_v9 = vsub.f32 1.0, %v4104_v41 }
0x1ce6   :  { %v1965_v44 = vpop.permute.xlu0 %1964 }
0x1ce7   :  { %v1967_v47 = vmul.f32 %v4104_v41, %v1965_v44  ;;  %v2003_v49 = vpop.permute.xlu1 %2002 }
0x1ce8   :  { %v2005_v52 = vmul.f32 %v4106_v45, %v2003_v49 }
0x1ce9   :  { %1969 = vrot.lane.b32.xlu0 %v1967_v47, %s4281_s18 }
0x1cea   :  { %2007 = vrot.lane.b32.xlu1 %v2005_v52, %s4281_s18 }
0x1cee   :  { %1980 = vrot.lane.b32.xlu1 %v1880_v30, %s4283_s27 }
0x1cf2   :  { %2018 = vrot.lane.b32.xlu1 %v1880_v30, %s4282_s19 }
0x1d5b   :  { %v1970_v54 = vpop.permute.xlu0 %1969 }
0x1d5c   :  { %v1972_v57 = vadd.f32 %v1970_v54, %v4876_v37  ;;  %v2008_v61 = vpop.permute.xlu1 %2007 }
0x1d5d   :  { %v2010_v0 = vadd.f32 %v2008_v61, %v1986_v63  ;;  %v2139_v61 = vld [vmem:[#allocation5 + $0x58] sm:$0xff] }
0x1d5e   :  { %4107 = vtanh.f32 %v1972_v57 }
0x1d5f   :  { %4109 = vtanh.f32 %v2010_v0 }
0x1d60   :  { %4111 = vpow2.f32 %v3380_v59  ;;  %v1981_v7 = vpop.permute.xlu1 %1980 }
0x1d61   :  { %v1983_v6 = vmul.f32 %v4104_v41, %v1981_v7 }
0x1d64   :  { %v2019_v11 = vpop.permute.xlu1 %2018 }
0x1d68   :  { %v4108_v3 = vpop.eup %4107 }
0x1d69   :  { %1976 = vrot.lane.b32.xlu0 %v4108_v3, %s4282_s19  ;;  %v4110_v4 = vpop.eup %4109 }
0x1d6a   :  { %v4112_v5 = vpop.eup %4111 }
0x1d6b   :  { %v1998_v1 = vadd.f32 1.0, %v4112_v5 }
0x1d6d   :  { %2014 = vrot.lane.b32.xlu0 %v4110_v4, %s4282_s19  ;;  %4113 = vrcp.f32 %v1998_v1 }
0x1d77   :  { %v4114_v10 = vpop.eup %4113 }
0x1d78   :  { %v2012_v14 = vsub.f32 1.0, %v4114_v10  ;;  %v2021_v51 = vmul.f32 %v4114_v10, %v2019_v11 }
0x1ddb   :  { %v1977_v55 = vpop.permute.xlu0 %1976 }
0x1ddc   :  { %v1979_v56 = vmul.f32 %v1977_v55, %v1974_v9 }
0x1dde   :  { %v1984_v62 = vadd.f32 %v1983_v6, %v1979_v56 }
0x1ddf   :  { %v2015_v35 = vpop.permute.xlu0 %2014 }
0x1de0   :  { %v2017_v17 = vmul.f32 %v2015_v35, %v2012_v14  ;;  %2024 = vrot.lane.b32.xlu0 %v1984_v62, %s4282_s19 }
0x1de2   :  { %v2022_v18 = vadd.f32 %v2021_v51, %v2017_v17 }
0x1de4   :  { %2028 = vst.msk [vmem:[#allocation7 + $0x30] sm:$0xff] %vm224_vm8, %v2022_v18  ;;  %2030 = vrot.lane.b32.xlu1 %v2022_v18, %s4283_s27 }
0x1e52   :  { %v2025_v19 = vpop.permute.xlu0 %2024 }
0x1e53   :  { %2027 = vst.msk [vmem:[#allocation6 + $0x8] sm:$0xff] %vm224_vm8, %v2025_v19 }
0x1e56   :  { %v2031_v21 = vpop.permute.xlu1 %2030 }
0x1e57   :  { %v2033_v22 = vsel %vm224_vm8, %v2025_v19, %v2031_v21 }
0x1e58   :  { %3381 = vmatmul.mubr.msk.f32.vlgmr.msra.gmra.mrb[24].mxu1 %vm1402_vm11, %v2033_v22 }
0x1e59   :  { %3908 = vmatpush1.bf16.msra.mxu1 %v4724_v20  ;;  %2407 = vmatprep.mubr.f32.mxu1 %v4280_v15 }
0x1e5a   :  { %3910 = vmatprep.subr.bf16.mxu1 %v4727_v23 }
0x1e5d   :  { %3912 = vmatpush1.bf16.msra.mxu1 %v4748_v13 }
0x1e5e   :  { %3914 = vmatprep.subr.bf16.mxu1 %v4751_v32 }
0x1e61   :  { %3916 = vmatpush1.bf16.msra.mxu1 %v4768_v42 }
0x1e62   :  { %3918 = vmatprep.subr.bf16.mxu1 %v4771_v43 }
0x1e65   :  { %3920 = vmatpush1.bf16.msra.mxu1 %v4780_v46 }
0x1e66   :  { %3938 = vmatprep.subr.bf16.mxu1 %v4674_v36 }
0x1f2b   :  { %v2103_v30 = vpop.f32.mrb[24].mxu1 }
0x1f2c   :  { %v2104_v27 = vadd.f32 %v2103_v30, %v4857_v53  ;;  %v2105_v24 = vpop.f32.mrb[25].mxu1 }
0x1f2d   :  { %v2106_v25 = vadd.f32 %v2105_v24, %v4859_v58 }
0x1f2e   :  { %2117 = vrot.lane.b32.xlu0 %v2104_v27, %s4281_s18  ;;  %v2109_v60 = vadd.f32 %v2104_v27, %v4879_v12  ;;  %v2140_v2 = vadd.f32 %v2104_v27, %v4889_v48 }
0x1f2f   :  { %2155 = vrot.lane.b32.xlu1 %v2106_v25, %s4281_s18  ;;  %v2147_v4 = vadd.f32 %v2139_v61, %v2106_v25 }
0x1f30   :  { %v3382_v8 = vmul.f32 -1.442695, %v2109_v60  ;;  %v3383_v28 = vmul.f32 -1.442695, %v2140_v2 }
0x1f31   :  { %v3384_v33 = vmul.f32 -1.442695, %v2147_v4 }
0x1f32   :  { %4115 = vpow2.f32 %v3382_v8 }
0x1f33   :  { %4117 = vpow2.f32 %v3383_v28 }
0x1f3c   :  { %v4116_v29 = vpop.eup %4115 }
0x1f3d   :  { %v4118_v50 = vpop.eup %4117  ;;  %v2113_v34 = vadd.f32 1.0, %v4116_v29 }
0x1f3e   :  { %v2144_v38 = vadd.f32 1.0, %v4118_v50 }
0x1f3f   :  { %4119 = vrcp.f32 %v2113_v34 }
0x1f40   :  { %4121 = vrcp.f32 %v2144_v38 }
0x1f49   :  { %v4120_v39 = vpop.eup %4119 }
0x1f4a   :  { %v4122_v44 = vpop.eup %4121  ;;  %v2127_v7 = vsub.f32 1.0, %v4120_v39 }
0x1fa0   :  { %v2118_v41 = vpop.permute.xlu0 %2117 }
0x1fa1   :  { %v2120_v45 = vmul.f32 %v4120_v39, %v2118_v41  ;;  %v2156_v47 = vpop.permute.xlu1 %2155 }
0x1fa2   :  { %v2158_v49 = vmul.f32 %v4122_v44, %v2156_v47 }
0x1fa3   :  { %2122 = vrot.lane.b32.xlu0 %v2120_v45, %s4281_s18 }
0x1fa4   :  { %2160 = vrot.lane.b32.xlu1 %v2158_v49, %s4281_s18 }
0x1fa8   :  { %2133 = vrot.lane.b32.xlu1 %v2033_v22, %s4283_s27 }
0x1fac   :  { %2171 = vrot.lane.b32.xlu1 %v2033_v22, %s4282_s19 }
0x2015   :  { %v2123_v52 = vpop.permute.xlu0 %2122 }
0x2016   :  { %v2125_v54 = vadd.f32 %v2123_v52, %v4879_v12  ;;  %v2161_v57 = vpop.permute.xlu1 %2160 }
0x2017   :  { %v2163_v63 = vadd.f32 %v2161_v57, %v2139_v61 }
0x2018   :  { %4123 = vtanh.f32 %v2125_v54  ;;  %v2292_v54 = vld [vmem:[#allocation5 + $0x48] sm:$0xff] }
0x2019   :  { %4125 = vtanh.f32 %v2163_v63 }
0x201a   :  { %4127 = vpow2.f32 %v3384_v33  ;;  %v2134_v1 = vpop.permute.xlu1 %2133 }
0x201b   :  { %v2136_v55 = vmul.f32 %v4120_v39, %v2134_v1 }
0x201e   :  { %v2172_v56 = vpop.permute.xlu1 %2171 }
0x2022   :  { %v4124_v0 = vpop.eup %4123 }
0x2023   :  { %2129 = vrot.lane.b32.xlu0 %v4124_v0, %s4282_s19  ;;  %v4126_v3 = vpop.eup %4125 }
0x2024   :  { %v4128_v59 = vpop.eup %4127 }
0x2025   :  { %v2151_v5 = vadd.f32 1.0, %v4128_v59 }
0x2027   :  { %2167 = vrot.lane.b32.xlu0 %v4126_v3, %s4282_s19  ;;  %4129 = vrcp.f32 %v2151_v5 }
0x2031   :  { %v4130_v9 = vpop.eup %4129 }
0x2032   :  { %v2165_v62 = vsub.f32 1.0, %v4130_v9  ;;  %v2174_v35 = vmul.f32 %v4130_v9, %v2172_v56 }
0x2095   :  { %v2130_v10 = vpop.permute.xlu0 %2129 }
0x2096   :  { %v2132_v6 = vmul.f32 %v2130_v10, %v2127_v7 }
0x2098   :  { %v2137_v11 = vadd.f32 %v2136_v55, %v2132_v6 }
0x2099   :  { %v2168_v14 = vpop.permute.xlu0 %2167 }
0x209a   :  { %v2170_v51 = vmul.f32 %v2168_v14, %v2165_v62  ;;  %2177 = vrot.lane.b32.xlu0 %v2137_v11, %s4282_s19 }
0x209c   :  { %v2175_v17 = vadd.f32 %v2174_v35, %v2170_v51 }
0x209e   :  { %2181 = vst.msk [vmem:[#allocation7 + $0x28] sm:$0xff] %vm224_vm8, %v2175_v17  ;;  %2183 = vrot.lane.b32.xlu1 %v2175_v17, %s4283_s27 }
0x210c   :  { %v2178_v18 = vpop.permute.xlu0 %2177 }
0x210d   :  { %2180 = vst.msk [vmem:[#allocation6 + $0x10] sm:$0xff] %vm224_vm8, %v2178_v18 }
0x2110   :  { %v2184_v19 = vpop.permute.xlu1 %2183 }
0x2111   :  { %v2186_v21 = vsel %vm224_vm8, %v2178_v18, %v2184_v19 }
0x2112   :  { %3385 = vmatmul.mubr.msk.f32.vlgmr.msra.gmra.mrb[36].mxu0 %vm1402_vm11, %v2186_v21 }
0x2113   :  { %3924 = vmatpush1.bf16.msra.mxu0 %v4724_v20  ;;  %2560 = vmatprep.mubr.f32.mxu0 %v4280_v15 }
0x2114   :  { %3926 = vmatprep.subr.bf16.mxu0 %v4727_v23 }
0x2117   :  { %3928 = vmatpush1.bf16.msra.mxu0 %v4748_v13 }
0x2118   :  { %3930 = vmatprep.subr.bf16.mxu0 %v4751_v32 }
0x211b   :  { %3932 = vmatpush1.bf16.msra.mxu0 %v4768_v42 }
0x211c   :  { %3934 = vmatprep.subr.bf16.mxu0 %v4771_v43 }
0x211f   :  { %3936 = vmatpush1.bf16.msra.mxu0 %v4780_v46 }
0x2120   :  { %3954 = vmatprep.subr.bf16.mxu0 %v4674_v36 }
0x21e5   :  { %v2256_v22 = vpop.f32.mrb[36].mxu0 }
0x21e6   :  { %v2257_v30 = vadd.f32 %v2256_v22, %v4857_v53  ;;  %v2258_v27 = vpop.f32.mrb[37].mxu0 }
0x21e7   :  { %v2259_v24 = vadd.f32 %v2258_v27, %v4859_v58 }
0x21e8   :  { %2270 = vrot.lane.b32.xlu0 %v2257_v30, %s4281_s18  ;;  %v2262_v25 = vadd.f32 %v2257_v30, %v4882_v16  ;;  %v2293_v60 = vadd.f32 %v2257_v30, %v4886_v26 }
0x21e9   :  { %2308 = vrot.lane.b32.xlu1 %v2259_v24, %s4281_s18  ;;  %v2300_v0 = vadd.f32 %v2292_v54, %v2259_v24 }
0x21ea   :  { %v3386_v2 = vmul.f32 -1.442695, %v2262_v25  ;;  %v3387_v8 = vmul.f32 -1.442695, %v2293_v60 }
0x21eb   :  { %v3388_v3 = vmul.f32 -1.442695, %v2300_v0 }
0x21ec   :  { %4131 = vpow2.f32 %v3386_v2 }
0x21ed   :  { %4133 = vpow2.f32 %v3387_v8 }
0x21f6   :  { %v4132_v28 = vpop.eup %4131 }
0x21f7   :  { %v4134_v36 = vpop.eup %4133  ;;  %v2266_v29 = vadd.f32 1.0, %v4132_v28 }
0x21f8   :  { %v2297_v50 = vadd.f32 1.0, %v4134_v36 }
0x21f9   :  { %4135 = vrcp.f32 %v2266_v29 }
0x21fa   :  { %4137 = vrcp.f32 %v2297_v50 }
0x2203   :  { %v4136_v34 = vpop.eup %4135 }
0x2204   :  { %v4138_v39 = vpop.eup %4137  ;;  %v2280_v5 = vsub.f32 1.0, %v4136_v34 }
0x225a   :  { %v2271_v38 = vpop.permute.xlu0 %2270 }
0x225b   :  { %v2273_v41 = vmul.f32 %v4136_v34, %v2271_v38  ;;  %v2309_v44 = vpop.permute.xlu1 %2308 }
0x225c   :  { %v2311_v45 = vmul.f32 %v4138_v39, %v2309_v44 }
0x225d   :  { %2275 = vrot.lane.b32.xlu0 %v2273_v41, %s4281_s18 }
0x225e   :  { %2313 = vrot.lane.b32.xlu1 %v2311_v45, %s4281_s18 }
0x2262   :  { %2286 = vrot.lane.b32.xlu1 %v2186_v21, %s4283_s27 }
0x2266   :  { %2324 = vrot.lane.b32.xlu1 %v2186_v21, %s4282_s19 }
0x22cf   :  { %v2276_v47 = vpop.permute.xlu0 %2275 }
0x22d0   :  { %v2278_v49 = vadd.f32 %v2276_v47, %v4882_v16  ;;  %v2314_v52 = vpop.permute.xlu1 %2313  ;;  %v2445_v47 = vld [vmem:[#allocation5 + $0x38] sm:$0xff] }
0x22d1   :  { %v2316_v57 = vadd.f32 %v2314_v52, %v2292_v54 }
0x22d2   :  { %4139 = vtanh.f32 %v2278_v49 }
0x22d3   :  { %4141 = vtanh.f32 %v2316_v57 }
0x22d4   :  { %4143 = vpow2.f32 %v3388_v3  ;;  %v2287_v59 = vpop.permute.xlu1 %2286 }
0x22d5   :  { %v2289_v9 = vmul.f32 %v4136_v34, %v2287_v59 }
0x22d8   :  { %v2325_v55 = vpop.permute.xlu1 %2324 }
0x22dc   :  { %v4140_v61 = vpop.eup %4139 }
0x22dd   :  { %2282 = vrot.lane.b32.xlu0 %v4140_v61, %s4282_s19  ;;  %v4142_v63 = vpop.eup %4141 }
0x22de   :  { %v4144_v4 = vpop.eup %4143 }
0x22df   :  { %v2304_v33 = vadd.f32 1.0, %v4144_v4 }
0x22e1   :  { %2320 = vrot.lane.b32.xlu0 %v4142_v63, %s4282_s19  ;;  %4145 = vrcp.f32 %v2304_v33 }
0x22eb   :  { %v4146_v1 = vpop.eup %4145 }
0x22ec   :  { %v2318_v56 = vsub.f32 1.0, %v4146_v1  ;;  %v2327_v62 = vmul.f32 %v4146_v1, %v2325_v55 }
0x234f   :  { %v2283_v7 = vpop.permute.xlu0 %2282 }
0x2350   :  { %v2285_v10 = vmul.f32 %v2283_v7, %v2280_v5 }
0x2352   :  { %v2290_v6 = vadd.f32 %v2289_v9, %v2285_v10 }
0x2353   :  { %v2321_v11 = vpop.permute.xlu0 %2320 }
0x2354   :  { %v2323_v14 = vmul.f32 %v2321_v11, %v2318_v56  ;;  %2330 = vrot.lane.b32.xlu0 %v2290_v6, %s4282_s19 }
0x2356   :  { %v2328_v35 = vadd.f32 %v2327_v62, %v2323_v14 }
0x2358   :  { %2334 = vst.msk [vmem:[#allocation7 + $0x20] sm:$0xff] %vm224_vm8, %v2328_v35  ;;  %2336 = vrot.lane.b32.xlu1 %v2328_v35, %s4283_s27 }
0x23c6   :  { %v2331_v51 = vpop.permute.xlu0 %2330 }
0x23c7   :  { %2333 = vst.msk [vmem:[#allocation6 + $0x18] sm:$0xff] %vm224_vm8, %v2331_v51 }
0x23ca   :  { %v2337_v17 = vpop.permute.xlu1 %2336 }
0x23cb   :  { %v2339_v18 = vsel %vm224_vm8, %v2331_v51, %v2337_v17 }
0x23cc   :  { %3389 = vmatmul.mubr.msk.f32.vlgmr.msra.gmra.mrb[26].mxu1 %vm1402_vm11, %v2339_v18 }
0x23cd   :  { %3940 = vmatpush1.bf16.msra.mxu1 %v4724_v20  ;;  %2713 = vmatprep.mubr.f32.mxu1 %v4280_v15 }
0x23ce   :  { %3942 = vmatprep.subr.bf16.mxu1 %v4727_v23 }
0x23d1   :  { %3944 = vmatpush1.bf16.msra.mxu1 %v4748_v13 }
0x23d2   :  { %3946 = vmatprep.subr.bf16.mxu1 %v4751_v32 }
0x23d5   :  { %3948 = vmatpush1.bf16.msra.mxu1 %v4768_v42 }
0x23d6   :  { %3950 = vmatprep.subr.bf16.mxu1 %v4771_v43 }
0x23d9   :  { %3952 = vmatpush1.bf16.msra.mxu1 %v4780_v46 }
0x249f   :  { %v2409_v19 = vpop.f32.mrb[26].mxu1 }
0x24a0   :  { %v2410_v21 = vadd.f32 %v2409_v19, %v4857_v53  ;;  %v2411_v22 = vpop.f32.mrb[27].mxu1 }
0x24a1   :  { %v2412_v30 = vadd.f32 %v2411_v22, %v4859_v58 }
0x24a2   :  { %2423 = vrot.lane.b32.xlu0 %v2410_v21, %s4281_s18  ;;  %v2415_v27 = vadd.f32 %v2410_v21, %v4886_v26  ;;  %v2446_v24 = vadd.f32 %v2410_v21, %v4882_v16 }
0x24a3   :  { %2461 = vrot.lane.b32.xlu1 %v2412_v30, %s4281_s18  ;;  %v2453_v57 = vadd.f32 %v2445_v47, %v2412_v30 }
0x24a4   :  { %v3390_v25 = vmul.f32 -1.442695, %v2415_v27  ;;  %v3391_v60 = vmul.f32 -1.442695, %v2446_v24 }
0x24a5   :  { %v3392_v61 = vmul.f32 -1.442695, %v2453_v57 }
0x24a6   :  { %4147 = vpow2.f32 %v3390_v25 }
0x24a7   :  { %4149 = vpow2.f32 %v3391_v60 }
0x24b0   :  { %v4148_v2 = vpop.eup %4147 }
0x24b1   :  { %v4150_v8 = vpop.eup %4149  ;;  %v2419_v28 = vadd.f32 1.0, %v4148_v2  ;;  %v2598_v2 = vld [vmem:[#allocation5 + $0x28] sm:$0xff] }
0x24b2   :  { %v2450_v36 = vadd.f32 1.0, %v4150_v8 }
0x24b3   :  { %4151 = vrcp.f32 %v2419_v28 }
0x24b4   :  { %4153 = vrcp.f32 %v2450_v36 }
0x24bd   :  { %v4152_v29 = vpop.eup %4151 }
0x24be   :  { %v4154_v34 = vpop.eup %4153  ;;  %v2433_v4 = vsub.f32 1.0, %v4152_v29 }
0x2514   :  { %v2424_v50 = vpop.permute.xlu0 %2423 }
0x2515   :  { %v2426_v38 = vmul.f32 %v4152_v29, %v2424_v50  ;;  %v2462_v39 = vpop.permute.xlu1 %2461 }
0x2516   :  { %v2464_v41 = vmul.f32 %v4154_v34, %v2462_v39 }
0x2517   :  { %2428 = vrot.lane.b32.xlu0 %v2426_v38, %s4281_s18 }
0x2518   :  { %2466 = vrot.lane.b32.xlu1 %v2464_v41, %s4281_s18 }
0x251c   :  { %2439 = vrot.lane.b32.xlu1 %v2339_v18, %s4283_s27 }
0x2520   :  { %2477 = vrot.lane.b32.xlu1 %v2339_v18, %s4282_s19 }
0x2589   :  { %v2429_v16 = vpop.permute.xlu0 %2428 }
0x258a   :  { %v2431_v44 = vadd.f32 %v2429_v16, %v4886_v26  ;;  %v2467_v45 = vpop.permute.xlu1 %2466 }
0x258b   :  { %v2469_v49 = vadd.f32 %v2467_v45, %v2445_v47 }
0x258c   :  { %4155 = vtanh.f32 %v2431_v44 }
0x258d   :  { %4157 = vtanh.f32 %v2469_v49 }
0x258e   :  { %4159 = vpow2.f32 %v3392_v61  ;;  %v2440_v3 = vpop.permute.xlu1 %2439 }
0x258f   :  { %v2442_v59 = vmul.f32 %v4152_v29, %v2440_v3 }
0x2592   :  { %v2478_v1 = vpop.permute.xlu1 %2477 }
0x2596   :  { %v4156_v52 = vpop.eup %4155 }
0x2597   :  { %2435 = vrot.lane.b32.xlu0 %v4156_v52, %s4282_s19  ;;  %v4158_v54 = vpop.eup %4157 }
0x2598   :  { %v4160_v63 = vpop.eup %4159 }
0x2599   :  { %v2457_v0 = vadd.f32 1.0, %v4160_v63 }
0x259b   :  { %2473 = vrot.lane.b32.xlu0 %v4158_v54, %s4282_s19  ;;  %4161 = vrcp.f32 %v2457_v0 }
0x25a5   :  { %v4162_v26 = vpop.eup %4161 }
0x25a6   :  { %v2471_v9 = vsub.f32 1.0, %v4162_v26  ;;  %v2480_v55 = vmul.f32 %v4162_v26, %v2478_v1 }
0x2609   :  { %v2436_v33 = vpop.permute.xlu0 %2435 }
0x260a   :  { %v2438_v5 = vmul.f32 %v2436_v33, %v2433_v4 }
0x260c   :  { %v2443_v7 = vadd.f32 %v2442_v59, %v2438_v5 }
0x260d   :  { %v2474_v10 = vpop.permute.xlu0 %2473 }
0x260e   :  { %v2476_v6 = vmul.f32 %v2474_v10, %v2471_v9  ;;  %2483 = vrot.lane.b32.xlu0 %v2443_v7, %s4282_s19 }
0x2610   :  { %v2481_v56 = vadd.f32 %v2480_v55, %v2476_v6 }
0x2612   :  { %2487 = vst.msk [vmem:[#allocation7 + $0x18] sm:$0xff] %vm224_vm8, %v2481_v56  ;;  %2489 = vrot.lane.b32.xlu1 %v2481_v56, %s4283_s27 }
0x2680   :  { %v2484_v11 = vpop.permute.xlu0 %2483 }
0x2681   :  { %2486 = vst.msk [vmem:[#allocation6 + $0x20] sm:$0xff] %vm224_vm8, %v2484_v11 }
0x2684   :  { %v2490_v62 = vpop.permute.xlu1 %2489 }
0x2685   :  { %v2492_v14 = vsel %vm224_vm8, %v2484_v11, %v2490_v62 }
0x2686   :  { %3393 = vmatmul.mubr.msk.f32.vlgmr.msra.gmra.mrb[38].mxu0 %vm1402_vm11, %v2492_v14 }
0x2687   :  { %3956 = vmatpush1.bf16.msra.mxu0 %v4724_v20  ;;  %2866 = vmatprep.mubr.f32.mxu0 %v4280_v15 }
0x2688   :  { %3958 = vmatprep.subr.bf16.mxu0 %v4727_v23 }
0x268b   :  { %3960 = vmatpush1.bf16.msra.mxu0 %v4748_v13 }
0x268c   :  { %3962 = vmatprep.subr.bf16.mxu0 %v4751_v32 }
0x268f   :  { %3964 = vmatpush1.bf16.msra.mxu0 %v4768_v42 }
0x2690   :  { %3966 = vmatprep.subr.bf16.mxu0 %v4771_v43 }
0x2693   :  { %3968 = vmatpush1.bf16.msra.mxu0 %v4780_v46 }
0x2759   :  { %v2562_v35 = vpop.f32.mrb[38].mxu0 }
0x275a   :  { %v2563_v51 = vadd.f32 %v2562_v35, %v4857_v53  ;;  %v2564_v17 = vpop.f32.mrb[39].mxu0 }
0x275b   :  { %v2565_v20 = vadd.f32 %v2564_v17, %v4859_v58 }
0x275c   :  { %2576 = vrot.lane.b32.xlu0 %v2563_v51, %s4281_s18  ;;  %v2568_v15 = vadd.f32 %v2563_v51, %v4889_v48  ;;  %v2599_v23 = vadd.f32 %v2563_v51, %v4879_v12 }
0x275d   :  { %2614 = vrot.lane.b32.xlu1 %v2565_v20, %s4281_s18  ;;  %v2606_v29 = vadd.f32 %v2598_v2, %v2565_v20 }
0x275e   :  { %v3394_v13 = vmul.f32 -1.442695, %v2568_v15  ;;  %v3395_v32 = vmul.f32 -1.442695, %v2599_v23 }
0x275f   :  { %v3396_v50 = vmul.f32 -1.442695, %v2606_v29 }
0x2760   :  { %4163 = vpow2.f32 %v3394_v13  ;;  %v2751_v13 = vld [vmem:[#allocation5 + $0x18] sm:$0xff] }
0x2761   :  { %4165 = vpow2.f32 %v3395_v32 }
0x276a   :  { %v4164_v42 = vpop.eup %4163 }
0x276b   :  { %v4166_v43 = vpop.eup %4165  ;;  %v2572_v46 = vadd.f32 1.0, %v4164_v42 }
0x276c   :  { %v2603_v18 = vadd.f32 1.0, %v4166_v43 }
0x276d   :  { %4167 = vrcp.f32 %v2572_v46 }
0x276e   :  { %4169 = vrcp.f32 %v2603_v18 }
0x2777   :  { %v4168_v19 = vpop.eup %4167 }
0x2778   :  { %v4170_v22 = vpop.eup %4169  ;;  %v2586_v41 = vsub.f32 1.0, %v4168_v19 }
0x27ce   :  { %v2577_v21 = vpop.permute.xlu0 %2576 }
0x27cf   :  { %v2579_v30 = vmul.f32 %v4168_v19, %v2577_v21  ;;  %v2615_v27 = vpop.permute.xlu1 %2614 }
0x27d0   :  { %v2617_v24 = vmul.f32 %v4170_v22, %v2615_v27 }
0x27d1   :  { %2581 = vrot.lane.b32.xlu0 %v2579_v30, %s4281_s18 }
0x27d2   :  { %2619 = vrot.lane.b32.xlu1 %v2617_v24, %s4281_s18 }
0x27d6   :  { %2592 = vrot.lane.b32.xlu1 %v2492_v14, %s4283_s27 }
0x27da   :  { %2630 = vrot.lane.b32.xlu1 %v2492_v14, %s4282_s19 }
0x2843   :  { %v2582_v12 = vpop.permute.xlu0 %2581 }
0x2844   :  { %v2584_v25 = vadd.f32 %v2582_v12, %v4889_v48  ;;  %v2620_v60 = vpop.permute.xlu1 %2619 }
0x2845   :  { %v2622_v8 = vadd.f32 %v2620_v60, %v2598_v2 }
0x2846   :  { %4171 = vtanh.f32 %v2584_v25 }
0x2847   :  { %4173 = vtanh.f32 %v2622_v8 }
0x2848   :  { %4175 = vpow2.f32 %v3396_v50  ;;  %v2593_v39 = vpop.permute.xlu1 %2592 }
0x2849   :  { %v2595_v44 = vmul.f32 %v4168_v19, %v2593_v39 }
0x284c   :  { %v2631_v47 = vpop.permute.xlu1 %2630 }
0x2850   :  { %v4172_v28 = vpop.eup %4171 }
0x2851   :  { %2588 = vrot.lane.b32.xlu0 %v4172_v28, %s4282_s19  ;;  %v4174_v36 = vpop.eup %4173 }
0x2852   :  { %v4176_v34 = vpop.eup %4175 }
0x2853   :  { %v2610_v38 = vadd.f32 1.0, %v4176_v34 }
0x2855   :  { %2626 = vrot.lane.b32.xlu0 %v4174_v36, %s4282_s19  ;;  %4177 = vrcp.f32 %v2610_v38 }
0x285f   :  { %v4178_v48 = vpop.eup %4177 }
0x2860   :  { %v2624_v52 = vsub.f32 1.0, %v4178_v48  ;;  %v2633_v57 = vmul.f32 %v4178_v48, %v2631_v47 }
0x28c3   :  { %v2589_v16 = vpop.permute.xlu0 %2588 }
0x28c4   :  { %v2591_v45 = vmul.f32 %v2589_v16, %v2586_v41 }
0x28c6   :  { %v2596_v49 = vadd.f32 %v2595_v44, %v2591_v45  ;;  %v2903_v45 = vld [vmem:[#allocation5] sm:$0xff] }
0x28c7   :  { %v2627_v54 = vpop.permute.xlu0 %2626 }
0x28c8   :  { %v2629_v61 = vmul.f32 %v2627_v54, %v2624_v52  ;;  %2636 = vrot.lane.b32.xlu0 %v2596_v49, %s4282_s19 }
0x28ca   :  { %v2634_v63 = vadd.f32 %v2633_v57, %v2629_v61 }
0x28cc   :  { %2640 = vst.msk [vmem:[#allocation7 + $0x10] sm:$0xff] %vm224_vm8, %v2634_v63  ;;  %2642 = vrot.lane.b32.xlu1 %v2634_v63, %s4283_s27 }
0x293a   :  { %v2637_v0 = vpop.permute.xlu0 %2636 }
0x293b   :  { %2639 = vst.msk [vmem:[#allocation6 + $0x28] sm:$0xff] %vm224_vm8, %v2637_v0 }
0x293e   :  { %v2643_v3 = vpop.permute.xlu1 %2642 }
0x293f   :  { %v2645_v4 = vsel %vm224_vm8, %v2637_v0, %v2643_v3 }
0x2940   :  { %3397 = vmatmul.mubr.msk.f32.vlgmr.msra.gmra.mrb[28].mxu1 %vm1402_vm11, %v2645_v4 }
0x2a13   :  { %v2715_v26 = vpop.f32.mrb[28].mxu1 }
0x2a14   :  { %v2716_v33 = vadd.f32 %v2715_v26, %v4857_v53  ;;  %v2717_v59 = vpop.f32.mrb[29].mxu1 }
0x2a15   :  { %v2718_v5 = vadd.f32 %v2717_v59, %v4859_v58  ;;  %v2904_v59 = vld [vmem:[#allocation5 + $0x8] sm:$0xff] }
0x2a16   :  { %2729 = vrot.lane.b32.xlu0 %v2716_v33, %s4281_s18  ;;  %v2721_v1 = vadd.f32 %v2716_v33, %v4892_v31  ;;  %v2752_v7 = vadd.f32 %v2716_v33, %v4876_v37 }
0x2a17   :  { %2767 = vrot.lane.b32.xlu1 %v2718_v5, %s4281_s18  ;;  %v2759_v46 = vadd.f32 %v2751_v13, %v2718_v5 }
0x2a18   :  { %v3398_v9 = vmul.f32 -1.442695, %v2721_v1  ;;  %v3399_v10 = vmul.f32 -1.442695, %v2752_v7  ;;  %v4227_v7 = vld [vmem:[#allocation5 + $0x70] sm:$0xff] }
0x2a19   :  { %v3400_v18 = vmul.f32 -1.442695, %v2759_v46 }
0x2a1a   :  { %4179 = vpow2.f32 %v3398_v9 }
0x2a1b   :  { %4181 = vpow2.f32 %v3399_v10 }
0x2a24   :  { %v4180_v55 = vpop.eup %4179 }
0x2a25   :  { %v4182_v6 = vpop.eup %4181  ;;  %v2725_v56 = vadd.f32 1.0, %v4180_v55 }
0x2a26   :  { %v2756_v11 = vadd.f32 1.0, %v4182_v6 }
0x2a27   :  { %4183 = vrcp.f32 %v2725_v56 }
0x2a28   :  { %4185 = vrcp.f32 %v2756_v11 }
0x2a31   :  { %v4184_v62 = vpop.eup %4183 }
0x2a32   :  { %v4186_v35 = vpop.eup %4185  ;;  %v2739_v30 = vsub.f32 1.0, %v4184_v62 }
0x2a88   :  { %v2730_v14 = vpop.permute.xlu0 %2729 }
0x2a89   :  { %v2732_v51 = vmul.f32 %v4184_v62, %v2730_v14  ;;  %v2768_v17 = vpop.permute.xlu1 %2767 }
0x2a8a   :  { %v2770_v20 = vmul.f32 %v4186_v35, %v2768_v17 }
0x2a8b   :  { %2734 = vrot.lane.b32.xlu0 %v2732_v51, %s4281_s18 }
0x2a8c   :  { %2772 = vrot.lane.b32.xlu1 %v2770_v20, %s4281_s18 }
0x2a90   :  { %2745 = vrot.lane.b32.xlu1 %v2645_v4, %s4283_s27 }
0x2a94   :  { %2783 = vrot.lane.b32.xlu1 %v2645_v4, %s4282_s19 }
0x2afd   :  { %v2735_v37 = vpop.permute.xlu0 %2734 }
0x2afe   :  { %v2737_v15 = vadd.f32 %v2735_v37, %v4892_v31  ;;  %v2773_v23 = vpop.permute.xlu1 %2772 }
0x2aff   :  { %v2775_v32 = vadd.f32 %v2773_v23, %v2751_v13 }
0x2b00   :  { %4187 = vtanh.f32 %v2737_v15 }
0x2b01   :  { %4189 = vtanh.f32 %v2775_v32 }
0x2b02   :  { %4191 = vpow2.f32 %v3400_v18  ;;  %v2746_v22 = vpop.permute.xlu1 %2745 }
0x2b03   :  { %v2748_v24 = vmul.f32 %v4184_v62, %v2746_v22  ;;  %v2973_v22 = vld [vmem:[#allocation7 + $0x30] sm:$0xff] }
0x2b06   :  { %v2784_v25 = vpop.permute.xlu1 %2783 }
0x2b0a   :  { %v4188_v42 = vpop.eup %4187 }
0x2b0b   :  { %2741 = vrot.lane.b32.xlu0 %v4188_v42, %s4282_s19  ;;  %v4190_v43 = vpop.eup %4189 }
0x2b0c   :  { %v4192_v19 = vpop.eup %4191 }
0x2b0d   :  { %v2763_v21 = vadd.f32 1.0, %v4192_v19  ;;  %v2971_v19 = vld [vmem:[#allocation7 + $0x20] sm:$0xff] }
0x2b0f   :  { %2779 = vrot.lane.b32.xlu0 %v4190_v43, %s4282_s19  ;;  %4193 = vrcp.f32 %v2763_v21  ;;  %v2969_v21 = vld [vmem:[#allocation7 + $0x10] sm:$0xff] }
0x2b19   :  { %v4194_v31 = vpop.eup %4193 }
0x2b1a   :  { %v2777_v2 = vsub.f32 1.0, %v4194_v31  ;;  %v2786_v28 = vmul.f32 %v4194_v31, %v2784_v25  ;;  %v2972_v31 = vld [vmem:[#allocation7 + $0x28] sm:$0xff] }
0x2b7d   :  { %v2742_v27 = vpop.permute.xlu0 %2741 }
0x2b7e   :  { %v2744_v12 = vmul.f32 %v2742_v27, %v2739_v30  ;;  %v2970_v30 = vld [vmem:[#allocation7 + $0x18] sm:$0xff] }
0x2b7f   :  { %v2974_v27 = vld [vmem:[#allocation7 + $0x38] sm:$0xff] }
0x2b80   :  { %v2749_v60 = vadd.f32 %v2748_v24, %v2744_v12  ;;  %v2960_v12 = vld [vmem:[#allocation6 + $0x8] sm:$0xff] }
0x2b81   :  { %v2780_v8 = vpop.permute.xlu0 %2779 }
0x2b82   :  { %v2782_v36 = vmul.f32 %v2780_v8, %v2777_v2  ;;  %2789 = vrot.lane.b32.xlu0 %v2749_v60, %s4282_s19  ;;  %v2959_v8 = vld [vmem:[#allocation6] sm:$0xff] }
0x2b84   :  { %v2787_v29 = vadd.f32 %v2786_v28, %v2782_v36 }
0x2b86   :  { %2793 = vst.msk [vmem:[#allocation7 + $0x8] sm:$0xff] %vm224_vm8, %v2787_v29  ;;  %2795 = vrot.lane.b32.xlu1 %v2787_v29, %s4283_s27 }
0x2bf4   :  { %v2790_v50 = vpop.permute.xlu0 %2789 }
0x2bf5   :  { %2792 = vst.msk [vmem:[#allocation6 + $0x30] sm:$0xff] %vm224_vm8, %v2790_v50 }
0x2bf8   :  { %v2796_v34 = vpop.permute.xlu1 %2795 }
0x2bf9   :  { %v2798_v38 = vsel %vm224_vm8, %v2790_v50, %v2796_v34 }
0x2bfa   :  { %3401 = vmatmul.mubr.msk.f32.vlgmr.msra.gmra.mrb[40].mxu0 %vm1402_vm11, %v2798_v38 }
0x2ccd   :  { %v2868_v39 = vpop.f32.mrb[40].mxu0 }
0x2cce   :  { %v2869_v41 = vadd.f32 %v2868_v39, %v4857_v53  ;;  %v2870_v48 = vpop.f32.mrb[41].mxu0 }
0x2ccf   :  { %v2871_v16 = vadd.f32 %v2870_v48, %v4859_v58 }
0x2cd0   :  { %2882 = vrot.lane.b32.xlu1 %v2869_v41, %s4281_s18  ;;  %v2874_v44 = vadd.f32 %v2869_v41, %v4895_v40  ;;  %v2905_v47 = vadd.f32 %v2903_v45, %v2869_v41  ;;  %v2968_v40 = vld [vmem:[#allocation7 + $0x8] sm:$0xff]  ;;  %v2963_v41 = vld [vmem:[#allocation6 + $0x20] sm:$0xff] }
0x2cd1   :  { %2920 = vrot.lane.b32.xlu0 %v2871_v16, %s4281_s18  ;;  %v2912_v6 = vadd.f32 %v2904_v59, %v2871_v16 }
0x2cd2   :  { %v3402_v49 = vmul.f32 -1.442695, %v2874_v44  ;;  %v3403_v52 = vmul.f32 -1.442695, %v2905_v47  ;;  %v2962_v47 = vld [vmem:[#allocation6 + $0x18] sm:$0xff] }
0x2cd3   :  { %v3404_v56 = vmul.f32 -1.442695, %v2912_v6 }
0x2cd4   :  { %4195 = vpow2.f32 %v3402_v49 }
0x2cd5   :  { %4197 = vpow2.f32 %v3403_v52  ;;  %v2965_v52 = vld [vmem:[#allocation6 + $0x30] sm:$0xff] }
0x2cde   :  { %v4196_v54 = vpop.eup %4195 }
0x2cdf   :  { %v4198_v57 = vpop.eup %4197  ;;  %v2878_v61 = vadd.f32 1.0, %v4196_v54 }
0x2ce0   :  { %v2909_v63 = vadd.f32 1.0, %v4198_v57 }
0x2ce1   :  { %4199 = vrcp.f32 %v2878_v61 }
0x2ce2   :  { %4201 = vrcp.f32 %v2909_v63 }
0x2ceb   :  { %v4200_v53 = vpop.eup %4199 }
0x2cec   :  { %v4202_v0 = vpop.eup %4201  ;;  %v2892_v13 = vsub.f32 1.0, %v4200_v53 }
0x2d42   :  { %v2883_v58 = vpop.permute.xlu1 %2882 }
0x2d43   :  { %v2885_v3 = vmul.f32 %v4200_v53, %v2883_v58  ;;  %v2921_v4 = vpop.permute.xlu0 %2920 }
0x2d44   :  { %v2923_v26 = vmul.f32 %v4202_v0, %v2921_v4 }
0x2d45   :  { %2887 = vrot.lane.b32.xlu1 %v2885_v3, %s4281_s18 }
0x2d46   :  { %2925 = vrot.lane.b32.xlu0 %v2923_v26, %s4281_s18 }
0x2d49   :  { %2936 = vrot.lane.b32.xlu1 %v2798_v38, %s4282_s19 }
0x2d4d   :  { %2898 = vrot.lane.b32.xlu1 %v2798_v38, %s4283_s27  ;;  %v2961_v38 = vld [vmem:[#allocation6 + $0x10] sm:$0xff] }
0x2d51   :  { %2985 = vrot.lane.b32.xlu1 %v2968_v40, %s4283_s27 }
0x2db7   :  { %v2888_v33 = vpop.permute.xlu1 %2887 }
0x2db8   :  { %v2926_v5 = vpop.permute.xlu0 %2925  ;;  %v2890_v9 = vadd.f32 %v4227_v7, %v2888_v33 }
0x2db9   :  { %v2928_v1 = vadd.f32 %v2926_v5, %v2904_v59 }
0x2dbb   :  { %4203 = vtanh.f32 %v2928_v1  ;;  %v2937_v35 = vpop.permute.xlu1 %2936 }
0x2dbc   :  { %4205 = vtanh.f32 %v2890_v9 }
0x2dbd   :  { %4207 = vpow2.f32 %v3404_v56 }
0x2dbf   :  { %v2899_v15 = vpop.permute.xlu1 %2898 }
0x2dc0   :  { %v2901_v42 = vmul.f32 %v4200_v53, %v2899_v15  ;;  %v2964_v53 = vld [vmem:[#allocation6 + $0x28] sm:$0xff] }
0x2dc3   :  { %v2986_v24 = vpop.permute.xlu1 %2985 }
0x2dc4   :  { %v3008_v25 = vsel %vm224_vm8, %v2960_v12, %v2986_v24 }
0x2dc5   :  { %v4204_v10 = vpop.eup %4203  ;;  %v3018_v60 = vsel %vm1402_vm11, %v3008_v25, 0.0 }
0x2dc6   :  { %2932 = vrot.lane.b32.xlu0 %v4204_v10, %s4282_s19  ;;  %v4206_v55 = vpop.eup %4205 }
0x2dc7   :  { %v4208_v11 = vpop.eup %4207 }
0x2dc8   :  { %v2916_v62 = vadd.f32 1.0, %v4208_v11 }
0x2dca   :  { %2894 = vrot.lane.b32.xlu0 %v4206_v55, %s4282_s19  ;;  %4209 = vrcp.f32 %v2916_v62 }
0x2dd4   :  { %v4210_v14 = vpop.eup %4209 }
0x2dd5   :  { %v2930_v51 = vsub.f32 1.0, %v4210_v14  ;;  %v2939_v20 = vmul.f32 %v4210_v14, %v2937_v35 }
0x2e38   :  { %v2933_v17 = vpop.permute.xlu0 %2932 }
0x2e39   :  { %v2935_v37 = vmul.f32 %v2933_v17, %v2930_v51 }
0x2e3b   :  { %v5079_v23 = vadd.f32 %v2939_v20, %v2935_v37 }
0x2e3c   :  { %v2895_v32 = vpop.permute.xlu0 %2894 }
0x2e3d   :  { %2946 = vst.msk [vmem:[#allocation7] sm:$0xff] %vm224_vm8, %v5079_v23  ;;  %v2897_v43 = vmul.f32 %v2895_v32, %v2892_v13 }
0x2e3f   :  { %v2902_v46 = vadd.f32 %v2901_v42, %v2897_v43 }
0x2e41   :  { %2942 = vrot.lane.b32.xlu1 %v2902_v46, %s4282_s19 }
0x2e44   :  { %v2967_v18 = vld [vmem:[#allocation7] sm:$0xff] }
0x2e45   :  { %2983 = vrot.lane.b32.xlu0 %v2967_v18, %s4283_s27  ;;  %2991 = vrot.lane.b32.xlu1 %v2971_v19, %s4283_s27 }
0x2e49   :  { %2987 = vrot.lane.b32.xlu0 %v2969_v21, %s4283_s27  ;;  %2995 = vrot.lane.b32.xlu1 %v2973_v22, %s4283_s27 }
0x2e4d   :  { %2989 = vrot.lane.b32.xlu0 %v2970_v30, %s4283_s27 }
0x2e51   :  { %2993 = vrot.lane.b32.xlu0 %v2972_v31, %s4283_s27 }
0x2e55   :  { %2997 = vrot.lane.b32.xlu0 %v2974_v27, %s4283_s27 }
0x2e74   :  { %3019 = vadd.xlane.f32.xlu0 %v3018_v60 }
0x2eb3   :  { %v5093_v2 = vpop.permute.xlu1 %2942 }
0x2eb4   :  { %2945 = vst.msk [vmem:[#allocation6 + $0x38] sm:$0xff] %vm224_vm8, %v5093_v2 }
0x2eb7   :  { %v2984_v28 = vpop.permute.xlu0 %2983  ;;  %v2992_v29 = vpop.permute.xlu1 %2991 }
0x2eb8   :  { %v3007_v36 = vsel %vm224_vm8, %v2959_v8, %v2984_v28  ;;  %v3011_v16 = vsel %vm224_vm8, %v2963_v41, %v2992_v29 }
0x2eb9   :  { %v3015_v50 = vsel %vm1402_vm11, %v3007_v36, 0.0  ;;  %v3027_v54 = vsel %vm1402_vm11, %v3011_v16, 0.0 }
0x2eba   :  { %3016 = vadd.xlane.f32.xlu1 %v3015_v50 }
0x2ebb   :  { %v2988_v34 = vpop.permute.xlu0 %2987  ;;  %v2996_v44 = vpop.permute.xlu1 %2995  ;;  %v2966_v26 = vld [vmem:[#allocation6 + $0x38] sm:$0xff] }
0x2ebc   :  { %v3009_v39 = vsel %vm224_vm8, %v2961_v38, %v2988_v34  ;;  %v3013_v61 = vsel %vm224_vm8, %v2965_v52, %v2996_v44  ;;  %v3138_v38 = vld [vmem:[%s5252_s7] sm:$0xff]  ;;  %v3144_v52 = vld [vmem:[%s5252_s7 + $0x30] sm:$0xff] }
0x2ebd   :  { %v3021_v48 = vsel %vm1402_vm11, %v3009_v39, 0.0  ;;  %v3033_v3 = vsel %vm1402_vm11, %v3013_v61, 0.0 }
0x2ebe   :  { %3022 = vadd.xlane.f32.xlu0 %v3021_v48  ;;  %v3140_v48 = vld [vmem:[%s5252_s7 + $0x10] sm:$0xff] }
0x2ebf   :  { %v2990_v45 = vpop.permute.xlu0 %2989 }
0x2ec0   :  { %v3010_v49 = vsel %vm224_vm8, %v2962_v47, %v2990_v45  ;;  %v3142_v45 = vld [vmem:[%s5252_s7 + $0x20] sm:$0xff]  ;;  %v3143_v47 = vld [vmem:[%s5252_s7 + $0x28] sm:$0xff] }
0x2ec1   :  { %v3024_v57 = vsel %vm1402_vm11, %v3010_v49, 0.0 }
0x2ec2   :  { %3028 = vadd.xlane.f32.xlu0 %v3027_v54  ;;  %3025 = vadd.xlane.f32.xlu1 %v3024_v57  ;;  %v3145_v54 = vld [vmem:[%s5252_s7 + $0x38] sm:$0xff] }
0x2ec3   :  { %v2994_v63 = vpop.permute.xlu0 %2993  ;;  %v3981_v57 = vpack.c.bf16 %v3145_v54, %v3144_v52 }
0x2ec4   :  { %v3012_v58 = vsel %vm224_vm8, %v2964_v53, %v2994_v63 }
0x2ec5   :  { %v3030_v0 = vsel %vm1402_vm11, %v3012_v58, 0.0 }
0x2ec6   :  { %3031 = vadd.xlane.f32.xlu1 %v3030_v0  ;;  %3034 = vadd.xlane.f32.xlu0 %v3033_v3 }
0x2ec7   :  { %v2998_v4 = vpop.permute.xlu0 %2997 }
0x2ec8   :  { %v3014_v40 = vsel %vm224_vm8, %v2966_v26, %v2998_v4 }
0x2ec9   :  { %v3036_v33 = vsel %vm1402_vm11, %v3014_v40, 0.0 }
0x2eca   :  { %3037 = vadd.xlane.f32.xlu1 %v3036_v33 }
0x2f01   :  { %v3020_v59 = vpop.xlane.xlu0 %3019 }
0x2f02   :  { %v3041_v5 = vmul.f32 0.015625, %v3020_v59 }
0x2f04   :  { %v5111_v1 = vsub.f32 %v3008_v25, %v3041_v5 }
0x2f06   :  { %v3057_v7 = vmul.f32 %v5111_v1, %v5111_v1 }
0x2f08   :  { %v3067_v9 = vsel %vm1402_vm11, %v3057_v7, 0.0 }
0x2f09   :  { %3068 = vadd.xlane.f32.xlu1 %v3067_v9 }
0x2f47   :  { %v3017_v10 = vpop.xlane.xlu1 %3016 }
0x2f48   :  { %v3040_v55 = vmul.f32 0.015625, %v3017_v10 }
0x2f4a   :  { %v5116_v6 = vsub.f32 %v3007_v36, %v3040_v55 }
0x2f4b   :  { %v3023_v56 = vpop.xlane.xlu0 %3022 }
0x2f4c   :  { %v3042_v11 = vmul.f32 0.015625, %v3023_v56  ;;  %v3056_v62 = vmul.f32 %v5116_v6, %v5116_v6 }
0x2f4e   :  { %v5120_v14 = vsub.f32 %v3009_v39, %v3042_v11  ;;  %v3064_v35 = vsel %vm1402_vm11, %v3056_v62, 0.0  ;;  %v3139_v39 = vld [vmem:[%s5252_s7 + $0x8] sm:$0xff] }
0x2f4f   :  { %v3029_v51 = vpop.xlane.xlu0 %3028  ;;  %3065 = vadd.xlane.f32.xlu0 %v3064_v35  ;;  %v3026_v17 = vpop.xlane.xlu1 %3025  ;;  %v3969_v41 = vpack.c.bf16 %v3139_v39, %v3138_v38 }
0x2f50   :  { %v3044_v20 = vmul.f32 0.015625, %v3029_v51  ;;  %v3043_v37 = vmul.f32 0.015625, %v3026_v17  ;;  %v3058_v15 = vmul.f32 %v5120_v14, %v5120_v14  ;;  %v3120_v51 = vld [vmem:[%s5253_s8 + $0x10] ss:$0 sm:$0xff] }
0x2f51   :  { %3970 = vmatprep.subr.bf16.mxu1 %v3969_v41 }
0x2f52   :  { %v5125_v13 = vsub.f32 %v3011_v16, %v3044_v20  ;;  %v5127_v32 = vsub.f32 %v3010_v49, %v3043_v37  ;;  %v3070_v42 = vsel %vm1402_vm11, %v3058_v15, 0.0  ;;  %3972 = vmatpush3.bf16.msra.mxu1 %v3969_v41  ;;  %v3141_v16 = vld [vmem:[%s5252_s7 + $0x18] sm:$0xff]  ;;  %v3977_v49 = vpack.c.bf16 %v3143_v47, %v3142_v45 }
0x2f53   :  { %v3035_v43 = vpop.xlane.xlu0 %3034  ;;  %3071 = vadd.xlane.f32.xlu0 %v3070_v42  ;;  %v3032_v46 = vpop.xlane.xlu1 %3031  ;;  %v3973_v44 = vpack.c.bf16 %v3141_v16, %v3140_v48 }
0x2f54   :  { %v3046_v18 = vmul.f32 0.015625, %v3035_v43  ;;  %v3045_v19 = vmul.f32 0.015625, %v3032_v46  ;;  %v3060_v21 = vmul.f32 %v5125_v13, %v5125_v13  ;;  %v3059_v22 = vmul.f32 %v5127_v32, %v5127_v32 }
0x2f55   :  { %3974 = vmatprep.subr.bf16.mxu1 %v3973_v44 }
0x2f56   :  { %v5134_v30 = vsub.f32 %v3013_v61, %v3046_v18  ;;  %v5136_v31 = vsub.f32 %v3012_v58, %v3045_v19  ;;  %v3076_v27 = vsel %vm1402_vm11, %v3060_v21, 0.0  ;;  %v3073_v24 = vsel %vm1402_vm11, %v3059_v22, 0.0  ;;  %3976 = vmatpush3.bf16.msra.mxu1 %v3973_v44  ;;  %v3129_v21 = vld [vmem:[%s5253_s8 + $0x11] ss:$0 sm:$0xff] }
0x2f57   :  { %3077 = vadd.xlane.f32.xlu0 %v3076_v27  ;;  %3074 = vadd.xlane.f32.xlu1 %v3073_v24  ;;  %v3038_v12 = vpop.xlane.xlu1 %3037 }
0x2f58   :  { %v3047_v25 = vmul.f32 0.015625, %v3038_v12  ;;  %v3062_v60 = vmul.f32 %v5134_v30, %v5134_v30  ;;  %v3061_v8 = vmul.f32 %v5136_v31, %v5136_v31  ;;  %3978 = vmatprep.subr.bf16.mxu1 %v3977_v49 }
0x2f5a   :  { %v5144_v28 = vsub.f32 %v3014_v40, %v3047_v25  ;;  %v3082_v36 = vsel %vm1402_vm11, %v3062_v60, 0.0  ;;  %v3079_v29 = vsel %vm1402_vm11, %v3061_v8, 0.0  ;;  %3980 = vmatpush3.bf16.msra.mxu1 %v3977_v49 }
0x2f5b   :  { %3083 = vadd.xlane.f32.xlu0 %v3082_v36  ;;  %3080 = vadd.xlane.f32.xlu1 %v3079_v29 }
0x2f5c   :  { %v3063_v50 = vmul.f32 %v5144_v28, %v5144_v28  ;;  %3982 = vmatprep.subr.bf16.mxu1 %v3981_v57 }
0x2f5e   :  { %v3085_v34 = vsel %vm1402_vm11, %v3063_v50, 0.0  ;;  %3984 = vmatpush3.bf16.msra.mxu1 %v3981_v57 }
0x2f5f   :  { %3086 = vadd.xlane.f32.xlu1 %v3085_v34 }
0x2f71   :  { %2948 = vrot.lane.b32.xlu0 %v5079_v23, %s4283_s27 }
0x2f96   :  { %v3069_v61 = vpop.xlane.xlu1 %3068 }
0x2f97   :  { %v3089_v63 = vmul.f32 0.015625, %v3069_v61 }
0x2f99   :  { %v3097_v53 = vadd.f32 1e-05, %v3089_v63 }
0x2f9b   :  { %4211 = vrsqrt.f32 %v3097_v53 }
0x2fa5   :  { %v4212_v9 = vpop.eup %4211 }
0x2fa6   :  { %v3113_v11 = vmul.f32 %v4212_v9, %v5111_v1 }
0x2fa8   :  { %v3122_v18 = vmul.f32 %v3120_v51, %v3113_v11 }
0x2faa   :  { %v3131_v12 = vadd.f32 %v3129_v21, %v3122_v18 }
0x2fdc   :  { %v3066_v58 = vpop.xlane.xlu0 %3065 }
0x2fdd   :  { %v3088_v0 = vmul.f32 0.015625, %v3066_v58 }
0x2fdf   :  { %v3096_v3 = vadd.f32 1e-05, %v3088_v0 }
0x2fe0   :  { %v3072_v4 = vpop.xlane.xlu0 %3071 }
0x2fe1   :  { %4213 = vrsqrt.f32 %v3096_v3  ;;  %v3090_v26 = vmul.f32 0.015625, %v3072_v4 }
0x2fe3   :  { %v3098_v40 = vadd.f32 1e-05, %v3090_v26 }
0x2fe4   :  { %v3078_v33 = vpop.xlane.xlu0 %3077  ;;  %v3075_v59 = vpop.xlane.xlu1 %3074 }
0x2fe5   :  { %4215 = vrsqrt.f32 %v3098_v40  ;;  %v3092_v5 = vmul.f32 0.015625, %v3078_v33  ;;  %v3091_v7 = vmul.f32 0.015625, %v3075_v59 }
0x2fe7   :  { %v3100_v10 = vadd.f32 1e-05, %v3092_v5  ;;  %v3099_v23 = vadd.f32 1e-05, %v3091_v7 }
0x2fe8   :  { %v3084_v55 = vpop.xlane.xlu0 %3083  ;;  %v3081_v56 = vpop.xlane.xlu1 %3080 }
0x2fe9   :  { %4217 = vrsqrt.f32 %v3100_v10  ;;  %v3094_v62 = vmul.f32 0.015625, %v3084_v55  ;;  %v3093_v35 = vmul.f32 0.015625, %v3081_v56 }
0x2fea   :  { %4219 = vrsqrt.f32 %v3099_v23 }
0x2feb   :  { %v4214_v17 = vpop.eup %4213  ;;  %v3102_v20 = vadd.f32 1e-05, %v3094_v62  ;;  %v3101_v37 = vadd.f32 1e-05, %v3093_v35 }
0x2fec   :  { %v2949_v15 = vpop.permute.xlu0 %2948  ;;  %v3087_v42 = vpop.xlane.xlu1 %3086  ;;  %v3112_v43 = vmul.f32 %v4214_v17, %v5116_v6 }
0x2fed   :  { %4221 = vrsqrt.f32 %v3102_v20  ;;  %v2951_v46 = vsel %vm224_vm8, %v5093_v2, %v2949_v15  ;;  %v3095_v1 = vmul.f32 0.015625, %v3087_v42 }
0x2fee   :  { %4223 = vrsqrt.f32 %v3101_v37  ;;  %2952 = vst.msk [vmem:[#allocation10] sm:$0xff] %vm224_vm8, %v2951_v46  ;;  %2954 = vrot.lane.b32.xlu1 %v2951_v46, %s4282_s19  ;;  %v3121_v19 = vmul.f32 %v3120_v51, %v3112_v43  ;;  %s4284_s19 = smov [#allocation10]  }
0x2fef   :  { %v4216_v22 = vpop.eup %4215  ;;  %v3103_v27 = vadd.f32 1e-05, %v3095_v1  ;;  %s3302_s1 = sshll.u32 %s4284_s19, 4  ;;  %s3303_s1 = int_to_ptr.vmem [resolvable:$true] %s3302_s1 }
0x2ff0   :  { %v3130_v24 = vadd.f32 %v3129_v21, %v3121_v19  ;;  %v3114_v6 = vmul.f32 %v4216_v22, %v5120_v14  ;;  %s4228_s5 = scalar_lea.vmem %s3303_s1, 256  ;;  %p4233_p1 = scmp.lt.s32.totalorder %s3303_s1, %s3303_s1 }
0x2ff1   :  { %4225 = vrsqrt.f32 %v3103_v27  ;;  %p4229_p0 = scmp.ne.s32.totalorder %s3303_s1, %s4228_s5  ;;  %p4234_p2 = scmp.lt.s32.totalorder %s4228_s5, %s4228_s5 }
0x2ff2   :  { %3717 = vmatprep.mubr.msk.f32.mxu1 %vm1402_vm11, %v3130_v24  ;;  %v3123_v2 = vmul.f32 %v3120_v51, %v3114_v6 }
0x2ff3   :  { %v4218_v25 = vpop.eup %4217  ;;  %3718 = vmatmul.mubr.msk.f32.vlgmr.msra.gmra.mrb[30].mxu1 %vm1402_vm11, %v3131_v12  ;;  %p4235_p3 = por %p4234_p2, %p4233_p1 }
0x2ff4   :  { %v4220_v60 = vpop.eup %4219  ;;  %v3132_v8 = vadd.f32 %v3129_v21, %v3123_v2  ;;  %v3116_v36 = vmul.f32 %v4218_v25, %v5125_v13 }
0x2ff5   :  { %v3115_v29 = vmul.f32 %v4220_v60, %v5127_v32  ;;  %p4236_p4 = pnand %p4235_p3, %p4229_p0 }
0x2ff6   :  { %3720 = vmatprep.mubr.msk.f32.mxu1 %vm1402_vm11, %v3132_v8  ;;  %v3125_v50 = vmul.f32 %v3120_v51, %v3116_v36 }
0x2ff7   :  { %v4222_v34 = vpop.eup %4221  ;;  %v3124_v38 = vmul.f32 %v3120_v51, %v3115_v29 }
0x2ff8   :  { %v4224_v14 = vpop.eup %4223  ;;  %v3134_v39 = vadd.f32 %v3129_v21, %v3125_v50  ;;  %v3118_v41 = vmul.f32 %v4222_v34, %v5134_v30 }
0x2ff9   :  { %v3133_v48 = vadd.f32 %v3129_v21, %v3124_v38  ;;  %v3117_v16 = vmul.f32 %v4224_v14, %v5136_v31 }
0x2ffa   :  { %v3127_v44 = vmul.f32 %v3120_v51, %v3118_v41 }
0x2ffb   :  { %v4226_v45 = vpop.eup %4225  ;;  %3721 = vmatmul.mubr.msk.f32.gmra.mrb[32].mxu1 %vm1402_vm11, %v3133_v48  ;;  %v3126_v47 = vmul.f32 %v3120_v51, %v3117_v16 }
0x2ffc   :  { %3723 = vmatprep.mubr.msk.f32.mxu1 %vm1402_vm11, %v3134_v39  ;;  %v3136_v13 = vadd.f32 %v3129_v21, %v3127_v44  ;;  %v3119_v32 = vmul.f32 %v4226_v45, %v5144_v28 }
0x2ffd   :  { %v3135_v49 = vadd.f32 %v3129_v21, %v3126_v47 }
0x2ffe   :  { %v3128_v52 = vmul.f32 %v3120_v51, %v3119_v32 }
0x2fff   :  { %3724 = vmatmul.mubr.msk.f32.gmra.mrb[34].mxu1 %vm1402_vm11, %v3135_v49 }
0x3000   :  { %3726 = vmatprep.mubr.msk.f32.mxu1 %vm1402_vm11, %v3136_v13  ;;  %v3137_v30 = vadd.f32 %v3129_v21, %v3128_v52 }
0x3003   :  { %3727 = vmatmul.mubr.msk.f32.gmra.mrb[36].mxu1 %vm1402_vm11, %v3137_v30 }
0x3060   :  { %v2955_v31 = vpop.permute.xlu1 %2954 }
0x3061   :  { %2958 = vst.msk [vmem:[#allocation10 + $0x8] sm:$0xff] %vm224_vm8, %v2955_v31 }
0x3062   :  { %4239 = shalt.err (!%p4236_p4)
}
0x3063   :  { %s4240_s22 = scalar_lea.hbm %s5255_s10, 256 }
0x3064   :  { %p4241_p5 = scmp.ne.s32.totalorder %s5255_s10, %s4240_s22  ;;  %p4244_p6 = scmp.lt.u32.totalorder %s4240_s22, %s5255_s10 }
0x3066   :  { %p4246_p7 = pnand %p4244_p6, %p4241_p5 }
0x3068   :  { %4249 = shalt.err (!%p4246_p7)
}
0x3069   :  { %s4285_s26 = smov 128   ;;  %s4286_s28 = smov 8   ;;  %v3146_v28 = vld [vmem:[%s5253_s8 + $0x12] ss:$0 sm:$0xff]  ;;  %vm3276_vm12 = vcmask 64512  }
0x306a   :  { %3308 = dma.vmem_to_hbm [thread:$0]  %s3303_s1, 256, %s5255_s10, [#allocation11], %s4285_s26, %s4285_s26, %s4286_s28  }
0x306b   :  { %s4287_s8 = smov [#allocation8]  }
0x306c   :  { %s3290_s10 = sshll.u32 %s4287_s8, 4  ;;  %s3291_s10 = int_to_ptr.vmem [resolvable:$true] %s3290_s10 }
0x306d   :  { %s4250_s11 = scalar_lea.vmem %s3291_s10, 1024  ;;  %p4255_p9 = scmp.lt.s32.totalorder %s3291_s10, %s3291_s10 }
0x306e   :  { %p4251_p8 = scmp.ne.s32.totalorder %s3291_s10, %s4250_s11  ;;  %p4256_p10 = scmp.lt.s32.totalorder %s4250_s11, %s4250_s11 }
0x3070   :  { %p4257_p11 = por %p4256_p10, %p4255_p9 }
0x3072   :  { %p4258_p12 = pnand %p4257_p11, %p4251_p8 }
0x30c6   :  { %v3719_v54 = vpop.f32.mrb[30].mxu1 }
0x30c7   :  { %v3243_v57 = vadd.f32 %v3719_v54, %v3146_v28  ;;  %v3237_v61 = vpop.f32.mrb[31].mxu1 }
0x30c8   :  { %v3238_v63 = vadd.f32 %v3237_v61, %v3146_v28 }
0x30c9   :  { %3278 = vst.msk [vmem:[#allocation8 + $0x8] sm:$0xff] %vm3276_vm12, %v3243_v57 }
0x30ca   :  { %3277 = vst.msk [vmem:[#allocation8] sm:$0xff] %vm3276_vm12, %v3238_v63 }
0x30ce   :  { %v3722_v53 = vpop.f32.mrb[32].mxu1 }
0x30cf   :  { %v3253_v58 = vadd.f32 %v3722_v53, %v3146_v28  ;;  %v3247_v0 = vpop.f32.mrb[33].mxu1 }
0x30d0   :  { %v3248_v3 = vadd.f32 %v3247_v0, %v3146_v28 }
0x30d1   :  { %3280 = vst.msk [vmem:[#allocation8 + $0x18] sm:$0xff] %vm3276_vm12, %v3253_v58 }
0x30d2   :  { %3279 = vst.msk [vmem:[#allocation8 + $0x10] sm:$0xff] %vm3276_vm12, %v3248_v3  ;;  %v3725_v4 = vpop.f32.mrb[34].mxu1 }
0x30d3   :  { %v3263_v26 = vadd.f32 %v3725_v4, %v3146_v28  ;;  %v3257_v40 = vpop.f32.mrb[35].mxu1 }
0x30d4   :  { %v3258_v33 = vadd.f32 %v3257_v40, %v3146_v28 }
0x30d5   :  { %3282 = vst.msk [vmem:[#allocation8 + $0x28] sm:$0xff] %vm3276_vm12, %v3263_v26 }
0x30d6   :  { %3281 = vst.msk [vmem:[#allocation8 + $0x20] sm:$0xff] %vm3276_vm12, %v3258_v33  ;;  %v3728_v59 = vpop.f32.mrb[36].mxu1 }
0x30d7   :  { %v3273_v5 = vadd.f32 %v3728_v59, %v3146_v28  ;;  %v3267_v7 = vpop.f32.mrb[37].mxu1 }
0x30d8   :  { %v3268_v9 = vadd.f32 %v3267_v7, %v3146_v28 }
0x30d9   :  { %3284 = vst.msk [vmem:[#allocation8 + $0x38] sm:$0xff] %vm3276_vm12, %v3273_v5 }
0x30da   :  { %3283 = vst.msk [vmem:[#allocation8 + $0x30] sm:$0xff] %vm3276_vm12, %v3268_v9 }
0x30db   :  { %4261 = shalt.err (!%p4258_p12)
}
0x30dc   :  { %s4262_s6 = scalar_lea.hbm %s5254_s9, 1024 }
0x30dd   :  { %p4263_p13 = scmp.ne.s32.totalorder %s5254_s9, %s4262_s6  ;;  %p4266_p0 = scmp.lt.u32.totalorder %s4262_s6, %s5254_s9 }
0x30df   :  { %p4268_p1 = pnand %p4266_p0, %p4263_p13 }
0x30e1   :  { %4271 = shalt.err (!%p4268_p1)
}
0x30e2   :  { %3296 = dma.vmem_to_hbm [thread:$0]  %s3291_s10, 1024, %s5254_s9, [#allocation9], %s4285_s26, %s4285_s26, %s4286_s28  }
0x30e3   :  { %4272 = dma.done.wait [#allocation9], 1024  }
0x30e4   :  { %4273 = vsyncadd [#allocation9], 4294966272 }
0x30e5   :  { %4274 = dma.done.wait [#allocation11], 256  }
0x30e6   :  { %4275 = vsyncadd [#allocation11], 4294967040 }
0x30e7   :  { %3315 = vsyncpa [#allocation9], 1 }
0x30e8   :  { %3316 = vsyncpa [#allocation11], 1 }

</bundles_post_ra>
